<compile_context>
chip_gen: v7x
topology: tpu7x:2x2x1
jax: 0.10.0
libtpu: 0.0.40
codegen_flags: <defaults>
</compile_context>

<pallas_src>
import functools

import jax
import jax.numpy as jnp
from jax.experimental import pallas as pl
from jax.experimental.pallas import tpu as pltpu

EPS = 1e-5


def _pick_vmem_limit():
    try:
        kind = jax.devices()[0].device_kind.lower()
    except Exception:
        return 32 * 1024 * 1024
    if "v7" in kind:
        return 48 * 1024 * 1024          # 64 MiB physical VMEM per TC
    if any(v in kind for v in ("v4", "v5", "v6")):
        return 100 * 1024 * 1024         # 128 MiB physical VMEM
    return 32 * 1024 * 1024


_VMEM_LIMIT = _pick_vmem_limit()


def _compiler_params():
    return pltpu.CompilerParams(dimension_semantics=("parallel",),
                                vmem_limit_bytes=_VMEM_LIMIT)


# --------------------------------------------------------------------------
# In-kernel helpers
# --------------------------------------------------------------------------
def _stats(h):
    """Per-channel [sum | sum-of-squares] row (1, 2*C) of an (M, C) f32 slab.

    Single fused MXU matmul with bf16 operands and f32 accumulation (an
    f32 x f32 dot would lower to a multi-pass bf16 matmul)."""
    m = h.shape[0]
    ones = jnp.ones((1, m), jnp.bfloat16)
    both = jnp.concatenate([h, h * h], axis=1).astype(jnp.bfloat16)
    return jnp.dot(ones, both, preferred_element_type=jnp.float32)


# --------------------------------------------------------------------------
# Kernels
# --------------------------------------------------------------------------
def _conv1x1_kernel(*refs, pre_act):
    """[optional fused BN(scale,bias)+ReLU] -> 1x1 conv -> per-channel stats."""
    if pre_act:
        h_ref, sc_ref, bi_ref, w_ref, o_ref, st_ref = refs
    else:
        h_ref, w_ref, o_ref, st_ref = refs
    tn, H, W, Cin = h_ref.shape
    h = h_ref[...].astype(jnp.float32)
    if pre_act:
        sc = sc_ref[...].reshape(1, 1, 1, Cin)       # hoisted broadcasts
        bi = bi_ref[...].reshape(1, 1, 1, Cin)
        h = jnp.maximum(h * sc + bi, 0.0)            # f32 elementwise (v5e-safe)
    a2d = h.reshape(tn * H * W, Cin).astype(jnp.bfloat16)
    out = jnp.dot(a2d, w_ref[...], preferred_element_type=jnp.float32)
    st_ref[...] = _stats(out).reshape(1, 1, -1)
    o_ref[...] = out.reshape(tn, H, W, -1).astype(o_ref.dtype)   # bf16 store


def _conv3x3_kernel(h_ref, sc_ref, bi_ref, w_ref, o_ref, st_ref, pad_ref):
    """Fused BN+ReLU -> 3x3 conv (pad=1, stride=1) via row-grouped im2col."""
    tn, H, W, P = h_ref.shape
    Cout = w_ref.shape[-1]
    sc = sc_ref[...].reshape(1, 1, 1, P)
    bi = bi_ref[...].reshape(1, 1, 1, P)
    a = jnp.maximum(h_ref[...].astype(jnp.float32) * sc + bi, 0.0)

    # Zero only the 1-px halo border each step; interior is fully overwritten.
    pad_ref[:, 0:1, :, :] = jnp.zeros((tn, 1, W + 2, P), pad_ref.dtype)
    pad_ref[:, H + 1:H + 2, :, :] = jnp.zeros((tn, 1, W + 2, P), pad_ref.dtype)
    pad_ref[:, :, 0:1, :] = jnp.zeros((tn, H + 2, 1, P), pad_ref.dtype)
    pad_ref[:, :, W + 1:W + 2, :] = jnp.zeros((tn, H + 2, 1, P), pad_ref.dtype)
    pad_ref[:, 1:H + 1, 1:W + 1, :] = a.astype(pad_ref.dtype)

    # im2col grouped by kernel row: 3 matmuls with K=3*P accumulated in f32.
    m = tn * H * W
    acc = jnp.zeros((m, Cout), jnp.float32)
    for dh in range(3):
        row = jnp.concatenate(
            [pad_ref[:, dh:dh + H, dw:dw + W, :] for dw in range(3)],
            axis=-1).reshape(m, 3 * P)
        acc = acc + jnp.dot(row, w_ref[dh], preferred_element_type=jnp.float32)

    st_ref[...] = _stats(acc).reshape(1, 1, -1)
    o_ref[...] = acc.reshape(tn, H, W, Cout).astype(o_ref.dtype)   # bf16 store


def _finalize_kernel(h_ref, x_ref, sc_ref, bi_ref, o_ref):
    """out = relu(bn3(h) + residual)."""
    C = h_ref.shape[-1]
    sc = sc_ref[...].reshape(1, 1, 1, C)
    bi = bi_ref[...].reshape(1, 1, 1, C)
    h = h_ref[...].astype(jnp.float32)
    o_ref[...] = jnp.maximum(h * sc + bi + x_ref[...], 0.0)


# --------------------------------------------------------------------------
# pallas_call wrappers
# --------------------------------------------------------------------------
def _call_conv1x1(h, w_bf16, tile_n, scale=None, bias=None):
    N, H, W, Cin = h.shape
    Cout = w_bf16.shape[1]
    grid_n = N // tile_n
    pre_act = scale is not None

    in_specs = [pl.BlockSpec((tile_n, H, W, Cin), lambda i: (i, 0, 0, 0))]
    args = [h]
    if pre_act:
        in_specs += [pl.BlockSpec((1, Cin), lambda i: (0, 0)),
                     pl.BlockSpec((1, Cin), lambda i: (0, 0))]
        args += [scale, bias]
    in_specs.append(pl.BlockSpec((Cin, Cout), lambda i: (0, 0)))
    args.append(w_bf16)

    out, stats = pl.pallas_call(
        functools.partial(_conv1x1_kernel, pre_act=pre_act),
        grid=(grid_n,),
        in_specs=in_specs,
        out_specs=[
            pl.BlockSpec((tile_n, H, W, Cout), lambda i: (i, 0, 0, 0)),
            pl.BlockSpec((1, 1, 2 * Cout), lambda i: (i, 0, 0)),
        ],
        out_shape=[
            jax.ShapeDtypeStruct((N, H, W, Cout), jnp.bfloat16),
            jax.ShapeDtypeStruct((grid_n, 1, 2 * Cout), jnp.float32),
        ],
        compiler_params=_compiler_params(),
    )(*args)
    return out, stats


def _call_conv3x3(h, scale, bias, w2_bf16, tile_n):
    N, H, W, P = h.shape
    Cout = w2_bf16.shape[-1]
    grid_n = N // tile_n
    out, stats = pl.pallas_call(
        _conv3x3_kernel,
        grid=(grid_n,),
        in_specs=[
            pl.BlockSpec((tile_n, H, W, P), lambda i: (i, 0, 0, 0)),
            pl.BlockSpec((1, P), lambda i: (0, 0)),
            pl.BlockSpec((1, P), lambda i: (0, 0)),
            pl.BlockSpec((3, 3 * P, Cout), lambda i: (0, 0, 0)),
        ],
        out_specs=[
            pl.BlockSpec((tile_n, H, W, Cout), lambda i: (i, 0, 0, 0)),
            pl.BlockSpec((1, 1, 2 * Cout), lambda i: (i, 0, 0)),
        ],
        out_shape=[
            jax.ShapeDtypeStruct((N, H, W, Cout), jnp.bfloat16),
            jax.ShapeDtypeStruct((grid_n, 1, 2 * Cout), jnp.float32),
        ],
        scratch_shapes=[pltpu.VMEM((tile_n, H + 2, W + 2, P), jnp.bfloat16)],
        compiler_params=_compiler_params(),
    )(h, scale, bias, w2_bf16)
    return out, stats


def _call_finalize(h, x, scale, bias, tile_n):
    N, H, W, C = h.shape
    grid_n = N // tile_n
    return pl.pallas_call(
        _finalize_kernel,
        grid=(grid_n,),
        in_specs=[
            pl.BlockSpec((tile_n, H, W, C), lambda i: (i, 0, 0, 0)),
            pl.BlockSpec((tile_n, H, W, C), lambda i: (i, 0, 0, 0)),
            pl.BlockSpec((1, C), lambda i: (0, 0)),
            pl.BlockSpec((1, C), lambda i: (0, 0)),
        ],
        out_specs=pl.BlockSpec((tile_n, H, W, C), lambda i: (i, 0, 0, 0)),
        out_shape=jax.ShapeDtypeStruct((N, H, W, C), jnp.float32),
        compiler_params=_compiler_params(),
    )(h, x, scale, bias)


def _affine_from_stats(stats, gamma, beta, count):
    """Fold training-mode BN (biased batch variance) into per-channel scale/bias."""
    s = jnp.sum(stats, axis=(0, 1))                    # (2*C,) over grid tiles
    C = s.shape[0] // 2
    mu = s[:C] / count
    var = jnp.maximum(s[C:] / count - mu * mu, 0.0)
    scale = gamma.reshape(-1) * jax.lax.rsqrt(var + EPS)
    bias = beta.reshape(-1) - mu * scale
    return scale.reshape(1, -1), bias.reshape(1, -1)


@functools.partial(jax.jit, static_argnames=("tile_n",))
def bottleneck_forward(x, params, tile_n=1):
    """x: (N, H, W, C) float32, NHWC, C == planes * 4 (identity shortcut)."""
    N, H, W, C = x.shape
    if N % tile_n:
        raise ValueError("batch must be divisible by tile_n")
    P = params["w1"].shape[1]
    count = jnp.float32(N * H * W)

    # Pre-cast weights once (no per-grid-step VPU cast, half the weight DMA).
    w1 = params["w1"].astype(jnp.bfloat16)                       # (Cin, P)
    w2 = params["w2"].reshape(3, 3 * P, P).astype(jnp.bfloat16)  # (3, 3P, P)
    w3 = params["w3"].astype(jnp.bfloat16)                       # (P, 4P)

    # conv1 (1x1) + bn1 stats
    h1, st1 = _call_conv1x1(x, w1, tile_n)
    sc1, bi1 = _affine_from_stats(st1, params["g1"], params["b1"], count)

    # bn1+relu fold, conv2 (3x3) + bn2 stats
    h2, st2 = _call_conv3x3(h1, sc1, bi1, w2, tile_n)
    sc2, bi2 = _affine_from_stats(st2, params["g2"], params["b2"], count)

    # bn2+relu fold, conv3 (1x1) + bn3 stats
    h3, st3 = _call_conv1x1(h2, w3, tile_n, scale=sc2, bias=bi2)
    sc3, bi3 = _affine_from_stats(st3, params["g3"], params["b3"], count)

    # bn3 fold + residual + relu
    return _call_finalize(h3, x, sc3, bi3, tile_n)


# --------------------------------------------------------------------------
# Pure-JAX reference (same training-mode BN semantics) and parameter factory
# --------------------------------------------------------------------------
def bottleneck_reference(x, params):
    dn = ("NHWC", "HWIO", "NHWC")
    hp = jax.lax.Precision.HIGHEST

    def bn(h, g, b):
        mu = jnp.mean(h, axis=(0, 1, 2), keepdims=True)
        var = jnp.mean((h - mu) ** 2, axis=(0, 1, 2), keepdims=True)
        return (h - mu) / jnp.sqrt(var + EPS) * g.reshape(1, 1, 1, -1) \
            + b.reshape(1, 1, 1, -1)

    h = jax.lax.conv_general_dilated(x, params["w1"][None, None], (1, 1),
                                     "VALID", dimension_numbers=dn, precision=hp)
    h = jnp.maximum(bn(h, params["g1"], params["b1"]), 0.0)
    h = jax.lax.conv_general_dilated(h, params["w2"], (1, 1),
                                     ((1, 1), (1, 1)), dimension_numbers=dn,
                                     precision=hp)
    h = jnp.maximum(bn(h, params["g2"], params["b2"]), 0.0)
    h = jax.lax.conv_general_dilated(h, params["w3"][None, None], (1, 1),
                                     "VALID", dimension_numbers=dn, precision=hp)
    h = bn(h, params["g3"], params["b3"])
    return jnp.maximum(h + x, 0.0)


def make_params(inplanes, planes, key):
    """Deterministic synthetic parameters (PyTorch shapes, re-laid out for TPU)."""
    ks = jax.random.split(key, 9)
    conv1_w = 0.1 * jax.random.normal(ks[0], (planes, inplanes, 1, 1), jnp.float32)
    conv2_w = 0.1 * jax.random.normal(ks[1], (planes, planes, 3, 3), jnp.float32)
    conv3_w = 0.1 * jax.random.normal(ks[2], (planes * 4, planes, 1, 1), jnp.float32)
    g1 = 1.0 + 0.1 * jax.random.normal(ks[3], (planes,), jnp.float32)
    b1 = 0.1 * jax.random.normal(ks[4], (planes,), jnp.float32)
    g2 = 1.0 + 0.1 * jax.random.normal(ks[5], (planes,), jnp.float32)
    b2 = 0.1 * jax.random.normal(ks[6], (planes,), jnp.float32)
    g3 = 1.0 + 0.1 * jax.random.normal(ks[7], (planes * 4,), jnp.float32)
    b3 = 0.1 * jax.random.normal(ks[8], (planes * 4,), jnp.float32)
    return {
        # 1x1 convs become (Cin, Cout) matmul weights.
        "w1": conv1_w[:, :, 0, 0].T,                    # (inplanes, planes)
        # 3x3 conv: OIHW -> HWIO; grouped to (3, 3*Cin, Cout) in the wrapper.
        "w2": jnp.transpose(conv2_w, (2, 3, 1, 0)),     # (3, 3, planes, planes)
        "w3": conv3_w[:, :, 0, 0].T,                    # (planes, planes*4)
        # BN affine params as (1, C) lane rows.
        "g1": g1.reshape(1, -1), "b1": b1.reshape(1, -1),
        "g2": g2.reshape(1, -1), "b2": b2.reshape(1, -1),
        "g3": g3.reshape(1, -1), "b3": b3.reshape(1, -1),
    }


if __name__ == "__main__":
    key = jax.random.PRNGKey(0)
    kx, kp = jax.random.split(key)

    # downsample=None and stride=1 require inplanes == planes * expansion (=4).
    inplanes, planes = 16, 4
    N, H, W = 2, 16, 16
    # NHWC (channel-last) interface: identical math to the PyTorch NCHW module,
    # layout chosen so no full-tensor transpose passes are needed on TPU.
    x = jax.random.normal(kx, (N, H, W, inplanes), jnp.float32)

    params = make_params(inplanes, planes, kp)

    out = jax.block_until_ready(bottleneck_forward(x, params, tile_n=1))
    ref = jax.block_until_ready(bottleneck_reference(x, params))

    max_err = float(jnp.max(jnp.abs(out - ref)))
    if out.shape != x.shape or not bool(jnp.all(jnp.isfinite(out))):
        raise RuntimeError("bad output")
    # Kernel uses bf16 conv operands, bf16 inter-stage activations and bf16
    # stats matmuls vs the HIGHEST-precision f32 reference.
    if max_err > 1e-1:
        raise RuntimeError(f"mismatch vs reference: max abs err = {max_err}")

    print("KERNEL_OK")
</pallas_src>

<mosaic_0001>
module attributes {stable_mosaic.version = 11 : i64} {
  func.func @_conv3x3_kernel(%arg0: i32, %arg1: memref<1x16x16x4xbf16, #tpu.memory_space<vmem>>, %arg2: memref<1x4xf32, #tpu.memory_space<vmem>>, %arg3: memref<1x4xf32, #tpu.memory_space<vmem>>, %arg4: memref<3x12x4xbf16, #tpu.memory_space<vmem>>, %arg5: memref<1x16x16x4xbf16, #tpu.memory_space<vmem>>, %arg6: memref<1x1x8xf32, #tpu.memory_space<vmem>>, %arg7: memref<1x18x18x4xbf16, #tpu.memory_space<vmem>>) attributes {dimension_semantics = [#tpu.dimension_semantics<parallel>], iteration_bounds = array<i64: 2>, scalar_prefetch = 0 : i64, scratch_operands = 1 : i64, tpu.core_type = #tpu.core_type<tc>, window_params = [{transform_indices = @transform_0, window_bounds = array<i64: 1, 16, 16, 4>}, {pipeline_mode = #tpu.pipeline_mode<synchronous>, transform_indices = @transform_1, window_bounds = array<i64: 1, 4>}, {pipeline_mode = #tpu.pipeline_mode<synchronous>, transform_indices = @transform_2, window_bounds = array<i64: 1, 4>}, {pipeline_mode = #tpu.pipeline_mode<synchronous>, transform_indices = @transform_3, window_bounds = array<i64: 3, 12, 4>}, {transform_indices = @transform_4, window_bounds = array<i64: 1, 16, 16, 4>}, {transform_indices = @transform_5, window_bounds = array<i64: 1, 1, 8>}]} {
    %c0 = arith.constant 0 : index
    %c0_0 = arith.constant 0 : index
    %0 = vector.load %arg2[%c0, %c0_0] : memref<1x4xf32, #tpu.memory_space<vmem>>, vector<1x4xf32>
    %1 = vector.shape_cast %0 : vector<1x4xf32> to vector<1x1x1x4xf32>
    %c0_1 = arith.constant 0 : index
    %c0_2 = arith.constant 0 : index
    %2 = vector.load %arg3[%c0_1, %c0_2] : memref<1x4xf32, #tpu.memory_space<vmem>>, vector<1x4xf32>
    %3 = vector.shape_cast %2 : vector<1x4xf32> to vector<1x1x1x4xf32>
    %c0_3 = arith.constant 0 : index
    %c0_4 = arith.constant 0 : index
    %c0_5 = arith.constant 0 : index
    %c0_6 = arith.constant 0 : index
    %4 = vector.load %arg1[%c0_3, %c0_4, %c0_5, %c0_6] : memref<1x16x16x4xbf16, #tpu.memory_space<vmem>>, vector<1x16x16x4xbf16>
    %5 = arith.extf %4 : vector<1x16x16x4xbf16> to vector<1x16x16x4xf32>
    %6 = vector.broadcast %1 : vector<1x1x1x4xf32> to vector<1x16x16x4xf32>
    %7 = arith.mulf %5, %6 : vector<1x16x16x4xf32>
    %8 = vector.broadcast %3 : vector<1x1x1x4xf32> to vector<1x16x16x4xf32>
    %9 = arith.addf %7, %8 : vector<1x16x16x4xf32>
    %cst = arith.constant 0.000000e+00 : f32
    %10 = vector.broadcast %cst : f32 to vector<1x16x16x4xf32>
    %11 = arith.maximumf %9, %10 : vector<1x16x16x4xf32>
    %cst_7 = arith.constant 0.000000e+00 : bf16
    %12 = vector.broadcast %cst_7 : bf16 to vector<1x1x18x4xbf16>
    %c0_8 = arith.constant 0 : index
    %c0_9 = arith.constant 0 : index
    %c0_10 = arith.constant 0 : index
    %c0_11 = arith.constant 0 : index
    %13 = vector.load %arg7[%c0_8, %c0_9, %c0_10, %c0_11] : memref<1x18x18x4xbf16, #tpu.memory_space<vmem>>, vector<1x1x18x4xbf16>
    tpu.vector_store %arg7[%c0_8, %c0_9, %c0_10, %c0_11], %12 {strides = array<i32>} : memref<1x18x18x4xbf16, #tpu.memory_space<vmem>>, vector<1x1x18x4xbf16>,
    %cst_12 = arith.constant 0.000000e+00 : bf16
    %14 = vector.broadcast %cst_12 : bf16 to vector<1x1x18x4xbf16>
    %c0_13 = arith.constant 0 : index
    %c17 = arith.constant 17 : index
    %c0_14 = arith.constant 0 : index
    %c0_15 = arith.constant 0 : index
    %15 = vector.load %arg7[%c0_13, %c17, %c0_14, %c0_15] : memref<1x18x18x4xbf16, #tpu.memory_space<vmem>>, vector<1x1x18x4xbf16>
    tpu.vector_store %arg7[%c0_13, %c17, %c0_14, %c0_15], %14 {strides = array<i32>} : memref<1x18x18x4xbf16, #tpu.memory_space<vmem>>, vector<1x1x18x4xbf16>,
    %cst_16 = arith.constant 0.000000e+00 : bf16
    %16 = vector.broadcast %cst_16 : bf16 to vector<1x18x1x4xbf16>
    %c0_17 = arith.constant 0 : index
    %c0_18 = arith.constant 0 : index
    %c0_19 = arith.constant 0 : index
    %c0_20 = arith.constant 0 : index
    %17 = vector.load %arg7[%c0_17, %c0_18, %c0_19, %c0_20] : memref<1x18x18x4xbf16, #tpu.memory_space<vmem>>, vector<1x18x1x4xbf16>
    tpu.vector_store %arg7[%c0_17, %c0_18, %c0_19, %c0_20], %16 {strides = array<i32>} : memref<1x18x18x4xbf16, #tpu.memory_space<vmem>>, vector<1x18x1x4xbf16>,
    %cst_21 = arith.constant 0.000000e+00 : bf16
    %18 = vector.broadcast %cst_21 : bf16 to vector<1x18x1x4xbf16>
    %c0_22 = arith.constant 0 : index
    %c0_23 = arith.constant 0 : index
    %c17_24 = arith.constant 17 : index
    %c0_25 = arith.constant 0 : index
    %19 = vector.load %arg7[%c0_22, %c0_23, %c17_24, %c0_25] : memref<1x18x18x4xbf16, #tpu.memory_space<vmem>>, vector<1x18x1x4xbf16>
    tpu.vector_store %arg7[%c0_22, %c0_23, %c17_24, %c0_25], %18 {strides = array<i32>} : memref<1x18x18x4xbf16, #tpu.memory_space<vmem>>, vector<1x18x1x4xbf16>,
    %20 = arith.truncf %11 : vector<1x16x16x4xf32> to vector<1x16x16x4xbf16>
    %c0_26 = arith.constant 0 : index
    %c1 = arith.constant 1 : index
    %c1_27 = arith.constant 1 : index
    %c0_28 = arith.constant 0 : index
    %21 = vector.load %arg7[%c0_26, %c1, %c1_27, %c0_28] : memref<1x18x18x4xbf16, #tpu.memory_space<vmem>>, vector<1x16x16x4xbf16>
    tpu.vector_store %arg7[%c0_26, %c1, %c1_27, %c0_28], %20 {strides = array<i32>} : memref<1x18x18x4xbf16, #tpu.memory_space<vmem>>, vector<1x16x16x4xbf16>,
    %cst_29 = arith.constant 0.000000e+00 : f32
    %22 = vector.broadcast %cst_29 : f32 to vector<256x4xf32>
    %c0_30 = arith.constant 0 : index
    %c0_31 = arith.constant 0 : index
    %c0_32 = arith.constant 0 : index
    %c0_33 = arith.constant 0 : index
    %23 = vector.load %arg7[%c0_30, %c0_31, %c0_32, %c0_33] : memref<1x18x18x4xbf16, #tpu.memory_space<vmem>>, vector<1x16x16x4xbf16>
    %c0_34 = arith.constant 0 : index
    %c0_35 = arith.constant 0 : index
    %c1_36 = arith.constant 1 : index
    %c0_37 = arith.constant 0 : index
    %24 = vector.load %arg7[%c0_34, %c0_35, %c1_36, %c0_37] : memref<1x18x18x4xbf16, #tpu.memory_space<vmem>>, vector<1x16x16x4xbf16>
    %c0_38 = arith.constant 0 : index
    %c0_39 = arith.constant 0 : index
    %c2 = arith.constant 2 : index
    %c0_40 = arith.constant 0 : index
    %25 = vector.load %arg7[%c0_38, %c0_39, %c2, %c0_40] : memref<1x18x18x4xbf16, #tpu.memory_space<vmem>>, vector<1x16x16x4xbf16>
    %26 = tpu.concatenate %23, %24, %25 in 3 : vector<1x16x16x4xbf16>, vector<1x16x16x4xbf16>, vector<1x16x16x4xbf16> -> vector<1x16x16x12xbf16>
    %27 = vector.shape_cast %26 : vector<1x16x16x12xbf16> to vector<256x12xbf16>
    %c0_41 = arith.constant 0 : index
    %c0_42 = arith.constant 0 : index
    %c0_43 = arith.constant 0 : index
    %28 = vector.load %arg4[%c0_41, %c0_42, %c0_43] : memref<3x12x4xbf16, #tpu.memory_space<vmem>>, vector<1x12x4xbf16>
    %29 = vector.shape_cast %28 : vector<1x12x4xbf16> to vector<12x4xbf16>
    %cst_44 = arith.constant dense<0.000000e+00> : vector<256x4xf32>
    %30 = tpu.matmul %27, %29, %cst_44 {dimension_numbers = #tpu.dot_dimension_numbers<[1], [0], [0], [1], [0, 0, 1, 1], [], []>} : vector<256x12xbf16>, vector<12x4xbf16>, vector<256x4xf32> -> vector<256x4xf32>
    %31 = arith.addf %22, %30 : vector<256x4xf32>
    %c0_45 = arith.constant 0 : index
    %c1_46 = arith.constant 1 : index
    %c0_47 = arith.constant 0 : index
    %c0_48 = arith.constant 0 : index
    %32 = vector.load %arg7[%c0_45, %c1_46, %c0_47, %c0_48] : memref<1x18x18x4xbf16, #tpu.memory_space<vmem>>, vector<1x16x16x4xbf16>
    %c0_49 = arith.constant 0 : index
    %c1_50 = arith.constant 1 : index
    %c1_51 = arith.constant 1 : index
    %c0_52 = arith.constant 0 : index
    %33 = vector.load %arg7[%c0_49, %c1_50, %c1_51, %c0_52] : memref<1x18x18x4xbf16, #tpu.memory_space<vmem>>, vector<1x16x16x4xbf16>
    %c0_53 = arith.constant 0 : index
    %c1_54 = arith.constant 1 : index
    %c2_55 = arith.constant 2 : index
    %c0_56 = arith.constant 0 : index
    %34 = vector.load %arg7[%c0_53, %c1_54, %c2_55, %c0_56] : memref<1x18x18x4xbf16, #tpu.memory_space<vmem>>, vector<1x16x16x4xbf16>
    %35 = tpu.concatenate %32, %33, %34 in 3 : vector<1x16x16x4xbf16>, vector<1x16x16x4xbf16>, vector<1x16x16x4xbf16> -> vector<1x16x16x12xbf16>
    %36 = vector.shape_cast %35 : vector<1x16x16x12xbf16> to vector<256x12xbf16>
    %c1_57 = arith.constant 1 : index
    %c0_58 = arith.constant 0 : index
    %c0_59 = arith.constant 0 : index
    %37 = vector.load %arg4[%c1_57, %c0_58, %c0_59] : memref<3x12x4xbf16, #tpu.memory_space<vmem>>, vector<1x12x4xbf16>
    %38 = vector.shape_cast %37 : vector<1x12x4xbf16> to vector<12x4xbf16>
    %cst_60 = arith.constant dense<0.000000e+00> : vector<256x4xf32>
    %39 = tpu.matmul %36, %38, %cst_60 {dimension_numbers = #tpu.dot_dimension_numbers<[1], [0], [0], [1], [0, 0, 1, 1], [], []>} : vector<256x12xbf16>, vector<12x4xbf16>, vector<256x4xf32> -> vector<256x4xf32>
    %40 = arith.addf %31, %39 : vector<256x4xf32>
    %c0_61 = arith.constant 0 : index
    %c2_62 = arith.constant 2 : index
    %c0_63 = arith.constant 0 : index
    %c0_64 = arith.constant 0 : index
    %41 = vector.load %arg7[%c0_61, %c2_62, %c0_63, %c0_64] : memref<1x18x18x4xbf16, #tpu.memory_space<vmem>>, vector<1x16x16x4xbf16>
    %c0_65 = arith.constant 0 : index
    %c2_66 = arith.constant 2 : index
    %c1_67 = arith.constant 1 : index
    %c0_68 = arith.constant 0 : index
    %42 = vector.load %arg7[%c0_65, %c2_66, %c1_67, %c0_68] : memref<1x18x18x4xbf16, #tpu.memory_space<vmem>>, vector<1x16x16x4xbf16>
    %c0_69 = arith.constant 0 : index
    %c2_70 = arith.constant 2 : index
    %c2_71 = arith.constant 2 : index
    %c0_72 = arith.constant 0 : index
    %43 = vector.load %arg7[%c0_69, %c2_70, %c2_71, %c0_72] : memref<1x18x18x4xbf16, #tpu.memory_space<vmem>>, vector<1x16x16x4xbf16>
    %44 = tpu.concatenate %41, %42, %43 in 3 : vector<1x16x16x4xbf16>, vector<1x16x16x4xbf16>, vector<1x16x16x4xbf16> -> vector<1x16x16x12xbf16>
    %45 = vector.shape_cast %44 : vector<1x16x16x12xbf16> to vector<256x12xbf16>
    %c2_73 = arith.constant 2 : index
    %c0_74 = arith.constant 0 : index
    %c0_75 = arith.constant 0 : index
    %46 = vector.load %arg4[%c2_73, %c0_74, %c0_75] : memref<3x12x4xbf16, #tpu.memory_space<vmem>>, vector<1x12x4xbf16>
    %47 = vector.shape_cast %46 : vector<1x12x4xbf16> to vector<12x4xbf16>
    %cst_76 = arith.constant dense<0.000000e+00> : vector<256x4xf32>
    %48 = tpu.matmul %45, %47, %cst_76 {dimension_numbers = #tpu.dot_dimension_numbers<[1], [0], [0], [1], [0, 0, 1, 1], [], []>} : vector<256x12xbf16>, vector<12x4xbf16>, vector<256x4xf32> -> vector<256x4xf32>
    %49 = arith.addf %40, %48 : vector<256x4xf32>
    %cst_77 = arith.constant 1.000000e+00 : bf16
    %50 = vector.broadcast %cst_77 : bf16 to vector<1x256xbf16>
    %51 = arith.mulf %49, %49 : vector<256x4xf32>
    %52 = tpu.concatenate %49, %51 in 1 : vector<256x4xf32>, vector<256x4xf32> -> vector<256x8xf32>
    %53 = arith.truncf %52 : vector<256x8xf32> to vector<256x8xbf16>
    %cst_78 = arith.constant dense<0.000000e+00> : vector<1x8xf32>
    %54 = tpu.matmul %50, %53, %cst_78 {dimension_numbers = #tpu.dot_dimension_numbers<[1], [0], [0], [1], [0, 0, 1, 1], [], []>} : vector<1x256xbf16>, vector<256x8xbf16>, vector<1x8xf32> -> vector<1x8xf32>
    %55 = vector.shape_cast %54 : vector<1x8xf32> to vector<1x1x8xf32>
    %c0_79 = arith.constant 0 : index
    %c0_80 = arith.constant 0 : index
    %c0_81 = arith.constant 0 : index
    %56 = vector.load %arg6[%c0_79, %c0_80, %c0_81] : memref<1x1x8xf32, #tpu.memory_space<vmem>>, vector<1x1x8xf32>
    tpu.vector_store %arg6[%c0_79, %c0_80, %c0_81], %55 {strides = array<i32>} : memref<1x1x8xf32, #tpu.memory_space<vmem>>, vector<1x1x8xf32>,
    %57 = vector.shape_cast %49 : vector<256x4xf32> to vector<1x16x16x4xf32>
    %58 = arith.truncf %57 : vector<1x16x16x4xf32> to vector<1x16x16x4xbf16>
    %c0_82 = arith.constant 0 : index
    %c0_83 = arith.constant 0 : index
    %c0_84 = arith.constant 0 : index
    %c0_85 = arith.constant 0 : index
    %59 = vector.load %arg5[%c0_82, %c0_83, %c0_84, %c0_85] : memref<1x16x16x4xbf16, #tpu.memory_space<vmem>>, vector<1x16x16x4xbf16>
    tpu.vector_store %arg5[%c0_82, %c0_83, %c0_84, %c0_85], %58 {strides = array<i32>} : memref<1x16x16x4xbf16, #tpu.memory_space<vmem>>, vector<1x16x16x4xbf16>,
    return
  }
  func.func @transform_0(%arg0: i32) -> (i32, i32, i32, i32) {
    %c0_i32 = arith.constant 0 : i32
    %c0_i32_0 = arith.constant 0 : i32
    %c0_i32_1 = arith.constant 0 : i32
    %c0_i32_2 = arith.constant 0 : i32
    return %arg0, %c0_i32, %c0_i32_0, %c0_i32_1 : i32, i32, i32, i32
  }
  func.func @transform_1(%arg0: i32) -> (i32, i32) {
    %c0_i32 = arith.constant 0 : i32
    %c0_i32_0 = arith.constant 0 : i32
    %c0_i32_1 = arith.constant 0 : i32
    return %c0_i32, %c0_i32_0 : i32, i32
  }
  func.func @transform_2(%arg0: i32) -> (i32, i32) {
    %c0_i32 = arith.constant 0 : i32
    %c0_i32_0 = arith.constant 0 : i32
    %c0_i32_1 = arith.constant 0 : i32
    return %c0_i32, %c0_i32_0 : i32, i32
  }
  func.func @transform_3(%arg0: i32) -> (i32, i32, i32) {
    %c0_i32 = arith.constant 0 : i32
    %c0_i32_0 = arith.constant 0 : i32
    %c0_i32_1 = arith.constant 0 : i32
    %c0_i32_2 = arith.constant 0 : i32
    return %c0_i32, %c0_i32_0, %c0_i32_1 : i32, i32, i32
  }
  func.func @transform_4(%arg0: i32) -> (i32, i32, i32, i32) {
    %c0_i32 = arith.constant 0 : i32
    %c0_i32_0 = arith.constant 0 : i32
    %c0_i32_1 = arith.constant 0 : i32
    %c0_i32_2 = arith.constant 0 : i32
    return %arg0, %c0_i32, %c0_i32_0, %c0_i32_1 : i32, i32, i32, i32
  }
  func.func @transform_5(%arg0: i32) -> (i32, i32, i32) {
    %c0_i32 = arith.constant 0 : i32
    %c0_i32_0 = arith.constant 0 : i32
    %c0_i32_1 = arith.constant 0 : i32
    return %arg0, %c0_i32, %c0_i32_0 : i32, i32, i32
  }
}

module attributes {stable_mosaic.version = 11 : i64} {
  func.func @_conv1x1_kernel(%arg0: i32, %arg1: memref<1x16x16x16xf32, #tpu.memory_space<vmem>>, %arg2: memref<16x4xbf16, #tpu.memory_space<vmem>>, %arg3: memref<1x16x16x4xbf16, #tpu.memory_space<vmem>>, %arg4: memref<1x1x8xf32, #tpu.memory_space<vmem>>) attributes {dimension_semantics = [#tpu.dimension_semantics<parallel>], iteration_bounds = array<i64: 2>, scalar_prefetch = 0 : i64, scratch_operands = 0 : i64, tpu.core_type = #tpu.core_type<tc>, window_params = [{transform_indices = @transform_0, window_bounds = array<i64: 1, 16, 16, 16>}, {pipeline_mode = #tpu.pipeline_mode<synchronous>, transform_indices = @transform_1, window_bounds = array<i64: 16, 4>}, {transform_indices = @transform_2, window_bounds = array<i64: 1, 16, 16, 4>}, {transform_indices = @transform_3, window_bounds = array<i64: 1, 1, 8>}]} {
    %c0 = arith.constant 0 : index
    %c0_0 = arith.constant 0 : index
    %c0_1 = arith.constant 0 : index
    %c0_2 = arith.constant 0 : index
    %0 = vector.load %arg1[%c0, %c0_0, %c0_1, %c0_2] : memref<1x16x16x16xf32, #tpu.memory_space<vmem>>, vector<1x16x16x16xf32>
    %1 = vector.shape_cast %0 : vector<1x16x16x16xf32> to vector<256x16xf32>
    %2 = arith.truncf %1 : vector<256x16xf32> to vector<256x16xbf16>
    %c0_3 = arith.constant 0 : index
    %c0_4 = arith.constant 0 : index
    %3 = vector.load %arg2[%c0_3, %c0_4] : memref<16x4xbf16, #tpu.memory_space<vmem>>, vector<16x4xbf16>
    %cst = arith.constant dense<0.000000e+00> : vector<256x4xf32>
    %4 = tpu.matmul %2, %3, %cst {dimension_numbers = #tpu.dot_dimension_numbers<[1], [0], [0], [1], [0, 0, 1, 1], [], []>} : vector<256x16xbf16>, vector<16x4xbf16>, vector<256x4xf32> -> vector<256x4xf32>
    %cst_5 = arith.constant 1.000000e+00 : bf16
    %5 = vector.broadcast %cst_5 : bf16 to vector<1x256xbf16>
    %6 = arith.mulf %4, %4 : vector<256x4xf32>
    %7 = tpu.concatenate %4, %6 in 1 : vector<256x4xf32>, vector<256x4xf32> -> vector<256x8xf32>
    %8 = arith.truncf %7 : vector<256x8xf32> to vector<256x8xbf16>
    %cst_6 = arith.constant dense<0.000000e+00> : vector<1x8xf32>
    %9 = tpu.matmul %5, %8, %cst_6 {dimension_numbers = #tpu.dot_dimension_numbers<[1], [0], [0], [1], [0, 0, 1, 1], [], []>} : vector<1x256xbf16>, vector<256x8xbf16>, vector<1x8xf32> -> vector<1x8xf32>
    %10 = vector.shape_cast %9 : vector<1x8xf32> to vector<1x1x8xf32>
    %c0_7 = arith.constant 0 : index
    %c0_8 = arith.constant 0 : index
    %c0_9 = arith.constant 0 : index
    %11 = vector.load %arg4[%c0_7, %c0_8, %c0_9] : memref<1x1x8xf32, #tpu.memory_space<vmem>>, vector<1x1x8xf32>
    tpu.vector_store %arg4[%c0_7, %c0_8, %c0_9], %10 {strides = array<i32>} : memref<1x1x8xf32, #tpu.memory_space<vmem>>, vector<1x1x8xf32>,
    %12 = vector.shape_cast %4 : vector<256x4xf32> to vector<1x16x16x4xf32>
    %13 = arith.truncf %12 : vector<1x16x16x4xf32> to vector<1x16x16x4xbf16>
    %c0_10 = arith.constant 0 : index
    %c0_11 = arith.constant 0 : index
    %c0_12 = arith.constant 0 : index
    %c0_13 = arith.constant 0 : index
    %14 = vector.load %arg3[%c0_10, %c0_11, %c0_12, %c0_13] : memref<1x16x16x4xbf16, #tpu.memory_space<vmem>>, vector<1x16x16x4xbf16>
    tpu.vector_store %arg3[%c0_10, %c0_11, %c0_12, %c0_13], %13 {strides = array<i32>} : memref<1x16x16x4xbf16, #tpu.memory_space<vmem>>, vector<1x16x16x4xbf16>,
    return
  }
  func.func @transform_0(%arg0: i32) -> (i32, i32, i32, i32) {
    %c0_i32 = arith.constant 0 : i32
    %c0_i32_0 = arith.constant 0 : i32
    %c0_i32_1 = arith.constant 0 : i32
    %c0_i32_2 = arith.constant 0 : i32
    return %arg0, %c0_i32, %c0_i32_0, %c0_i32_1 : i32, i32, i32, i32
  }
  func.func @transform_1(%arg0: i32) -> (i32, i32) {
    %c0_i32 = arith.constant 0 : i32
    %c0_i32_0 = arith.constant 0 : i32
    %c0_i32_1 = arith.constant 0 : i32
    return %c0_i32, %c0_i32_0 : i32, i32
  }
  func.func @transform_2(%arg0: i32) -> (i32, i32, i32, i32) {
    %c0_i32 = arith.constant 0 : i32
    %c0_i32_0 = arith.constant 0 : i32
    %c0_i32_1 = arith.constant 0 : i32
    %c0_i32_2 = arith.constant 0 : i32
    return %arg0, %c0_i32, %c0_i32_0, %c0_i32_1 : i32, i32, i32, i32
  }
  func.func @transform_3(%arg0: i32) -> (i32, i32, i32) {
    %c0_i32 = arith.constant 0 : i32
    %c0_i32_0 = arith.constant 0 : i32
    %c0_i32_1 = arith.constant 0 : i32
    return %arg0, %c0_i32, %c0_i32_0 : i32, i32, i32
  }
}

module attributes {stable_mosaic.version = 11 : i64} {
  func.func @_conv1x1_kernel(%arg0: i32, %arg1: memref<1x16x16x4xbf16, #tpu.memory_space<vmem>>, %arg2: memref<1x4xf32, #tpu.memory_space<vmem>>, %arg3: memref<1x4xf32, #tpu.memory_space<vmem>>, %arg4: memref<4x16xbf16, #tpu.memory_space<vmem>>, %arg5: memref<1x16x16x16xbf16, #tpu.memory_space<vmem>>, %arg6: memref<1x1x32xf32, #tpu.memory_space<vmem>>) attributes {dimension_semantics = [#tpu.dimension_semantics<parallel>], iteration_bounds = array<i64: 2>, scalar_prefetch = 0 : i64, scratch_operands = 0 : i64, tpu.core_type = #tpu.core_type<tc>, window_params = [{transform_indices = @transform_0, window_bounds = array<i64: 1, 16, 16, 4>}, {pipeline_mode = #tpu.pipeline_mode<synchronous>, transform_indices = @transform_1, window_bounds = array<i64: 1, 4>}, {pipeline_mode = #tpu.pipeline_mode<synchronous>, transform_indices = @transform_2, window_bounds = array<i64: 1, 4>}, {pipeline_mode = #tpu.pipeline_mode<synchronous>, transform_indices = @transform_3, window_bounds = array<i64: 4, 16>}, {transform_indices = @transform_4, window_bounds = array<i64: 1, 16, 16, 16>}, {transform_indices = @transform_5, window_bounds = array<i64: 1, 1, 32>}]} {
    %c0 = arith.constant 0 : index
    %c0_0 = arith.constant 0 : index
    %c0_1 = arith.constant 0 : index
    %c0_2 = arith.constant 0 : index
    %0 = vector.load %arg1[%c0, %c0_0, %c0_1, %c0_2] : memref<1x16x16x4xbf16, #tpu.memory_space<vmem>>, vector<1x16x16x4xbf16>
    %1 = arith.extf %0 : vector<1x16x16x4xbf16> to vector<1x16x16x4xf32>
    %c0_3 = arith.constant 0 : index
    %c0_4 = arith.constant 0 : index
    %2 = vector.load %arg2[%c0_3, %c0_4] : memref<1x4xf32, #tpu.memory_space<vmem>>, vector<1x4xf32>
    %3 = vector.shape_cast %2 : vector<1x4xf32> to vector<1x1x1x4xf32>
    %c0_5 = arith.constant 0 : index
    %c0_6 = arith.constant 0 : index
    %4 = vector.load %arg3[%c0_5, %c0_6] : memref<1x4xf32, #tpu.memory_space<vmem>>, vector<1x4xf32>
    %5 = vector.shape_cast %4 : vector<1x4xf32> to vector<1x1x1x4xf32>
    %6 = vector.broadcast %3 : vector<1x1x1x4xf32> to vector<1x16x16x4xf32>
    %7 = arith.mulf %1, %6 : vector<1x16x16x4xf32>
    %8 = vector.broadcast %5 : vector<1x1x1x4xf32> to vector<1x16x16x4xf32>
    %9 = arith.addf %7, %8 : vector<1x16x16x4xf32>
    %cst = arith.constant 0.000000e+00 : f32
    %10 = vector.broadcast %cst : f32 to vector<1x16x16x4xf32>
    %11 = arith.maximumf %9, %10 : vector<1x16x16x4xf32>
    %12 = vector.shape_cast %11 : vector<1x16x16x4xf32> to vector<256x4xf32>
    %13 = arith.truncf %12 : vector<256x4xf32> to vector<256x4xbf16>
    %c0_7 = arith.constant 0 : index
    %c0_8 = arith.constant 0 : index
    %14 = vector.load %arg4[%c0_7, %c0_8] : memref<4x16xbf16, #tpu.memory_space<vmem>>, vector<4x16xbf16>
    %cst_9 = arith.constant dense<0.000000e+00> : vector<256x16xf32>
    %15 = tpu.matmul %13, %14, %cst_9 {dimension_numbers = #tpu.dot_dimension_numbers<[1], [0], [0], [1], [0, 0, 1, 1], [], []>} : vector<256x4xbf16>, vector<4x16xbf16>, vector<256x16xf32> -> vector<256x16xf32>
    %cst_10 = arith.constant 1.000000e+00 : bf16
    %16 = vector.broadcast %cst_10 : bf16 to vector<1x256xbf16>
    %17 = arith.mulf %15, %15 : vector<256x16xf32>
    %18 = tpu.concatenate %15, %17 in 1 : vector<256x16xf32>, vector<256x16xf32> -> vector<256x32xf32>
    %19 = arith.truncf %18 : vector<256x32xf32> to vector<256x32xbf16>
    %cst_11 = arith.constant dense<0.000000e+00> : vector<1x32xf32>
    %20 = tpu.matmul %16, %19, %cst_11 {dimension_numbers = #tpu.dot_dimension_numbers<[1], [0], [0], [1], [0, 0, 1, 1], [], []>} : vector<1x256xbf16>, vector<256x32xbf16>, vector<1x32xf32> -> vector<1x32xf32>
    %21 = vector.shape_cast %20 : vector<1x32xf32> to vector<1x1x32xf32>
    %c0_12 = arith.constant 0 : index
    %c0_13 = arith.constant 0 : index
    %c0_14 = arith.constant 0 : index
    %22 = vector.load %arg6[%c0_12, %c0_13, %c0_14] : memref<1x1x32xf32, #tpu.memory_space<vmem>>, vector<1x1x32xf32>
    tpu.vector_store %arg6[%c0_12, %c0_13, %c0_14], %21 {strides = array<i32>} : memref<1x1x32xf32, #tpu.memory_space<vmem>>, vector<1x1x32xf32>,
    %23 = vector.shape_cast %15 : vector<256x16xf32> to vector<1x16x16x16xf32>
    %24 = arith.truncf %23 : vector<1x16x16x16xf32> to vector<1x16x16x16xbf16>
    %c0_15 = arith.constant 0 : index
    %c0_16 = arith.constant 0 : index
    %c0_17 = arith.constant 0 : index
    %c0_18 = arith.constant 0 : index
    %25 = vector.load %arg5[%c0_15, %c0_16, %c0_17, %c0_18] : memref<1x16x16x16xbf16, #tpu.memory_space<vmem>>, vector<1x16x16x16xbf16>
    tpu.vector_store %arg5[%c0_15, %c0_16, %c0_17, %c0_18], %24 {strides = array<i32>} : memref<1x16x16x16xbf16, #tpu.memory_space<vmem>>, vector<1x16x16x16xbf16>,
    return
  }
  func.func @transform_0(%arg0: i32) -> (i32, i32, i32, i32) {
    %c0_i32 = arith.constant 0 : i32
    %c0_i32_0 = arith.constant 0 : i32
    %c0_i32_1 = arith.constant 0 : i32
    %c0_i32_2 = arith.constant 0 : i32
    return %arg0, %c0_i32, %c0_i32_0, %c0_i32_1 : i32, i32, i32, i32
  }
  func.func @transform_1(%arg0: i32) -> (i32, i32) {
    %c0_i32 = arith.constant 0 : i32
    %c0_i32_0 = arith.constant 0 : i32
    %c0_i32_1 = arith.constant 0 : i32
    return %c0_i32, %c0_i32_0 : i32, i32
  }
  func.func @transform_2(%arg0: i32) -> (i32, i32) {
    %c0_i32 = arith.constant 0 : i32
    %c0_i32_0 = arith.constant 0 : i32
    %c0_i32_1 = arith.constant 0 : i32
    return %c0_i32, %c0_i32_0 : i32, i32
  }
  func.func @transform_3(%arg0: i32) -> (i32, i32) {
    %c0_i32 = arith.constant 0 : i32
    %c0_i32_0 = arith.constant 0 : i32
    %c0_i32_1 = arith.constant 0 : i32
    return %c0_i32, %c0_i32_0 : i32, i32
  }
  func.func @transform_4(%arg0: i32) -> (i32, i32, i32, i32) {
    %c0_i32 = arith.constant 0 : i32
    %c0_i32_0 = arith.constant 0 : i32
    %c0_i32_1 = arith.constant 0 : i32
    %c0_i32_2 = arith.constant 0 : i32
    return %arg0, %c0_i32, %c0_i32_0, %c0_i32_1 : i32, i32, i32, i32
  }
  func.func @transform_5(%arg0: i32) -> (i32, i32, i32) {
    %c0_i32 = arith.constant 0 : i32
    %c0_i32_0 = arith.constant 0 : i32
    %c0_i32_1 = arith.constant 0 : i32
    return %arg0, %c0_i32, %c0_i32_0 : i32, i32, i32
  }
}

module attributes {stable_mosaic.version = 11 : i64} {
  func.func @_finalize_kernel(%arg0: i32, %arg1: memref<1x16x16x16xbf16, #tpu.memory_space<vmem>>, %arg2: memref<1x16x16x16xf32, #tpu.memory_space<vmem>>, %arg3: memref<1x16xf32, #tpu.memory_space<vmem>>, %arg4: memref<1x16xf32, #tpu.memory_space<vmem>>, %arg5: memref<1x16x16x16xf32, #tpu.memory_space<vmem>>) attributes {dimension_semantics = [#tpu.dimension_semantics<parallel>], iteration_bounds = array<i64: 2>, scalar_prefetch = 0 : i64, scratch_operands = 0 : i64, tpu.core_type = #tpu.core_type<tc>, window_params = [{transform_indices = @transform_0, window_bounds = array<i64: 1, 16, 16, 16>}, {transform_indices = @transform_1, window_bounds = array<i64: 1, 16, 16, 16>}, {pipeline_mode = #tpu.pipeline_mode<synchronous>, transform_indices = @transform_2, window_bounds = array<i64: 1, 16>}, {pipeline_mode = #tpu.pipeline_mode<synchronous>, transform_indices = @transform_3, window_bounds = array<i64: 1, 16>}, {transform_indices = @transform_4, window_bounds = array<i64: 1, 16, 16, 16>}]} {
    %c0 = arith.constant 0 : index
    %c0_0 = arith.constant 0 : index
    %0 = vector.load %arg3[%c0, %c0_0] : memref<1x16xf32, #tpu.memory_space<vmem>>, vector<1x16xf32>
    %1 = vector.shape_cast %0 : vector<1x16xf32> to vector<1x1x1x16xf32>
    %c0_1 = arith.constant 0 : index
    %c0_2 = arith.constant 0 : index
    %2 = vector.load %arg4[%c0_1, %c0_2] : memref<1x16xf32, #tpu.memory_space<vmem>>, vector<1x16xf32>
    %3 = vector.shape_cast %2 : vector<1x16xf32> to vector<1x1x1x16xf32>
    %c0_3 = arith.constant 0 : index
    %c0_4 = arith.constant 0 : index
    %c0_5 = arith.constant 0 : index
    %c0_6 = arith.constant 0 : index
    %4 = vector.load %arg1[%c0_3, %c0_4, %c0_5, %c0_6] : memref<1x16x16x16xbf16, #tpu.memory_space<vmem>>, vector<1x16x16x16xbf16>
    %5 = arith.extf %4 : vector<1x16x16x16xbf16> to vector<1x16x16x16xf32>
    %6 = vector.broadcast %1 : vector<1x1x1x16xf32> to vector<1x16x16x16xf32>
    %7 = arith.mulf %5, %6 : vector<1x16x16x16xf32>
    %8 = vector.broadcast %3 : vector<1x1x1x16xf32> to vector<1x16x16x16xf32>
    %9 = arith.addf %7, %8 : vector<1x16x16x16xf32>
    %c0_7 = arith.constant 0 : index
    %c0_8 = arith.constant 0 : index
    %c0_9 = arith.constant 0 : index
    %c0_10 = arith.constant 0 : index
    %10 = vector.load %arg2[%c0_7, %c0_8, %c0_9, %c0_10] : memref<1x16x16x16xf32, #tpu.memory_space<vmem>>, vector<1x16x16x16xf32>
    %11 = arith.addf %9, %10 : vector<1x16x16x16xf32>
    %cst = arith.constant 0.000000e+00 : f32
    %12 = vector.broadcast %cst : f32 to vector<1x16x16x16xf32>
    %13 = arith.maximumf %11, %12 : vector<1x16x16x16xf32>
    %c0_11 = arith.constant 0 : index
    %c0_12 = arith.constant 0 : index
    %c0_13 = arith.constant 0 : index
    %c0_14 = arith.constant 0 : index
    %14 = vector.load %arg5[%c0_11, %c0_12, %c0_13, %c0_14] : memref<1x16x16x16xf32, #tpu.memory_space<vmem>>, vector<1x16x16x16xf32>
    tpu.vector_store %arg5[%c0_11, %c0_12, %c0_13, %c0_14], %13 {strides = array<i32>} : memref<1x16x16x16xf32, #tpu.memory_space<vmem>>, vector<1x16x16x16xf32>,
    return
  }
  func.func @transform_0(%arg0: i32) -> (i32, i32, i32, i32) {
    %c0_i32 = arith.constant 0 : i32
    %c0_i32_0 = arith.constant 0 : i32
    %c0_i32_1 = arith.constant 0 : i32
    %c0_i32_2 = arith.constant 0 : i32
    return %arg0, %c0_i32, %c0_i32_0, %c0_i32_1 : i32, i32, i32, i32
  }
  func.func @transform_1(%arg0: i32) -> (i32, i32, i32, i32) {
    %c0_i32 = arith.constant 0 : i32
    %c0_i32_0 = arith.constant 0 : i32
    %c0_i32_1 = arith.constant 0 : i32
    %c0_i32_2 = arith.constant 0 : i32
    return %arg0, %c0_i32, %c0_i32_0, %c0_i32_1 : i32, i32, i32, i32
  }
  func.func @transform_2(%arg0: i32) -> (i32, i32) {
    %c0_i32 = arith.constant 0 : i32
    %c0_i32_0 = arith.constant 0 : i32
    %c0_i32_1 = arith.constant 0 : i32
    return %c0_i32, %c0_i32_0 : i32, i32
  }
  func.func @transform_3(%arg0: i32) -> (i32, i32) {
    %c0_i32 = arith.constant 0 : i32
    %c0_i32_0 = arith.constant 0 : i32
    %c0_i32_1 = arith.constant 0 : i32
    return %c0_i32, %c0_i32_0 : i32, i32
  }
  func.func @transform_4(%arg0: i32) -> (i32, i32, i32, i32) {
    %c0_i32 = arith.constant 0 : i32
    %c0_i32_0 = arith.constant 0 : i32
    %c0_i32_1 = arith.constant 0 : i32
    %c0_i32_2 = arith.constant 0 : i32
    return %arg0, %c0_i32, %c0_i32_0, %c0_i32_1 : i32, i32, i32, i32
  }
}

</mosaic_0001>

<bundles_post_ra>
// kernel: bottleneck_forward.4
= control target key start
LH: loop header
LB: loop body
LE: loop exit
PB: predicated region body
PF: predicated region fallthrough
CT: control target
= control target key end

     0   :  { %9 = vsyncpa [#allocation3], 0  ;;  %s1935_s0 = inlined_call_operand.hbm [shape: f32[2,16,16,16], index: 0, kind: input, shape index: {}]   ;;  %s1936_s1 = inlined_call_operand.vmem [shape: bf16[16,4], index: 1, kind: input, shape index: {}]   ;;  %s1937_s2 = inlined_call_operand.vmem [shape: bf16[2,16,16,4], index: 2, kind: output, shape index: {0}]   ;;  %s1938_s3 = inlined_call_operand.vmem [shape: f32[2,1,8], index: 3, kind: output, shape index: {1}]  }
   0x1   :  { %11 = vsyncpa [#allocation3 + $0x1], 0  ;;  %s1355_s12 = smov 0   ;;  %s1357_s13 = smov 0  }
   0x2   :  { %s1359_s14 = smov 0   ;;  %s1361_s15 = smov 0  }
   0x3 LB: > { %s1374_s16 = sadd.s32 4294967295, %s1328_s15   ;;  %s1377_s17 = sadd.s32 1, %s1328_s15   ;;  %s1328_s15 = sphi %s1361_s15, %s1945_s15   ;;  %s1324_s14 = sphi %s1359_s14, %s1944_s14   ;;  %s1320_s13 = sphi %s1357_s13, %s1943_s13   ;;  %s1316_s12 = sphi %s1355_s12, %s1942_s12  }
   0x4   : > { %s21_s18 = ssub.s32 %s1328_s15, %s1377_s17  ;;  %s24_s19 = sadd.s32 1, %s1324_s14 }
   0x5   : > { %p22_p0 = scmp.eq.s32.totalorder %s21_s18, 0  ;;  %p31_p1 = scmp.ne.s32.totalorder %s1324_s14, %s1320_s13 }
   0x6   : > { %p32_p2 = scmp.eq.s32.totalorder %s1328_s15, 0  ;;  %p37_p3 = scmp.ne.s32.totalorder %s1320_s13, %s1316_s12 }
   0x7   : > { %s1387_s20 = scalar_select %p22_p0, %s1324_s14, %s24_s19  }
   0x8   : > { %p33_p4 = por %p32_p2, %p31_p1  ;;  %p38_p5 = scmp.eq.s32.totalorder %s1374_s16, 0 }
   0x9   : > { %p1146_p6 = scmp.lt.s32.totalorder %s1328_s15, 2  ;;  %s137_s22 = sand.u32 1, %s1324_s14  }
   0xa   : > { %p1391_p7 = por %p38_p5, %p37_p3  ;;  %s975_s23 = sshll.u32 %s137_s22, 8 }
   0xb   : > { %s1033_s24 = sshll.u32 %s1328_s15, 12  ;;  %s141_s28 = scalar_lea.vmem [#allocation2], %s975_s23 }
   0xc   : > { %s1400_s27 = scalar_lea.hbm %s1935_s0, %s1033_s24  ;;  %s148_s29 = sshll.u32 %s141_s28, 4  ;;  %s1402_s29 = int_to_ptr.vmem [resolvable:$true] %s148_s29 }
   0xd   : > { %p1404_p8 = pnand %p1146_p6, %p33_p4  ;;  %s1409_s4 = scalar_lea.sflag [#allocation3], %s137_s22 }
   0xe   : > { %s1264_s5 = scalar_lea.hbm %s1400_s27, 4096  ;;  %s1269_s8 = scalar_lea.hbm %s1935_s0, 8192 }
   0xf   : > { %p1265_p10 = scmp.ne.s32.totalorder %s1400_s27, %s1264_s5  ;;  %p1266_p11 = pneg %p1404_p8 }
  0x10   : > { %p1270_p0 = scmp.lt.u32.totalorder %s1400_s27, %s1935_s0  ;;  %p1271_p1 = scmp.lt.u32.totalorder %s1269_s8, %s1264_s5 }
  0x11   : > { %p1267_p12 = pnand %p1266_p11, %p1265_p10  ;;  %p1273_p3 = scmp.lt.u32.totalorder %s1264_s5, %s1400_s27 }
  0x12   : > { %p1272_p2 = por %p1271_p1, %p1270_p0 }
  0x13   : > { %p1268_p13 = pneg %p1267_p12 }
  0x14   : > { %p1274_p4 = por %p1273_p3, %p1272_p2 }
  0x16   : > { %p1275_p5 = pnand %p1274_p4, %p1268_p13 }
  0x18   : > { %1278 = shalt.err (!%p1275_p5)
}
  0x19   : > { %s1279_s11 = scalar_lea.vmem %s1402_s29, 4096  ;;  %s1330_s12 = smov [#allocation2]  }
  0x1a   : > { %p1280_p6 = scmp.ne.s32.totalorder %s1402_s29, %s1279_s11  ;;  %s1284_s18 = sshll.u32 %s1330_s12, 4  ;;  %s1285_s18 = int_to_ptr.vmem [resolvable:$false] %s1284_s18 }
  0x1b   : > { %s1286_s19 = scalar_lea.vmem %s1285_s18, 8192  ;;  %p1287_p9 = scmp.lt.s32.totalorder %s1402_s29, %s1285_s18 }
  0x1c   : > { %p1282_p10 = pnand %p1280_p6, %p1266_p11  ;;  %p1288_p0 = scmp.lt.s32.totalorder %s1286_s19, %s1279_s11 }
  0x1e   : > { %p1283_p12 = pneg %p1282_p10  ;;  %p1289_p1 = por %p1288_p0, %p1287_p9 }
  0x20   : > { %p1290_p2 = pnand %p1289_p1, %p1283_p12 }
  0x22   : > { %1293 = shalt.err (!%p1290_p2)
}
  0x23   : > { %s1331_s22 = smov 128   ;;  %s1332_s23 = smov 8  }
  0x24   : > { %1145 = dma.hbm_to_vmem [thread:$0]  (!%p1404_p8), %s1400_s27, 4096, %s1402_s29, %s1409_s4, %s1331_s22, %s1331_s22, %s1332_s23  }
  0x25   : > { %p156_p11 = scmp.lt.s32.totalorder %s1328_s15, 3  ;;  %p1941_p13 = scmp.ge.s32.totalorder %s1328_s15, 1 }
  0x27   : > { %p157_p3 = pnand %p1941_p13, %p156_p11 }
  0x28   : > { %s162_s24 = sand.u32 (!%p157_p3), 1, %s1320_s13  }
  0x29   : > { %160 = sbr.rel (%p157_p3) target bundleno = 676 (0x2a4), region = 28  ;;  %s979_s25 = sshll.u32 (!%p157_p3), %s162_s24, 8 }
  0x2a   : > { %s163_s26 = scalar_lea.sflag (!%p157_p3), [#allocation3], %s162_s24  ;;  %s1441_s28 = scalar_lea.vmem (!%p157_p3), [#allocation2], %s979_s25 }
  0x30   : > { %1311 = dma.done.wait (%p1391_p7), %s163_s26, 4096  }
  0x31   : > { %1313 = vsyncadd (%p1391_p7), %s163_s26, 4294963200  ;;  %v1263_v0 = vld [vmem:[%s1936_s1] sm:$0xff]   ;;  %v203_v2 = vld [vmem:[%s1441_s28 + $0x8] sm:$0xff]  ;;  %vm258_vm0 = vcmask 130048   ;;  %p192_p7 = scmp.lt.s32.totalorder %s1374_s16, 1  ;;  %vm847_vm1 = vcmask 27648  }
  0x32   : > { %v202_v1 = vld [vmem:[%s1441_s28] sm:$0xff]  ;;  %v204_v3 = vld [vmem:[%s1441_s28 + $0x10] sm:$0xff]  ;;  %1106 = vmatprep.subr.bf16.mxu0 %v1263_v0  ;;  %v205_v5 = vld [vmem:[%s1441_s28 + $0x18] sm:$0xff]  ;;  %s1333_s30 = smov 4   ;;  %vm628_vm2 = vcmask 31744   ;;  %vm717_vm3 = vcmask 57344  }
  0x33   : > { %v234_v4 = vpack.c.bf16 %v203_v2, %v202_v1  ;;  %v206_v6 = vld [vmem:[%s1441_s28 + $0x20] sm:$0xff]  ;;  %v207_v7 = vld [vmem:[%s1441_s28 + $0x28] sm:$0xff]  ;;  %1107 = vmatpush3.bf16.msra.mxu0 %v1263_v0  ;;  %v235_v8 = vpack.c.bf16 %v205_v5, %v204_v3  ;;  %v208_v10 = vld [vmem:[%s1441_s28 + $0x30] sm:$0xff]  ;;  %s1947_s16 = smov (!%p192_p7, %s1374_s16), 1 }
  0x34   : > { %v236_v9 = vpack.c.bf16 %v207_v7, %v206_v6  ;;  %v209_v11 = vld [vmem:[%s1441_s28 + $0x38] sm:$0xff]  ;;  %v210_v12 = vld [vmem:[%s1441_s28 + $0x40] sm:$0xff]  ;;  %v211_v13 = vld [vmem:[%s1441_s28 + $0x48] sm:$0xff]  ;;  %s1034_s15 = sshll.u32 %s1947_s16, 7  ;;  %s199_s8 = scalar_lea.vmem %s1938_s3, %s1947_s16 }
  0x35   : > { %1108 = vmatprep.mubr.msk.bf16.mxu0 %vm258_vm0, %v234_v4  ;;  %v237_v14 = vpack.c.bf16 %v209_v11, %v208_v10  ;;  %v238_v15 = vpack.c.bf16 %v211_v13, %v210_v12  ;;  %v212_v16 = vld [vmem:[%s1441_s28 + $0x50] sm:$0xff]  ;;  %v213_v17 = vld [vmem:[%s1441_s28 + $0x58] sm:$0xff]  ;;  %v214_v18 = vld [vmem:[%s1441_s28 + $0x60] sm:$0xff]  ;;  %s1506_s29 = scalar_lea.vmem %s1937_s2, %s1034_s15 }
  0x36   : > { %1109 = vmatmul.mubr.msk.bf16.vlgmr.msra.gmra.mrb[0].mxu0 %vm258_vm0, %v235_v8  ;;  %v215_v19 = vld [vmem:[%s1441_s28 + $0x68] sm:$0xff]  ;;  %v239_v20 = vpack.c.bf16 %v213_v17, %v212_v16  ;;  %v216_v22 = vld [vmem:[%s1441_s28 + $0x70] sm:$0xff]  ;;  %v217_v23 = vld [vmem:[%s1441_s28 + $0x78] sm:$0xff] }
  0x37   : > { %1112 = vmatprep.mubr.msk.bf16.mxu0 %vm258_vm0, %v236_v9  ;;  %v240_v21 = vpack.c.bf16 %v215_v19, %v214_v18  ;;  %v218_v24 = vld [vmem:[%s1441_s28 + $0x80] sm:$0xff]  ;;  %v219_v25 = vld [vmem:[%s1441_s28 + $0x88] sm:$0xff]  ;;  %v241_v26 = vpack.c.bf16 %v217_v23, %v216_v22  ;;  %v220_v28 = vld [vmem:[%s1441_s28 + $0x90] sm:$0xff] }
  0x38   : > { %v242_v27 = vpack.c.bf16 %v219_v25, %v218_v24  ;;  %v221_v29 = vld [vmem:[%s1441_s28 + $0x98] sm:$0xff]  ;;  %v222_v30 = vld [vmem:[%s1441_s28 + $0xa0] sm:$0xff]  ;;  %v223_v31 = vld [vmem:[%s1441_s28 + $0xa8] sm:$0xff] }
  0x39   : > { %v243_v32 = vpack.c.bf16 %v221_v29, %v220_v28  ;;  %v244_v33 = vpack.c.bf16 %v223_v31, %v222_v30  ;;  %v224_v34 = vld [vmem:[%s1441_s28 + $0xb0] sm:$0xff]  ;;  %v225_v35 = vld [vmem:[%s1441_s28 + $0xb8] sm:$0xff]  ;;  %v226_v36 = vld [vmem:[%s1441_s28 + $0xc0] sm:$0xff] }
  0x3a   : > { %v227_v37 = vld [vmem:[%s1441_s28 + $0xc8] sm:$0xff]  ;;  %v245_v38 = vpack.c.bf16 %v225_v35, %v224_v34  ;;  %v228_v40 = vld [vmem:[%s1441_s28 + $0xd0] sm:$0xff]  ;;  %v229_v41 = vld [vmem:[%s1441_s28 + $0xd8] sm:$0xff] }
  0x3b   : > { %v246_v39 = vpack.c.bf16 %v227_v37, %v226_v36  ;;  %v230_v42 = vld [vmem:[%s1441_s28 + $0xe0] sm:$0xff]  ;;  %v231_v43 = vld [vmem:[%s1441_s28 + $0xe8] sm:$0xff]  ;;  %v247_v44 = vpack.c.bf16 %v229_v41, %v228_v40  ;;  %v232_v46 = vld [vmem:[%s1441_s28 + $0xf0] sm:$0xff] }
  0x3c   : > { %v248_v45 = vpack.c.bf16 %v231_v43, %v230_v42  ;;  %v233_v47 = vld [vmem:[%s1441_s28 + $0xf8] sm:$0xff] }
  0x3d   : > { %v249_v48 = vpack.c.bf16 %v233_v47, %v232_v46 }
  0x3e   : > { %1113 = vmatmul.mubr.msk.bf16.gmra.mrb[4].mxu0 %vm258_vm0, %v237_v14 }
  0x3f   : > { %1116 = vmatprep.mubr.msk.bf16.mxu0 %vm258_vm0, %v238_v15 }
  0x46   : > { %1117 = vmatmul.mubr.msk.bf16.gmra.mrb[8].mxu0 %vm258_vm0, %v239_v20 }
  0x47   : > { %1120 = vmatprep.mubr.msk.bf16.mxu0 %vm258_vm0, %v240_v21 }
  0x4e   : > { %1121 = vmatmul.mubr.msk.bf16.gmra.mrb[12].mxu0 %vm258_vm0, %v241_v26 }
  0x4f   : > { %1124 = vmatprep.mubr.msk.bf16.mxu0 %vm258_vm0, %v242_v27 }
  0x56   : > { %1125 = vmatmul.mubr.msk.bf16.gmra.mrb[16].mxu0 %vm258_vm0, %v243_v32 }
  0x57   : > { %1128 = vmatprep.mubr.msk.bf16.mxu0 %vm258_vm0, %v244_v33 }
  0x5e   : > { %1129 = vmatmul.mubr.msk.bf16.gmra.mrb[20].mxu0 %vm258_vm0, %v245_v38 }
  0x5f   : > { %1132 = vmatprep.mubr.msk.bf16.mxu0 %vm258_vm0, %v246_v39 }
  0x66   : > { %1133 = vmatmul.mubr.msk.bf16.gmra.mrb[24].mxu0 %vm258_vm0, %v247_v44 }
  0x67   : > { %1136 = vmatprep.mubr.msk.bf16.mxu0 %vm258_vm0, %v248_v45 }
  0x6e   : > { %1137 = vmatmul.mubr.msk.bf16.gmra.mrb[28].mxu0 %vm258_vm0, %v249_v48 }
 0x109   : > { %v1508_v49 = vpop.f32.mrb[0].mxu0 }
 0x10a   : > { %v1037_v50 = vpack.c.bf16 %v1508_v49, %v1508_v49  ;;  %v1512_v51 = vpop.f32.mrb[1].mxu0  ;;  %v1520_v54 = vmul.f32 %v1508_v49, %v1508_v49 }
 0x10b   : > { %v1035_v52 = vpack.c.bf16 %v1512_v51, %v1512_v51  ;;  %v1516_v53 = vpop.f32.mrb[2].mxu0  ;;  %v1534_v58 = vmul.f32 %v1512_v51, %v1512_v51 }
 0x10c   : > { %850 = vst.msk [vmem:[%s1506_s29 + $0x8] sm:$0xf] %vm847_vm1, %v1037_v50  ;;  %v1526_v55 = vmul.f32 %v1516_v53, %v1516_v53  ;;  %v1038_v56 = vpack.c.bf16 %v1516_v53, %v1516_v53  ;;  %v1530_v57 = vpop.f32.mrb[3].mxu0 }
 0x10d   : > { %848 = vst.msk [vmem:[%s1506_s29] sm:$0xf] %vm847_vm1, %v1035_v52  ;;  %v1540_v59 = vmul.f32 %v1530_v57, %v1530_v57  ;;  %v1036_v60 = vpack.c.bf16 %v1530_v57, %v1530_v57 }
 0x10e   : > { %851 = vst.msk [vmem:[%s1506_s29 + $0xc] sm:$0xf] %vm847_vm1, %v1038_v56  ;;  %v1198_v61 = vpack.i.bf16 %v1526_v55, %v1520_v54 }
 0x10f   : > { %849 = vst.msk [vmem:[%s1506_s29 + $0x4] sm:$0xf] %vm847_vm1, %v1036_v60  ;;  %v1188_v62 = vpack.i.bf16 %v1540_v59, %v1534_v58 }
 0x111   : > { %v1552_v63 = vpop.f32.mrb[4].mxu0 }
 0x112   : > { %v1041_v0 = vpack.c.bf16 %v1552_v63, %v1552_v63  ;;  %v1556_v1 = vpop.f32.mrb[5].mxu0  ;;  %v1564_v4 = vmul.f32 %v1552_v63, %v1552_v63 }
 0x113   : > { %v1039_v2 = vpack.c.bf16 %v1556_v1, %v1556_v1  ;;  %v1560_v3 = vpop.f32.mrb[6].mxu0  ;;  %v1578_v8 = vmul.f32 %v1556_v1, %v1556_v1 }
 0x114   : > { %854 = vst.msk [vmem:[%s1506_s29 + $0x18] sm:$0xf] %vm847_vm1, %v1041_v0  ;;  %v1570_v5 = vmul.f32 %v1560_v3, %v1560_v3  ;;  %v1042_v6 = vpack.c.bf16 %v1560_v3, %v1560_v3  ;;  %v1574_v7 = vpop.f32.mrb[7].mxu0 }
 0x115   : > { %852 = vst.msk [vmem:[%s1506_s29 + $0x10] sm:$0xf] %vm847_vm1, %v1039_v2  ;;  %v1584_v9 = vmul.f32 %v1574_v7, %v1574_v7  ;;  %v1040_v10 = vpack.c.bf16 %v1574_v7, %v1574_v7 }
 0x116   : > { %855 = vst.msk [vmem:[%s1506_s29 + $0x1c] sm:$0xf] %vm847_vm1, %v1042_v6  ;;  %v1218_v11 = vpack.i.bf16 %v1570_v5, %v1564_v4 }
 0x117   : > { %853 = vst.msk [vmem:[%s1506_s29 + $0x14] sm:$0xf] %vm847_vm1, %v1040_v10  ;;  %v1203_v12 = vpack.i.bf16 %v1584_v9, %v1578_v8 }
 0x119   : > { %v1596_v13 = vpop.f32.mrb[8].mxu0 }
 0x11a   : > { %v1045_v14 = vpack.c.bf16 %v1596_v13, %v1596_v13  ;;  %v1600_v15 = vpop.f32.mrb[9].mxu0  ;;  %v1608_v18 = vmul.f32 %v1596_v13, %v1596_v13 }
 0x11b   : > { %v1043_v16 = vpack.c.bf16 %v1600_v15, %v1600_v15  ;;  %v1604_v17 = vpop.f32.mrb[10].mxu0  ;;  %v1622_v22 = vmul.f32 %v1600_v15, %v1600_v15 }
 0x11c   : > { %858 = vst.msk [vmem:[%s1506_s29 + $0x28] sm:$0xf] %vm847_vm1, %v1045_v14  ;;  %v1614_v19 = vmul.f32 %v1604_v17, %v1604_v17  ;;  %v1046_v20 = vpack.c.bf16 %v1604_v17, %v1604_v17  ;;  %v1618_v21 = vpop.f32.mrb[11].mxu0 }
 0x11d   : > { %856 = vst.msk [vmem:[%s1506_s29 + $0x20] sm:$0xf] %vm847_vm1, %v1043_v16  ;;  %v1628_v23 = vmul.f32 %v1618_v21, %v1618_v21  ;;  %v1044_v24 = vpack.c.bf16 %v1618_v21, %v1618_v21 }
 0x11e   : > { %859 = vst.msk [vmem:[%s1506_s29 + $0x2c] sm:$0xf] %vm847_vm1, %v1046_v20  ;;  %v1238_v25 = vpack.i.bf16 %v1614_v19, %v1608_v18  ;;  %v1334_v18 = vmov 1065369472  }
 0x11f   : > { %857 = vst.msk [vmem:[%s1506_s29 + $0x24] sm:$0xf] %vm847_vm1, %v1044_v24  ;;  %v1223_v26 = vpack.i.bf16 %v1628_v23, %v1622_v22  ;;  %709 = vmatprep.mubr.bf16.mxu1 %v1334_v18 }
 0x121   : > { %v1640_v27 = vpop.f32.mrb[12].mxu0 }
 0x122   : > { %v1049_v28 = vpack.c.bf16 %v1640_v27, %v1640_v27  ;;  %v1644_v29 = vpop.f32.mrb[13].mxu0  ;;  %v1652_v32 = vmul.f32 %v1640_v27, %v1640_v27 }
 0x123   : > { %v1047_v30 = vpack.c.bf16 %v1644_v29, %v1644_v29  ;;  %v1648_v31 = vpop.f32.mrb[14].mxu0  ;;  %v1666_v36 = vmul.f32 %v1644_v29, %v1644_v29 }
 0x124   : > { %862 = vst.msk [vmem:[%s1506_s29 + $0x38] sm:$0xf] %vm847_vm1, %v1049_v28  ;;  %v1658_v33 = vmul.f32 %v1648_v31, %v1648_v31  ;;  %v1050_v34 = vpack.c.bf16 %v1648_v31, %v1648_v31  ;;  %v1662_v35 = vpop.f32.mrb[15].mxu0 }
 0x125   : > { %860 = vst.msk [vmem:[%s1506_s29 + $0x30] sm:$0xf] %vm847_vm1, %v1047_v30  ;;  %v1672_v37 = vmul.f32 %v1662_v35, %v1662_v35  ;;  %v1048_v38 = vpack.c.bf16 %v1662_v35, %v1662_v35 }
 0x126   : > { %863 = vst.msk [vmem:[%s1506_s29 + $0x3c] sm:$0xf] %vm847_vm1, %v1050_v34  ;;  %v1258_v39 = vpack.i.bf16 %v1658_v33, %v1652_v32 }
 0x127   : > { %861 = vst.msk [vmem:[%s1506_s29 + $0x34] sm:$0xf] %vm847_vm1, %v1048_v38  ;;  %v1243_v40 = vpack.i.bf16 %v1672_v37, %v1666_v36 }
 0x129   : > { %v1684_v41 = vpop.f32.mrb[16].mxu0 }
 0x12a   : > { %v1053_v42 = vpack.c.bf16 %v1684_v41, %v1684_v41  ;;  %v1688_v43 = vpop.f32.mrb[17].mxu0  ;;  %v486_v48 = vmul.f32 %v1684_v41, %v1684_v41 }
 0x12b   : > { %v1051_v44 = vpack.c.bf16 %v1688_v43, %v1688_v43  ;;  %v1692_v45 = vpop.f32.mrb[18].mxu0  ;;  %v484_v56 = vmul.f32 %v1688_v43, %v1688_v43 }
 0x12c   : > { %866 = vst.msk [vmem:[%s1506_s29 + $0x48] sm:$0xf] %vm847_vm1, %v1053_v42  ;;  %v1054_v46 = vpack.c.bf16 %v1692_v45, %v1692_v45  ;;  %v1698_v47 = vpop.f32.mrb[19].mxu0  ;;  %v487_v50 = vmul.f32 %v1692_v45, %v1692_v45 }
 0x12d   : > { %864 = vst.msk [vmem:[%s1506_s29 + $0x40] sm:$0xf] %vm847_vm1, %v1051_v44  ;;  %v1052_v52 = vpack.c.bf16 %v1698_v47, %v1698_v47  ;;  %v485_v60 = vmul.f32 %v1698_v47, %v1698_v47 }
 0x12e   : > { %867 = vst.msk [vmem:[%s1506_s29 + $0x4c] sm:$0xf] %vm847_vm1, %v1054_v46  ;;  %v1193_v0 = vpack.i.bf16 %v487_v50, %v486_v48 }
 0x12f   : > { %865 = vst.msk [vmem:[%s1506_s29 + $0x44] sm:$0xf] %vm847_vm1, %v1052_v52  ;;  %v1183_v2 = vpack.i.bf16 %v485_v60, %v484_v56 }
 0x130   : > { %1194 = vrot.lane.b32.xlu1 %v1193_v0, %s1333_s30 }
 0x131   : > { %1184 = vrot.lane.b32.xlu0 %v1183_v2, %s1333_s30  ;;  %v1718_v6 = vpop.f32.mrb[20].mxu0 }
 0x132   : > { %v490_v10 = vmul.f32 %v1718_v6, %v1718_v6  ;;  %v1057_v14 = vpack.c.bf16 %v1718_v6, %v1718_v6  ;;  %v1724_v16 = vpop.f32.mrb[21].mxu0 }
 0x133   : > { %v488_v20 = vmul.f32 %v1724_v16, %v1724_v16  ;;  %v1055_v24 = vpack.c.bf16 %v1724_v16, %v1724_v16  ;;  %v1730_v28 = vpop.f32.mrb[22].mxu0 }
 0x134   : > { %870 = vst.msk [vmem:[%s1506_s29 + $0x58] sm:$0xf] %vm847_vm1, %v1057_v14  ;;  %v491_v30 = vmul.f32 %v1730_v28, %v1730_v28  ;;  %v1058_v34 = vpack.c.bf16 %v1730_v28, %v1730_v28  ;;  %1199 = vrot.lane.b32.xlu1 %v1198_v61, %s1333_s30  ;;  %v1742_v38 = vpop.f32.mrb[23].mxu0 }
 0x135   : > { %868 = vst.msk [vmem:[%s1506_s29 + $0x50] sm:$0xf] %vm847_vm1, %v1055_v24  ;;  %v489_v42 = vmul.f32 %v1742_v38, %v1742_v38  ;;  %v1056_v44 = vpack.c.bf16 %v1742_v38, %v1742_v38  ;;  %1189 = vrot.lane.b32.xlu0 %v1188_v62, %s1333_s30 }
 0x136   : > { %871 = vst.msk [vmem:[%s1506_s29 + $0x5c] sm:$0xf] %vm847_vm1, %v1058_v34  ;;  %v1213_v54 = vpack.i.bf16 %v491_v30, %v490_v10 }
 0x137   : > { %869 = vst.msk [vmem:[%s1506_s29 + $0x54] sm:$0xf] %vm847_vm1, %v1056_v44  ;;  %v1208_v55 = vpack.i.bf16 %v489_v42, %v488_v20 }
 0x138   : > { %1204 = vrot.lane.b32.xlu1 %v1203_v12, %s1333_s30 }
 0x139   : > { %1209 = vrot.lane.b32.xlu0 %v1208_v55, %s1333_s30  ;;  %v1763_v61 = vpop.f32.mrb[24].mxu0 }
 0x13a   : > { %v494_v58 = vmul.f32 %v1763_v61, %v1763_v61  ;;  %v1061_v59 = vpack.c.bf16 %v1763_v61, %v1763_v61  ;;  %v1769_v62 = vpop.f32.mrb[25].mxu0 }
 0x13b   : > { %v492_v46 = vmul.f32 %v1769_v62, %v1769_v62  ;;  %v1059_v8 = vpack.c.bf16 %v1769_v62, %v1769_v62  ;;  %v1775_v9 = vpop.f32.mrb[26].mxu0 }
 0x13c   : > { %874 = vst.msk [vmem:[%s1506_s29 + $0x68] sm:$0xf] %vm847_vm1, %v1061_v59  ;;  %v495_v12 = vmul.f32 %v1775_v9, %v1775_v9  ;;  %v1062_v48 = vpack.c.bf16 %v1775_v9, %v1775_v9  ;;  %1219 = vrot.lane.b32.xlu1 %v1218_v11, %s1333_s30  ;;  %v1787_v50 = vpop.f32.mrb[27].mxu0 }
 0x13d   : > { %872 = vst.msk [vmem:[%s1506_s29 + $0x60] sm:$0xf] %vm847_vm1, %v1059_v8  ;;  %v493_v52 = vmul.f32 %v1787_v50, %v1787_v50  ;;  %v1060_v56 = vpack.c.bf16 %v1787_v50, %v1787_v50  ;;  %1214 = vrot.lane.b32.xlu0 %v1213_v54, %s1333_s30 }
 0x13e   : > { %875 = vst.msk [vmem:[%s1506_s29 + $0x6c] sm:$0xf] %vm847_vm1, %v1062_v48  ;;  %v1233_v60 = vpack.i.bf16 %v495_v12, %v494_v58 }
 0x13f   : > { %873 = vst.msk [vmem:[%s1506_s29 + $0x64] sm:$0xf] %vm847_vm1, %v1060_v56  ;;  %v1228_v4 = vpack.i.bf16 %v493_v52, %v492_v46 }
 0x140   : > { %1224 = vrot.lane.b32.xlu1 %v1223_v26, %s1333_s30 }
 0x141   : > { %1229 = vrot.lane.b32.xlu0 %v1228_v4, %s1333_s30  ;;  %v1805_v5 = vpop.f32.mrb[28].mxu0 }
 0x142   : > { %v498_v11 = vmul.f32 %v1805_v5, %v1805_v5  ;;  %v1065_v0 = vpack.c.bf16 %v1805_v5, %v1805_v5  ;;  %v1811_v2 = vpop.f32.mrb[29].mxu0 }
 0x143   : > { %v496_v10 = vmul.f32 %v1811_v2, %v1811_v2  ;;  %v1063_v22 = vpack.c.bf16 %v1811_v2, %v1811_v2  ;;  %v1817_v23 = vpop.f32.mrb[30].mxu0 }
 0x144   : > { %878 = vst.msk [vmem:[%s1506_s29 + $0x78] sm:$0xf] %vm847_vm1, %v1065_v0  ;;  %v499_v26 = vmul.f32 %v1817_v23, %v1817_v23  ;;  %v1066_v14 = vpack.c.bf16 %v1817_v23, %v1817_v23  ;;  %1239 = vrot.lane.b32.xlu1 %v1238_v25, %s1333_s30  ;;  %v1829_v20 = vpop.f32.mrb[31].mxu0 }
 0x145   : > { %876 = vst.msk [vmem:[%s1506_s29 + $0x70] sm:$0xf] %vm847_vm1, %v1063_v22  ;;  %v497_v24 = vmul.f32 %v1829_v20, %v1829_v20  ;;  %v1064_v30 = vpack.c.bf16 %v1829_v20, %v1829_v20  ;;  %1234 = vrot.lane.b32.xlu0 %v1233_v60, %s1333_s30 }
 0x146   : > { %879 = vst.msk [vmem:[%s1506_s29 + $0x7c] sm:$0xf] %vm847_vm1, %v1066_v14  ;;  %v1253_v34 = vpack.i.bf16 %v499_v26, %v498_v11 }
 0x147   : > { %877 = vst.msk [vmem:[%s1506_s29 + $0x74] sm:$0xf] %vm847_vm1, %v1064_v30  ;;  %v1248_v42 = vpack.i.bf16 %v497_v24, %v496_v10 }
 0x148   : > { %1244 = vrot.lane.b32.xlu1 %v1243_v40, %s1333_s30 }
 0x149   : > { %1249 = vrot.lane.b32.xlu0 %v1248_v42, %s1333_s30 }
 0x14c   : > { %1259 = vrot.lane.b32.xlu1 %v1258_v39, %s1333_s30 }
 0x14d   : > { %1254 = vrot.lane.b32.xlu0 %v1253_v34, %s1333_s30 }
 0x1a2   : > { %v1195_v19 = vpop.permute.xlu1 %1194 }
 0x1a3   : > { %v1197_v25 = vunpack.i.h.bf16 %v1195_v19  ;;  %v1196_v44 = vunpack.i.l.bf16 %v1195_v19  ;;  %v1185_v54 = vpop.permute.xlu0 %1184 }
 0x1a4   : > { %v1187_v55 = vunpack.i.h.bf16 %v1185_v54  ;;  %v1186_v36 = vunpack.i.l.bf16 %v1185_v54 }
 0x1a5   : > { %v647_v37 = vsel %vm628_vm2, %v1684_v41, %v1196_v44  ;;  %v648_v40 = vsel %vm628_vm2, %v1692_v45, %v1197_v25 }
 0x1a6   : > { %v1200_v58 = vpop.permute.xlu1 %1199  ;;  %v645_v32 = vsel %vm628_vm2, %v1688_v43, %v1186_v36  ;;  %v646_v33 = vsel %vm628_vm2, %v1698_v47, %v1187_v55  ;;  %v670_v39 = vpack.c.bf16 %v648_v40, %v647_v37 }
 0x1a7   : > { %v1202_v59 = vunpack.i.h.bf16 %v1200_v58  ;;  %v1201_v46 = vunpack.i.l.bf16 %v1200_v58  ;;  %v1190_v8 = vpop.permute.xlu0 %1189  ;;  %v669_v12 = vpack.c.bf16 %v646_v33, %v645_v32 }
 0x1a8   : > { %v1192_v48 = vunpack.i.h.bf16 %v1190_v8  ;;  %v1191_v52 = vunpack.i.l.bf16 %v1190_v8 }
 0x1a9   : > { %1084 = vmatprep.subr.bf16.mxu1 %v669_v12  ;;  %v631_v41 = vsel %vm628_vm2, %v1508_v49, %v1201_v46  ;;  %v632_v45 = vsel %vm628_vm2, %v1516_v53, %v1202_v59 }
 0x1aa   : > { %v1205_v56 = vpop.permute.xlu1 %1204  ;;  %v629_v43 = vsel %vm628_vm2, %v1512_v51, %v1191_v52  ;;  %v630_v47 = vsel %vm628_vm2, %v1530_v57, %v1192_v48  ;;  %v662_v60 = vpack.c.bf16 %v632_v45, %v631_v41 }
 0x1ab   : > { %v1207_v4 = vunpack.i.h.bf16 %v1205_v56  ;;  %v1206_v11 = vunpack.i.l.bf16 %v1205_v56  ;;  %v1210_v0 = vpop.permute.xlu0 %1209  ;;  %v661_v10 = vpack.c.bf16 %v630_v47, %v629_v43 }
 0x1ac   : > { %v1212_v22 = vunpack.i.h.bf16 %v1210_v0  ;;  %v1211_v26 = vunpack.i.l.bf16 %v1210_v0 }
 0x1ad   : > { %1085 = vmatpush3.bf16.msra.mxu1 %v661_v10  ;;  %v633_v49 = vsel %vm628_vm2, %v1556_v1, %v1206_v11  ;;  %v634_v53 = vsel %vm628_vm2, %v1574_v7, %v1207_v4 }
 0x1ae   : > { %v1220_v14 = vpop.permute.xlu1 %1219  ;;  %1086 = vmatprep.subr.bf16.mxu1 %v670_v39  ;;  %v649_v51 = vsel %vm628_vm2, %v1724_v16, %v1211_v26  ;;  %v650_v57 = vsel %vm628_vm2, %v1742_v38, %v1212_v22  ;;  %v663_v24 = vpack.c.bf16 %v634_v53, %v633_v49 }
 0x1af   : > { %v1222_v30 = vunpack.i.h.bf16 %v1220_v14  ;;  %v1221_v34 = vunpack.i.l.bf16 %v1220_v14  ;;  %v1215_v42 = vpop.permute.xlu0 %1214  ;;  %v671_v19 = vpack.c.bf16 %v650_v57, %v649_v51 }
 0x1b0   : > { %v1217_v25 = vunpack.i.h.bf16 %v1215_v42  ;;  %v1216_v44 = vunpack.i.l.bf16 %v1215_v42 }
 0x1b1   : > { %1087 = vmatpush3.bf16.msra.mxu1 %v662_v60  ;;  %v635_v1 = vsel %vm628_vm2, %v1552_v63, %v1221_v34  ;;  %v636_v7 = vsel %vm628_vm2, %v1560_v3, %v1222_v30 }
 0x1b2   : > { %v1225_v54 = vpop.permute.xlu1 %1224  ;;  %1088 = vmatprep.subr.bf16.mxu1 %v671_v19  ;;  %v651_v16 = vsel %vm628_vm2, %v1718_v6, %v1216_v44  ;;  %v652_v38 = vsel %vm628_vm2, %v1730_v28, %v1217_v25  ;;  %v664_v55 = vpack.c.bf16 %v636_v7, %v635_v1 }
 0x1b3   : > { %v1227_v36 = vunpack.i.h.bf16 %v1225_v54  ;;  %v1226_v37 = vunpack.i.l.bf16 %v1225_v54  ;;  %v1230_v40 = vpop.permute.xlu0 %1229  ;;  %v672_v58 = vpack.c.bf16 %v652_v38, %v651_v16 }
 0x1b4   : > { %v1232_v32 = vunpack.i.h.bf16 %v1230_v40  ;;  %v1231_v33 = vunpack.i.l.bf16 %v1230_v40 }
 0x1b5   : > { %1089 = vmatpush3.bf16.msra.mxu1 %v663_v24  ;;  %v637_v63 = vsel %vm628_vm2, %v1600_v15, %v1226_v37  ;;  %v638_v3 = vsel %vm628_vm2, %v1618_v21, %v1227_v36 }
 0x1b6   : > { %v1240_v39 = vpop.permute.xlu1 %1239  ;;  %1090 = vmatprep.subr.bf16.mxu1 %v672_v58  ;;  %v653_v6 = vsel %vm628_vm2, %v1769_v62, %v1231_v33  ;;  %v654_v28 = vsel %vm628_vm2, %v1787_v50, %v1232_v32  ;;  %v665_v59 = vpack.c.bf16 %v638_v3, %v637_v63 }
 0x1b7   : > { %v1242_v46 = vunpack.i.h.bf16 %v1240_v39  ;;  %v1241_v8 = vunpack.i.l.bf16 %v1240_v39  ;;  %v1235_v12 = vpop.permute.xlu0 %1234  ;;  %v673_v48 = vpack.c.bf16 %v654_v28, %v653_v6 }
 0x1b8   : > { %v1237_v52 = vunpack.i.h.bf16 %v1235_v12  ;;  %v1236_v41 = vunpack.i.l.bf16 %v1235_v12 }
 0x1b9   : > { %1091 = vmatpush3.bf16.msra.mxu1 %v664_v55  ;;  %v639_v15 = vsel %vm628_vm2, %v1596_v13, %v1241_v8  ;;  %v640_v21 = vsel %vm628_vm2, %v1604_v17, %v1242_v46 }
 0x1ba   : > { %v1245_v45 = vpop.permute.xlu1 %1244  ;;  %1092 = vmatprep.subr.bf16.mxu1 %v673_v48  ;;  %v655_v62 = vsel %vm628_vm2, %v1763_v61, %v1236_v41  ;;  %v656_v50 = vsel %vm628_vm2, %v1775_v9, %v1237_v52  ;;  %v666_v56 = vpack.c.bf16 %v640_v21, %v639_v15 }
 0x1bb   : > { %v1247_v43 = vunpack.i.h.bf16 %v1245_v45  ;;  %v1246_v47 = vunpack.i.l.bf16 %v1245_v45  ;;  %v1250_v60 = vpop.permute.xlu0 %1249  ;;  %v674_v4 = vpack.c.bf16 %v656_v50, %v655_v62 }
 0x1bc   : > { %v1252_v11 = vunpack.i.h.bf16 %v1250_v60  ;;  %v1251_v0 = vunpack.i.l.bf16 %v1250_v60 }
 0x1bd   : > { %1093 = vmatpush3.bf16.msra.mxu1 %v665_v59  ;;  %v641_v13 = vsel %vm628_vm2, %v1644_v29, %v1246_v47  ;;  %v642_v17 = vsel %vm628_vm2, %v1662_v35, %v1247_v43 }
 0x1be   : > { %v1260_v10 = vpop.permute.xlu1 %1259  ;;  %1094 = vmatprep.subr.bf16.mxu1 %v674_v4  ;;  %v657_v61 = vsel %vm628_vm2, %v1811_v2, %v1251_v0  ;;  %v658_v9 = vsel %vm628_vm2, %v1829_v20, %v1252_v11  ;;  %v667_v22 = vpack.c.bf16 %v642_v17, %v641_v13 }
 0x1bf   : > { %v1262_v26 = vunpack.i.h.bf16 %v1260_v10  ;;  %v1261_v49 = vunpack.i.l.bf16 %v1260_v10  ;;  %v1255_v53 = vpop.permute.xlu0 %1254  ;;  %v675_v14 = vpack.c.bf16 %v658_v9, %v657_v61 }
 0x1c0   : > { %v1257_v51 = vunpack.i.h.bf16 %v1255_v53  ;;  %v1256_v57 = vunpack.i.l.bf16 %v1255_v53 }
 0x1c1   : > { %1095 = vmatpush3.bf16.msra.mxu1 %v666_v56  ;;  %v643_v29 = vsel %vm628_vm2, %v1640_v27, %v1261_v49  ;;  %v644_v35 = vsel %vm628_vm2, %v1648_v31, %v1262_v26 }
 0x1c2   : > { %1096 = vmatprep.subr.bf16.mxu1 %v675_v14  ;;  %v659_v2 = vsel %vm628_vm2, %v1805_v5, %v1256_v57  ;;  %v660_v20 = vsel %vm628_vm2, %v1817_v23, %v1257_v51  ;;  %v668_v24 = vpack.c.bf16 %v644_v35, %v643_v29 }
 0x1c3   : > { %v676_v30 = vpack.c.bf16 %v660_v20, %v659_v2 }
 0x1c5   : > { %1097 = vmatpush3.bf16.msra.mxu1 %v667_v22 }
 0x1c6   : > { %1098 = vmatprep.subr.bf16.mxu1 %v676_v30 }
 0x1c9   : > { %1099 = vmatpush3.bf16.msra.mxu1 %v668_v24 }
 0x1cc   : > { %710 = vmatmul.mubr.bf16.vlgmr.msra.gmra.mrb[0].mxu1 %v1334_v18 }
 0x29f   : > { %v1100_v34 = vpop.f32.mrb[0].mxu1 }
 0x2a0   : > { %v1101_v27 = vpop.f32.mrb[1].mxu1 }
 0x2a1   : > { %v1102_v31 = vadd.f32 %v1101_v27, %v1100_v34  ;;  %v1103_v42 = vpop.f32.mrb[2].mxu1 }
 0x2a2   : > { %v1104_v5 = vpop.f32.mrb[3].mxu1 }
 0x2a3   : > { %718 = vst.msk [vmem:[%s199_s8] sm:$0x1] %vm717_vm3, %v1102_v31 }
 0x2a4 PF: > { %p14_p8 = scmp.ge.s32.totalorder %s1377_s17, 4   ;;  %s1942_s12 = smov %s1320_s13 }
 0x2a5   : > { %s1943_s13 = smov %s1324_s14  ;;  %s1944_s14 = smov %s1387_s20 }
 0x2a6   : > { %s1945_s15 = smov %s1377_s17  ;;  %16 = sbr.rel (!%p14_p8) target bundleno = 3 (0x3), region = 80 }
 0x2ad   :  { %913 = vsyncpa [#allocation3], 1 }
 0x2ae   :  { %915 = vsyncpa [#allocation3 + $0x1], 1 }

// kernel: bottleneck_forward.6
= control target key start
LH: loop header
LB: loop body
LE: loop exit
PB: predicated region body
PF: predicated region fallthrough
CT: control target
= control target key end

     0   :  { %s1511_s18 = smov 0   ;;  %s2062_s0 = inlined_call_operand.vmem [shape: bf16[2,16,16,4], index: 0, kind: input, shape index: {}]   ;;  %s2063_s1 = inlined_call_operand.vmem [shape: f32[1,4], index: 1, kind: input, shape index: {}]   ;;  %s2064_s2 = inlined_call_operand.vmem [shape: f32[1,4], index: 2, kind: input, shape index: {}]   ;;  %s2065_s3 = inlined_call_operand.vmem [shape: bf16[4,16], index: 3, kind: input, shape index: {}]   ;;  %s2066_s4 = inlined_call_operand.vmem [shape: bf16[2,16,16,16], index: 4, kind: output, shape index: {0}]   ;;  %s2067_s5 = inlined_call_operand.vmem [shape: f32[2,1,32], index: 5, kind: output, shape index: {1}]  }
   0x1 LB: > { %s1133_s19 = sadd.s32 4294967295, %s1477_s18   ;;  %p1137_p0 = scmp.ge.s32.totalorder %s1477_s18, 1  ;;  %s1477_s18 = sphi %s1511_s18, %s16_s18  }
   0x2   : > { %p190_p1 = scmp.lt.s32.totalorder %s1477_s18, 3 }
   0x4   : > { %p191_p2 = pnand %p1137_p0, %p190_p1 }
   0x5   : > { %v426_v0 = vld [vmem:[%s2065_s3] sm:$0x3] (!%p191_p2)  ;;  %vm476_vm0 = vcmask (!%p191_p2), 1041408   ;;  %p221_p3 = scmp.lt.s32.totalorder (!%p191_p2), %s1133_s19, 1  ;;  %vm427_vm1 = vcmask (!%p191_p2), 31744   ;;  %vm1020_vm2 = vcmask (!%p191_p2), 125952  }
   0x6   : > { %194 = sbr.rel (%p191_p2) target bundleno = 650 (0x28a), region = 36  ;;  %1380 = vmatprep.subr.msk.bf16.mxu0 (!%p191_p2), %vm476_vm0, %v426_v0  ;;  %v478_v1 = vsel (!%p191_p2), %vm476_vm0, %v426_v0, 0  ;;  %v1535_v2 = vld [vmem:[%s2063_s1] ss:$0 sm:$0xff] (!%p191_p2)  ;;  %s1479_s8 = smov (!%p191_p2), 16   ;;  %vm801_vm3 = vcmask (!%p191_p2), 130048  }
   0x7   : > { %1347 = vmatpush3.bf16.msra.mxu0 (!%p191_p2), %v478_v1  ;;  %v1544_v11 = vld [vmem:[%s2064_s2] ss:$0 sm:$0xff] (!%p191_p2)  ;;  %vm890_vm4 = vcmask (!%p191_p2), 253952  }
   0xd   : > { %s2069_s19 = smov (!%p221_p3, %s1133_s19), 1 }
   0xe   : > { %s1194_s22 = sshll.u32 %s2069_s19, 7  ;;  %s233_s11 = scalar_lea.vmem %s2067_s5, %s2069_s19 }
   0xf   : > { %s1530_s25 = scalar_lea.vmem %s2062_s0, %s1194_s22  ;;  %s1643_s7 = scalar_lea.vmem %s2066_s4, %s1194_s22 }
  0x10   : > { %v1229_v3 = vld [vmem:[%s1530_s25] sm:$0xff]   ;;  %v1292_v4 = vld [vmem:[%s1530_s25 + $0x8] sm:$0xff]   ;;  %v1293_v5 = vld [vmem:[%s1530_s25 + $0x10] sm:$0xff]  }
  0x11   : > { %v1230_v6 = vunpack.c.l.bf16 %v1229_v3  ;;  %v1231_v7 = vunpack.c.h.bf16 %v1229_v3  ;;  %v1234_v8 = vunpack.c.l.bf16 %v1292_v4  ;;  %v1235_v9 = vunpack.c.h.bf16 %v1292_v4  ;;  %v1294_v10 = vld [vmem:[%s1530_s25 + $0x18] sm:$0xff]   ;;  %v1295_v30 = vld [vmem:[%s1530_s25 + $0x20] sm:$0xff]   ;;  %v1296_v35 = vld [vmem:[%s1530_s25 + $0x28] sm:$0xff]  }
  0x12   : > { %v1238_v12 = vunpack.c.l.bf16 %v1293_v5  ;;  %v1239_v13 = vunpack.c.h.bf16 %v1293_v5  ;;  %v1242_v14 = vunpack.c.l.bf16 %v1294_v10  ;;  %v1243_v15 = vunpack.c.h.bf16 %v1294_v10  ;;  %v1297_v40 = vld [vmem:[%s1530_s25 + $0x30] sm:$0xff]   ;;  %v1298_v52 = vld [vmem:[%s1530_s25 + $0x38] sm:$0xff]   ;;  %v1299_v63 = vld [vmem:[%s1530_s25 + $0x40] sm:$0xff]  }
  0x13   : > { %v308_v16 = vmul.f32 %v1230_v6, %v1535_v2  ;;  %v309_v17 = vmul.f32 %v1231_v7, %v1535_v2  ;;  %v310_v18 = vmul.f32 %v1234_v8, %v1535_v2  ;;  %v311_v19 = vmul.f32 %v1235_v9, %v1535_v2 }
  0x14   : > { %v312_v20 = vmul.f32 %v1238_v12, %v1535_v2  ;;  %v313_v21 = vmul.f32 %v1239_v13, %v1535_v2  ;;  %v314_v22 = vmul.f32 %v1242_v14, %v1535_v2  ;;  %v315_v23 = vmul.f32 %v1243_v15, %v1535_v2 }
  0x15   : > { %v346_v24 = vadd.f32 %v1544_v11, %v308_v16  ;;  %v347_v25 = vadd.f32 %v1544_v11, %v309_v17  ;;  %v348_v26 = vadd.f32 %v1544_v11, %v310_v18  ;;  %v349_v27 = vadd.f32 %v1544_v11, %v311_v19 }
  0x16   : > { %v350_v28 = vadd.f32 %v1544_v11, %v312_v20  ;;  %v351_v29 = vadd.f32 %v1544_v11, %v313_v21  ;;  %v352_v38 = vadd.f32 %v1544_v11, %v314_v22  ;;  %v353_v39 = vadd.f32 %v1544_v11, %v315_v23  ;;  %v1300_v20 = vld [vmem:[%s1530_s25 + $0x48] sm:$0xff]   ;;  %v1301_v21 = vld [vmem:[%s1530_s25 + $0x50] sm:$0xff]  }
  0x17   : > { %v378_v31 = vmax.f32 %v346_v24, 0.0  ;;  %v379_v32 = vmax.f32 %v347_v25, 0.0  ;;  %v380_v33 = vmax.f32 %v348_v26, 0.0  ;;  %v381_v34 = vmax.f32 %v349_v27, 0.0 }
  0x18   : > { %v382_v36 = vmax.f32 %v350_v28, 0.0  ;;  %v383_v37 = vmax.f32 %v351_v29, 0.0  ;;  %v1246_v43 = vunpack.c.l.bf16 %v1295_v30  ;;  %v1247_v44 = vunpack.c.h.bf16 %v1295_v30 }
  0x19   : > { %v410_v41 = vpack.c.bf16 %v379_v32, %v378_v31  ;;  %v411_v42 = vpack.c.bf16 %v381_v34, %v380_v33  ;;  %v1250_v46 = vunpack.c.l.bf16 %v1296_v35  ;;  %v1251_v47 = vunpack.c.h.bf16 %v1296_v35 }
  0x1a   : > { %v412_v45 = vpack.c.bf16 %v383_v37, %v382_v36  ;;  %v316_v48 = vmul.f32 %v1246_v43, %v1535_v2  ;;  %v317_v49 = vmul.f32 %v1247_v44, %v1535_v2  ;;  %v1254_v50 = vunpack.c.l.bf16 %v1297_v40 }
  0x1b   : > { %1348 = vmatprep.mubr.msk.bf16.mxu0 %vm427_vm1, %v410_v41  ;;  %v1255_v51 = vunpack.c.h.bf16 %v1297_v40  ;;  %v384_v53 = vmax.f32 %v352_v38, 0.0  ;;  %v385_v54 = vmax.f32 %v353_v39, 0.0  ;;  %v318_v55 = vmul.f32 %v1250_v46, %v1535_v2  ;;  %v1302_v38 = vld [vmem:[%s1530_s25 + $0x58] sm:$0xff]   ;;  %v1303_v41 = vld [vmem:[%s1530_s25 + $0x60] sm:$0xff]  }
  0x1c   : > { %1349 = vmatmul.mubr.msk.bf16.vlgmr.msra.gmra.mrb[0].mxu0 %vm427_vm1, %v411_v42  ;;  %v319_v56 = vmul.f32 %v1251_v47, %v1535_v2  ;;  %v354_v57 = vadd.f32 %v1544_v11, %v316_v48  ;;  %v355_v58 = vadd.f32 %v1544_v11, %v317_v49  ;;  %v320_v59 = vmul.f32 %v1254_v50, %v1535_v2 }
  0x1d   : > { %1352 = vmatprep.mubr.msk.bf16.mxu0 %vm427_vm1, %v412_v45  ;;  %v321_v60 = vmul.f32 %v1255_v51, %v1535_v2  ;;  %v1258_v61 = vunpack.c.l.bf16 %v1298_v52  ;;  %v1259_v62 = vunpack.c.h.bf16 %v1298_v52  ;;  %v356_v3 = vadd.f32 %v1544_v11, %v318_v55 }
  0x1e   : > { %v386_v0 = vmax.f32 %v354_v57, 0.0  ;;  %v387_v1 = vmax.f32 %v355_v58, 0.0  ;;  %v357_v4 = vadd.f32 %v1544_v11, %v319_v56  ;;  %v413_v5 = vpack.c.bf16 %v385_v54, %v384_v53 }
  0x1f   : > { %v358_v7 = vadd.f32 %v1544_v11, %v320_v59  ;;  %v359_v8 = vadd.f32 %v1544_v11, %v321_v60  ;;  %v1262_v9 = vunpack.c.l.bf16 %v1299_v63  ;;  %v1263_v10 = vunpack.c.h.bf16 %v1299_v63  ;;  %v1304_v60 = vld [vmem:[%s1530_s25 + $0x68] sm:$0xff]  }
  0x20   : > { %v414_v6 = vpack.c.bf16 %v387_v1, %v386_v0  ;;  %v388_v12 = vmax.f32 %v356_v3, 0.0  ;;  %v389_v13 = vmax.f32 %v357_v4, 0.0  ;;  %v322_v14 = vmul.f32 %v1258_v61, %v1535_v2  ;;  %v1305_v61 = vld [vmem:[%s1530_s25 + $0x70] sm:$0xff]  }
  0x21   : > { %v323_v15 = vmul.f32 %v1259_v62, %v1535_v2  ;;  %v390_v16 = vmax.f32 %v358_v7, 0.0  ;;  %v391_v17 = vmax.f32 %v359_v8, 0.0  ;;  %v324_v18 = vmul.f32 %v1262_v9, %v1535_v2 }
  0x22   : > { %v325_v19 = vmul.f32 %v1263_v10, %v1535_v2  ;;  %v415_v22 = vpack.c.bf16 %v389_v13, %v388_v12  ;;  %v360_v23 = vadd.f32 %v1544_v11, %v322_v14  ;;  %v1266_v25 = vunpack.c.l.bf16 %v1300_v20 }
  0x23   : > { %v361_v24 = vadd.f32 %v1544_v11, %v323_v15  ;;  %v1267_v26 = vunpack.c.h.bf16 %v1300_v20  ;;  %v1270_v27 = vunpack.c.l.bf16 %v1301_v21  ;;  %v1271_v28 = vunpack.c.h.bf16 %v1301_v21 }
  0x24   : > { %1353 = vmatmul.mubr.msk.bf16.gmra.mrb[4].mxu0 %vm427_vm1, %v413_v5  ;;  %v416_v29 = vpack.c.bf16 %v391_v17, %v390_v16  ;;  %v362_v30 = vadd.f32 %v1544_v11, %v324_v18  ;;  %v363_v31 = vadd.f32 %v1544_v11, %v325_v19  ;;  %v392_v32 = vmax.f32 %v360_v23, 0.0  ;;  %v1306_v18 = vld [vmem:[%s1530_s25 + $0x78] sm:$0xff]  }
  0x25   : > { %1356 = vmatprep.mubr.msk.bf16.mxu0 %vm427_vm1, %v414_v6  ;;  %v393_v33 = vmax.f32 %v361_v24, 0.0  ;;  %v326_v34 = vmul.f32 %v1266_v25, %v1535_v2  ;;  %v327_v35 = vmul.f32 %v1267_v26, %v1535_v2  ;;  %v328_v36 = vmul.f32 %v1270_v27, %v1535_v2 }
  0x26   : > { %v329_v37 = vmul.f32 %v1271_v28, %v1535_v2  ;;  %v394_v39 = vmax.f32 %v362_v30, 0.0  ;;  %v395_v40 = vmax.f32 %v363_v31, 0.0  ;;  %v1274_v43 = vunpack.c.l.bf16 %v1302_v38 }
  0x27   : > { %v417_v42 = vpack.c.bf16 %v393_v33, %v392_v32  ;;  %v1275_v44 = vunpack.c.h.bf16 %v1302_v38  ;;  %v364_v45 = vadd.f32 %v1544_v11, %v326_v34  ;;  %v365_v46 = vadd.f32 %v1544_v11, %v327_v35 }
  0x28   : > { %v366_v47 = vadd.f32 %v1544_v11, %v328_v36  ;;  %v367_v48 = vadd.f32 %v1544_v11, %v329_v37  ;;  %v418_v49 = vpack.c.bf16 %v395_v40, %v394_v39  ;;  %v1278_v50 = vunpack.c.l.bf16 %v1303_v41 }
  0x29   : > { %v1279_v51 = vunpack.c.h.bf16 %v1303_v41  ;;  %v330_v52 = vmul.f32 %v1274_v43, %v1535_v2  ;;  %v331_v53 = vmul.f32 %v1275_v44, %v1535_v2  ;;  %v396_v54 = vmax.f32 %v364_v45, 0.0 }
  0x2a   : > { %v397_v55 = vmax.f32 %v365_v46, 0.0  ;;  %v398_v56 = vmax.f32 %v366_v47, 0.0  ;;  %v399_v57 = vmax.f32 %v367_v48, 0.0  ;;  %v332_v58 = vmul.f32 %v1278_v50, %v1535_v2 }
  0x2b   : > { %v333_v59 = vmul.f32 %v1279_v51, %v1535_v2  ;;  %v368_v62 = vadd.f32 %v1544_v11, %v330_v52  ;;  %v369_v63 = vadd.f32 %v1544_v11, %v331_v53  ;;  %v1282_v3 = vunpack.c.l.bf16 %v1304_v60 }
  0x2c   : > { %1357 = vmatmul.mubr.msk.bf16.gmra.mrb[8].mxu0 %vm427_vm1, %v415_v22  ;;  %v419_v0 = vpack.c.bf16 %v397_v55, %v396_v54  ;;  %v420_v1 = vpack.c.bf16 %v399_v57, %v398_v56  ;;  %v1283_v4 = vunpack.c.h.bf16 %v1304_v60  ;;  %v370_v5 = vadd.f32 %v1544_v11, %v332_v58 }
  0x2d   : > { %1360 = vmatprep.mubr.msk.bf16.mxu0 %vm427_vm1, %v416_v29  ;;  %v371_v6 = vadd.f32 %v1544_v11, %v333_v59  ;;  %v1286_v7 = vunpack.c.l.bf16 %v1305_v61  ;;  %v1287_v8 = vunpack.c.h.bf16 %v1305_v61  ;;  %v400_v9 = vmax.f32 %v368_v62, 0.0 }
  0x2e   : > { %v401_v10 = vmax.f32 %v369_v63, 0.0  ;;  %v334_v12 = vmul.f32 %v1282_v3, %v1535_v2  ;;  %v335_v13 = vmul.f32 %v1283_v4, %v1535_v2  ;;  %v402_v14 = vmax.f32 %v370_v5, 0.0 }
  0x2f   : > { %v403_v15 = vmax.f32 %v371_v6, 0.0  ;;  %v336_v16 = vmul.f32 %v1286_v7, %v1535_v2  ;;  %v337_v17 = vmul.f32 %v1287_v8, %v1535_v2  ;;  %v1290_v22 = vunpack.c.l.bf16 %v1306_v18 }
  0x30   : > { %v421_v19 = vpack.c.bf16 %v401_v10, %v400_v9  ;;  %v372_v20 = vadd.f32 %v1544_v11, %v334_v12  ;;  %v373_v21 = vadd.f32 %v1544_v11, %v335_v13  ;;  %v1291_v23 = vunpack.c.h.bf16 %v1306_v18 }
  0x31   : > { %v422_v24 = vpack.c.bf16 %v403_v15, %v402_v14  ;;  %v374_v25 = vadd.f32 %v1544_v11, %v336_v16  ;;  %v375_v26 = vadd.f32 %v1544_v11, %v337_v17  ;;  %v338_v29 = vmul.f32 %v1290_v22, %v1535_v2 }
  0x32   : > { %v404_v27 = vmax.f32 %v372_v20, 0.0  ;;  %v405_v28 = vmax.f32 %v373_v21, 0.0  ;;  %v339_v30 = vmul.f32 %v1291_v23, %v1535_v2 }
  0x33   : > { %v406_v31 = vmax.f32 %v374_v25, 0.0  ;;  %v407_v32 = vmax.f32 %v375_v26, 0.0  ;;  %v376_v34 = vadd.f32 %v1544_v11, %v338_v29 }
  0x34   : > { %1361 = vmatmul.mubr.msk.bf16.gmra.mrb[12].mxu0 %vm427_vm1, %v417_v42  ;;  %v423_v33 = vpack.c.bf16 %v405_v28, %v404_v27  ;;  %v377_v35 = vadd.f32 %v1544_v11, %v339_v30 }
  0x35   : > { %1364 = vmatprep.mubr.msk.bf16.mxu0 %vm427_vm1, %v418_v49  ;;  %v424_v36 = vpack.c.bf16 %v407_v32, %v406_v31  ;;  %v408_v37 = vmax.f32 %v376_v34, 0.0 }
  0x36   : > { %v409_v38 = vmax.f32 %v377_v35, 0.0 }
  0x38   : > { %v425_v39 = vpack.c.bf16 %v409_v38, %v408_v37 }
  0x3c   : > { %1365 = vmatmul.mubr.msk.bf16.gmra.mrb[16].mxu0 %vm427_vm1, %v419_v0 }
  0x3d   : > { %1368 = vmatprep.mubr.msk.bf16.mxu0 %vm427_vm1, %v420_v1 }
  0x44   : > { %1369 = vmatmul.mubr.msk.bf16.gmra.mrb[20].mxu0 %vm427_vm1, %v421_v19 }
  0x45   : > { %1372 = vmatprep.mubr.msk.bf16.mxu0 %vm427_vm1, %v422_v24 }
  0x4c   : > { %1373 = vmatmul.mubr.msk.bf16.gmra.mrb[24].mxu0 %vm427_vm1, %v423_v33 }
  0x4d   : > { %1376 = vmatprep.mubr.msk.bf16.mxu0 %vm427_vm1, %v424_v36 }
  0x54   : > { %1377 = vmatmul.mubr.msk.bf16.gmra.mrb[28].mxu0 %vm427_vm1, %v425_v39 }
  0xef   : > { %v1645_v2 = vpop.f32.mrb[0].mxu0 }
  0xf0   : > { %v1198_v11 = vpack.c.bf16 %v1645_v2, %v1645_v2  ;;  %v1649_v40 = vpop.f32.mrb[1].mxu0  ;;  %v1657_v43 = vmul.f32 %v1645_v2, %v1645_v2 }
  0xf1   : > { %v1196_v41 = vpack.c.bf16 %v1649_v40, %v1649_v40  ;;  %v1653_v42 = vpop.f32.mrb[2].mxu0  ;;  %v1671_v47 = vmul.f32 %v1649_v40, %v1649_v40 }
  0xf2   : > { %1023 = vst.msk [vmem:[%s1643_s7 + $0x8] sm:$0xf] %vm1020_vm2, %v1198_v11  ;;  %v1663_v44 = vmul.f32 %v1653_v42, %v1653_v42  ;;  %v1199_v45 = vpack.c.bf16 %v1653_v42, %v1653_v42  ;;  %v1667_v46 = vpop.f32.mrb[3].mxu0 }
  0xf3   : > { %1021 = vst.msk [vmem:[%s1643_s7] sm:$0xf] %vm1020_vm2, %v1196_v41  ;;  %v1677_v48 = vmul.f32 %v1667_v46, %v1667_v46  ;;  %v1197_v49 = vpack.c.bf16 %v1667_v46, %v1667_v46 }
  0xf4   : > { %1024 = vst.msk [vmem:[%s1643_s7 + $0xc] sm:$0xf] %vm1020_vm2, %v1199_v45  ;;  %v1406_v50 = vpack.i.bf16 %v1663_v44, %v1657_v43 }
  0xf5   : > { %1022 = vst.msk [vmem:[%s1643_s7 + $0x4] sm:$0xf] %vm1020_vm2, %v1197_v49  ;;  %v1396_v51 = vpack.i.bf16 %v1677_v48, %v1671_v47 }
  0xf7   : > { %v1689_v52 = vpop.f32.mrb[4].mxu0 }
  0xf8   : > { %v1202_v53 = vpack.c.bf16 %v1689_v52, %v1689_v52  ;;  %v1693_v54 = vpop.f32.mrb[5].mxu0  ;;  %v1701_v57 = vmul.f32 %v1689_v52, %v1689_v52 }
  0xf9   : > { %v1200_v55 = vpack.c.bf16 %v1693_v54, %v1693_v54  ;;  %v1697_v56 = vpop.f32.mrb[6].mxu0  ;;  %v1715_v61 = vmul.f32 %v1693_v54, %v1693_v54 }
  0xfa   : > { %1027 = vst.msk [vmem:[%s1643_s7 + $0x18] sm:$0xf] %vm1020_vm2, %v1202_v53  ;;  %v1707_v58 = vmul.f32 %v1697_v56, %v1697_v56  ;;  %v1203_v59 = vpack.c.bf16 %v1697_v56, %v1697_v56  ;;  %v1711_v60 = vpop.f32.mrb[7].mxu0 }
  0xfb   : > { %1025 = vst.msk [vmem:[%s1643_s7 + $0x10] sm:$0xf] %vm1020_vm2, %v1200_v55  ;;  %v1721_v62 = vmul.f32 %v1711_v60, %v1711_v60  ;;  %v1201_v63 = vpack.c.bf16 %v1711_v60, %v1711_v60 }
  0xfc   : > { %1028 = vst.msk [vmem:[%s1643_s7 + $0x1c] sm:$0xf] %vm1020_vm2, %v1203_v59  ;;  %v1426_v0 = vpack.i.bf16 %v1707_v58, %v1701_v57 }
  0xfd   : > { %1026 = vst.msk [vmem:[%s1643_s7 + $0x14] sm:$0xf] %vm1020_vm2, %v1201_v63  ;;  %v1411_v1 = vpack.i.bf16 %v1721_v62, %v1715_v61 }
  0xff   : > { %v1733_v3 = vpop.f32.mrb[8].mxu0 }
 0x100   : > { %v1206_v4 = vpack.c.bf16 %v1733_v3, %v1733_v3  ;;  %v1737_v5 = vpop.f32.mrb[9].mxu0  ;;  %v1745_v8 = vmul.f32 %v1733_v3, %v1733_v3 }
 0x101   : > { %v1204_v6 = vpack.c.bf16 %v1737_v5, %v1737_v5  ;;  %v1741_v7 = vpop.f32.mrb[10].mxu0  ;;  %v1759_v13 = vmul.f32 %v1737_v5, %v1737_v5 }
 0x102   : > { %1031 = vst.msk [vmem:[%s1643_s7 + $0x28] sm:$0xf] %vm1020_vm2, %v1206_v4  ;;  %v1751_v9 = vmul.f32 %v1741_v7, %v1741_v7  ;;  %v1207_v10 = vpack.c.bf16 %v1741_v7, %v1741_v7  ;;  %v1755_v12 = vpop.f32.mrb[11].mxu0 }
 0x103   : > { %1029 = vst.msk [vmem:[%s1643_s7 + $0x20] sm:$0xf] %vm1020_vm2, %v1204_v6  ;;  %v1765_v14 = vmul.f32 %v1755_v12, %v1755_v12  ;;  %v1205_v15 = vpack.c.bf16 %v1755_v12, %v1755_v12 }
 0x104   : > { %1032 = vst.msk [vmem:[%s1643_s7 + $0x2c] sm:$0xf] %vm1020_vm2, %v1207_v10  ;;  %v1446_v16 = vpack.i.bf16 %v1751_v9, %v1745_v8  ;;  %v1480_v8 = vmov 1065369472  }
 0x105   : > { %1030 = vst.msk [vmem:[%s1643_s7 + $0x24] sm:$0xf] %vm1020_vm2, %v1205_v15  ;;  %v1431_v17 = vpack.i.bf16 %v1765_v14, %v1759_v13  ;;  %882 = vmatprep.mubr.bf16.mxu1 %v1480_v8 }
 0x107   : > { %v1777_v18 = vpop.f32.mrb[12].mxu0 }
 0x108   : > { %v1210_v19 = vpack.c.bf16 %v1777_v18, %v1777_v18  ;;  %v1781_v20 = vpop.f32.mrb[13].mxu0  ;;  %v1789_v23 = vmul.f32 %v1777_v18, %v1777_v18 }
 0x109   : > { %v1208_v21 = vpack.c.bf16 %v1781_v20, %v1781_v20  ;;  %v1785_v22 = vpop.f32.mrb[14].mxu0  ;;  %v1803_v27 = vmul.f32 %v1781_v20, %v1781_v20 }
 0x10a   : > { %1035 = vst.msk [vmem:[%s1643_s7 + $0x38] sm:$0xf] %vm1020_vm2, %v1210_v19  ;;  %v1795_v24 = vmul.f32 %v1785_v22, %v1785_v22  ;;  %v1211_v25 = vpack.c.bf16 %v1785_v22, %v1785_v22  ;;  %v1799_v26 = vpop.f32.mrb[15].mxu0 }
 0x10b   : > { %1033 = vst.msk [vmem:[%s1643_s7 + $0x30] sm:$0xf] %vm1020_vm2, %v1208_v21  ;;  %v1809_v28 = vmul.f32 %v1799_v26, %v1799_v26  ;;  %v1209_v29 = vpack.c.bf16 %v1799_v26, %v1799_v26 }
 0x10c   : > { %1036 = vst.msk [vmem:[%s1643_s7 + $0x3c] sm:$0xf] %vm1020_vm2, %v1211_v25  ;;  %v1466_v30 = vpack.i.bf16 %v1795_v24, %v1789_v23 }
 0x10d   : > { %1034 = vst.msk [vmem:[%s1643_s7 + $0x34] sm:$0xf] %vm1020_vm2, %v1209_v29  ;;  %v1451_v31 = vpack.i.bf16 %v1809_v28, %v1803_v27 }
 0x10f   : > { %v1821_v32 = vpop.f32.mrb[16].mxu0 }
 0x110   : > { %v1214_v33 = vpack.c.bf16 %v1821_v32, %v1821_v32  ;;  %v1825_v34 = vpop.f32.mrb[17].mxu0  ;;  %v659_v39 = vmul.f32 %v1821_v32, %v1821_v32 }
 0x111   : > { %v1212_v35 = vpack.c.bf16 %v1825_v34, %v1825_v34  ;;  %v1829_v36 = vpop.f32.mrb[18].mxu0  ;;  %v657_v45 = vmul.f32 %v1825_v34, %v1825_v34 }
 0x112   : > { %1039 = vst.msk [vmem:[%s1643_s7 + $0x48] sm:$0xf] %vm1020_vm2, %v1214_v33  ;;  %v1215_v37 = vpack.c.bf16 %v1829_v36, %v1829_v36  ;;  %v1835_v38 = vpop.f32.mrb[19].mxu0  ;;  %v660_v11 = vmul.f32 %v1829_v36, %v1829_v36 }
 0x113   : > { %1037 = vst.msk [vmem:[%s1643_s7 + $0x40] sm:$0xf] %vm1020_vm2, %v1212_v35  ;;  %v1213_v41 = vpack.c.bf16 %v1835_v38, %v1835_v38  ;;  %v658_v49 = vmul.f32 %v1835_v38, %v1835_v38 }
 0x114   : > { %1040 = vst.msk [vmem:[%s1643_s7 + $0x4c] sm:$0xf] %vm1020_vm2, %v1215_v37  ;;  %v1401_v53 = vpack.i.bf16 %v660_v11, %v659_v39 }
 0x115   : > { %1038 = vst.msk [vmem:[%s1643_s7 + $0x44] sm:$0xf] %vm1020_vm2, %v1213_v41  ;;  %v1391_v55 = vpack.i.bf16 %v658_v49, %v657_v45 }
 0x116   : > { %1402 = vrot.lane.b32.xlu1 %v1401_v53, %s1479_s8 }
 0x117   : > { %1392 = vrot.lane.b32.xlu0 %v1391_v55, %s1479_s8  ;;  %v1855_v59 = vpop.f32.mrb[20].mxu0 }
 0x118   : > { %v663_v63 = vmul.f32 %v1855_v59, %v1855_v59  ;;  %v1218_v4 = vpack.c.bf16 %v1855_v59, %v1855_v59  ;;  %v1861_v6 = vpop.f32.mrb[21].mxu0 }
 0x119   : > { %v661_v10 = vmul.f32 %v1861_v6, %v1861_v6  ;;  %v1216_v15 = vpack.c.bf16 %v1861_v6, %v1861_v6  ;;  %v1867_v19 = vpop.f32.mrb[22].mxu0 }
 0x11a   : > { %1043 = vst.msk [vmem:[%s1643_s7 + $0x58] sm:$0xf] %vm1020_vm2, %v1218_v4  ;;  %v664_v21 = vmul.f32 %v1867_v19, %v1867_v19  ;;  %v1219_v25 = vpack.c.bf16 %v1867_v19, %v1867_v19  ;;  %1407 = vrot.lane.b32.xlu1 %v1406_v50, %s1479_s8  ;;  %v1879_v29 = vpop.f32.mrb[23].mxu0 }
 0x11b   : > { %1041 = vst.msk [vmem:[%s1643_s7 + $0x50] sm:$0xf] %vm1020_vm2, %v1216_v15  ;;  %v662_v33 = vmul.f32 %v1879_v29, %v1879_v29  ;;  %v1217_v35 = vpack.c.bf16 %v1879_v29, %v1879_v29  ;;  %1397 = vrot.lane.b32.xlu0 %v1396_v51, %s1479_s8 }
 0x11c   : > { %1044 = vst.msk [vmem:[%s1643_s7 + $0x5c] sm:$0xf] %vm1020_vm2, %v1219_v25  ;;  %v1421_v43 = vpack.i.bf16 %v664_v21, %v663_v63 }
 0x11d   : > { %1042 = vst.msk [vmem:[%s1643_s7 + $0x54] sm:$0xf] %vm1020_vm2, %v1217_v35  ;;  %v1416_v44 = vpack.i.bf16 %v662_v33, %v661_v10 }
 0x11e   : > { %1412 = vrot.lane.b32.xlu1 %v1411_v1, %s1479_s8 }
 0x11f   : > { %1417 = vrot.lane.b32.xlu0 %v1416_v44, %s1479_s8  ;;  %v1900_v50 = vpop.f32.mrb[24].mxu0 }
 0x120   : > { %v667_v47 = vmul.f32 %v1900_v50, %v1900_v50  ;;  %v1222_v48 = vpack.c.bf16 %v1900_v50, %v1900_v50  ;;  %v1906_v51 = vpop.f32.mrb[25].mxu0 }
 0x121   : > { %v665_v37 = vmul.f32 %v1906_v51, %v1906_v51  ;;  %v1220_v61 = vpack.c.bf16 %v1906_v51, %v1906_v51  ;;  %v1912_v62 = vpop.f32.mrb[26].mxu0 }
 0x122   : > { %1047 = vst.msk [vmem:[%s1643_s7 + $0x68] sm:$0xf] %vm1020_vm2, %v1222_v48  ;;  %v668_v1 = vmul.f32 %v1912_v62, %v1912_v62  ;;  %v1223_v39 = vpack.c.bf16 %v1912_v62, %v1912_v62  ;;  %1427 = vrot.lane.b32.xlu1 %v1426_v0, %s1479_s8  ;;  %v1924_v11 = vpop.f32.mrb[27].mxu0 }
 0x123   : > { %1045 = vst.msk [vmem:[%s1643_s7 + $0x60] sm:$0xf] %vm1020_vm2, %v1220_v61  ;;  %v666_v41 = vmul.f32 %v1924_v11, %v1924_v11  ;;  %v1221_v45 = vpack.c.bf16 %v1924_v11, %v1924_v11  ;;  %1422 = vrot.lane.b32.xlu0 %v1421_v43, %s1479_s8 }
 0x124   : > { %1048 = vst.msk [vmem:[%s1643_s7 + $0x6c] sm:$0xf] %vm1020_vm2, %v1223_v39  ;;  %v1441_v49 = vpack.i.bf16 %v668_v1, %v667_v47 }
 0x125   : > { %1046 = vst.msk [vmem:[%s1643_s7 + $0x64] sm:$0xf] %vm1020_vm2, %v1221_v45  ;;  %v1436_v57 = vpack.i.bf16 %v666_v41, %v665_v37 }
 0x126   : > { %1432 = vrot.lane.b32.xlu1 %v1431_v17, %s1479_s8 }
 0x127   : > { %1437 = vrot.lane.b32.xlu0 %v1436_v57, %s1479_s8  ;;  %v1942_v58 = vpop.f32.mrb[28].mxu0 }
 0x128   : > { %v671_v0 = vmul.f32 %v1942_v58, %v1942_v58  ;;  %v1226_v53 = vpack.c.bf16 %v1942_v58, %v1942_v58  ;;  %v1948_v55 = vpop.f32.mrb[29].mxu0 }
 0x129   : > { %v669_v63 = vmul.f32 %v1948_v55, %v1948_v55  ;;  %v1224_v13 = vpack.c.bf16 %v1948_v55, %v1948_v55  ;;  %v1954_v14 = vpop.f32.mrb[30].mxu0 }
 0x12a   : > { %1051 = vst.msk [vmem:[%s1643_s7 + $0x78] sm:$0xf] %vm1020_vm2, %v1226_v53  ;;  %v672_v17 = vmul.f32 %v1954_v14, %v1954_v14  ;;  %v1227_v4 = vpack.c.bf16 %v1954_v14, %v1954_v14  ;;  %1447 = vrot.lane.b32.xlu1 %v1446_v16, %s1479_s8  ;;  %v1966_v10 = vpop.f32.mrb[31].mxu0 }
 0x12b   : > { %1049 = vst.msk [vmem:[%s1643_s7 + $0x70] sm:$0xf] %vm1020_vm2, %v1224_v13  ;;  %v670_v15 = vmul.f32 %v1966_v10, %v1966_v10  ;;  %v1225_v21 = vpack.c.bf16 %v1966_v10, %v1966_v10  ;;  %1442 = vrot.lane.b32.xlu0 %v1441_v49, %s1479_s8 }
 0x12c   : > { %1052 = vst.msk [vmem:[%s1643_s7 + $0x7c] sm:$0xf] %vm1020_vm2, %v1227_v4  ;;  %v1461_v25 = vpack.i.bf16 %v672_v17, %v671_v0 }
 0x12d   : > { %1050 = vst.msk [vmem:[%s1643_s7 + $0x74] sm:$0xf] %vm1020_vm2, %v1225_v21  ;;  %v1456_v33 = vpack.i.bf16 %v670_v15, %v669_v63 }
 0x12e   : > { %1452 = vrot.lane.b32.xlu1 %v1451_v31, %s1479_s8 }
 0x12f   : > { %1457 = vrot.lane.b32.xlu0 %v1456_v33, %s1479_s8 }
 0x132   : > { %1467 = vrot.lane.b32.xlu1 %v1466_v30, %s1479_s8 }
 0x133   : > { %1462 = vrot.lane.b32.xlu0 %v1461_v25, %s1479_s8 }
 0x188   : > { %v1403_v9 = vpop.permute.xlu1 %1402 }
 0x189   : > { %v1405_v16 = vunpack.i.h.bf16 %v1403_v9  ;;  %v1404_v35 = vunpack.i.l.bf16 %v1403_v9  ;;  %v1393_v43 = vpop.permute.xlu0 %1392 }
 0x18a   : > { %v1395_v44 = vunpack.i.h.bf16 %v1393_v43  ;;  %v1394_v27 = vunpack.i.l.bf16 %v1393_v43 }
 0x18b   : > { %v820_v28 = vsel %vm801_vm3, %v1821_v32, %v1404_v35  ;;  %v821_v31 = vsel %vm801_vm3, %v1829_v36, %v1405_v16 }
 0x18c   : > { %v1408_v47 = vpop.permute.xlu1 %1407  ;;  %v818_v23 = vsel %vm801_vm3, %v1825_v34, %v1394_v27  ;;  %v819_v24 = vsel %vm801_vm3, %v1835_v38, %v1395_v44  ;;  %v843_v30 = vpack.c.bf16 %v821_v31, %v820_v28 }
 0x18d   : > { %v1410_v48 = vunpack.i.h.bf16 %v1408_v47  ;;  %v1409_v37 = vunpack.i.l.bf16 %v1408_v47  ;;  %v1398_v61 = vpop.permute.xlu0 %1397  ;;  %v842_v1 = vpack.c.bf16 %v819_v24, %v818_v23 }
 0x18e   : > { %v1400_v39 = vunpack.i.h.bf16 %v1398_v61  ;;  %v1399_v41 = vunpack.i.l.bf16 %v1398_v61 }
 0x18f   : > { %1324 = vmatprep.subr.bf16.mxu1 %v842_v1  ;;  %v804_v32 = vsel %vm801_vm3, %v1645_v2, %v1409_v37  ;;  %v805_v36 = vsel %vm801_vm3, %v1653_v42, %v1410_v48 }
 0x190   : > { %v1413_v45 = vpop.permute.xlu1 %1412  ;;  %v802_v34 = vsel %vm801_vm3, %v1649_v40, %v1399_v41  ;;  %v803_v38 = vsel %vm801_vm3, %v1667_v46, %v1400_v39  ;;  %v835_v49 = vpack.c.bf16 %v805_v36, %v804_v32 }
 0x191   : > { %v1415_v57 = vunpack.i.h.bf16 %v1413_v45  ;;  %v1414_v0 = vunpack.i.l.bf16 %v1413_v45  ;;  %v1418_v53 = vpop.permute.xlu0 %1417  ;;  %v834_v63 = vpack.c.bf16 %v803_v38, %v802_v34 }
 0x192   : > { %v1420_v13 = vunpack.i.h.bf16 %v1418_v53  ;;  %v1419_v17 = vunpack.i.l.bf16 %v1418_v53 }
 0x193   : > { %1325 = vmatpush3.bf16.msra.mxu1 %v834_v63  ;;  %v806_v2 = vsel %vm801_vm3, %v1693_v54, %v1414_v0  ;;  %v807_v42 = vsel %vm801_vm3, %v1711_v60, %v1415_v57 }
 0x194   : > { %v1428_v4 = vpop.permute.xlu1 %1427  ;;  %1326 = vmatprep.subr.bf16.mxu1 %v843_v30  ;;  %v822_v40 = vsel %vm801_vm3, %v1861_v6, %v1419_v17  ;;  %v823_v46 = vsel %vm801_vm3, %v1879_v29, %v1420_v13  ;;  %v836_v15 = vpack.c.bf16 %v807_v42, %v806_v2 }
 0x195   : > { %v1430_v21 = vunpack.i.h.bf16 %v1428_v4  ;;  %v1429_v25 = vunpack.i.l.bf16 %v1428_v4  ;;  %v1423_v33 = vpop.permute.xlu0 %1422  ;;  %v844_v9 = vpack.c.bf16 %v823_v46, %v822_v40 }
 0x196   : > { %v1425_v16 = vunpack.i.h.bf16 %v1423_v33  ;;  %v1424_v35 = vunpack.i.l.bf16 %v1423_v33 }
 0x197   : > { %1327 = vmatpush3.bf16.msra.mxu1 %v835_v49  ;;  %v808_v54 = vsel %vm801_vm3, %v1689_v52, %v1429_v25  ;;  %v809_v60 = vsel %vm801_vm3, %v1697_v56, %v1430_v21 }
 0x198   : > { %v1433_v43 = vpop.permute.xlu1 %1432  ;;  %1328 = vmatprep.subr.bf16.mxu1 %v844_v9  ;;  %v824_v6 = vsel %vm801_vm3, %v1855_v59, %v1424_v35  ;;  %v825_v29 = vsel %vm801_vm3, %v1867_v19, %v1425_v16  ;;  %v837_v44 = vpack.c.bf16 %v809_v60, %v808_v54 }
 0x199   : > { %v1435_v27 = vunpack.i.h.bf16 %v1433_v43  ;;  %v1434_v28 = vunpack.i.l.bf16 %v1433_v43  ;;  %v1438_v31 = vpop.permute.xlu0 %1437  ;;  %v845_v47 = vpack.c.bf16 %v825_v29, %v824_v6 }
 0x19a   : > { %v1440_v23 = vunpack.i.h.bf16 %v1438_v31  ;;  %v1439_v24 = vunpack.i.l.bf16 %v1438_v31 }
 0x19b   : > { %1329 = vmatpush3.bf16.msra.mxu1 %v836_v15  ;;  %v810_v52 = vsel %vm801_vm3, %v1737_v5, %v1434_v28  ;;  %v811_v56 = vsel %vm801_vm3, %v1755_v12, %v1435_v27 }
 0x19c   : > { %v1448_v30 = vpop.permute.xlu1 %1447  ;;  %1330 = vmatprep.subr.bf16.mxu1 %v845_v47  ;;  %v826_v59 = vsel %vm801_vm3, %v1906_v51, %v1439_v24  ;;  %v827_v19 = vsel %vm801_vm3, %v1924_v11, %v1440_v23  ;;  %v838_v48 = vpack.c.bf16 %v811_v56, %v810_v52 }
 0x19d   : > { %v1450_v37 = vunpack.i.h.bf16 %v1448_v30  ;;  %v1449_v61 = vunpack.i.l.bf16 %v1448_v30  ;;  %v1443_v1 = vpop.permute.xlu0 %1442  ;;  %v846_v39 = vpack.c.bf16 %v827_v19, %v826_v59 }
 0x19e   : > { %v1445_v41 = vunpack.i.h.bf16 %v1443_v1  ;;  %v1444_v32 = vunpack.i.l.bf16 %v1443_v1 }
 0x19f   : > { %1331 = vmatpush3.bf16.msra.mxu1 %v837_v44  ;;  %v812_v5 = vsel %vm801_vm3, %v1733_v3, %v1449_v61  ;;  %v813_v12 = vsel %vm801_vm3, %v1741_v7, %v1450_v37 }
 0x1a0   : > { %v1453_v36 = vpop.permute.xlu1 %1452  ;;  %1332 = vmatprep.subr.bf16.mxu1 %v846_v39  ;;  %v828_v51 = vsel %vm801_vm3, %v1900_v50, %v1444_v32  ;;  %v829_v11 = vsel %vm801_vm3, %v1912_v62, %v1445_v41  ;;  %v839_v45 = vpack.c.bf16 %v813_v12, %v812_v5 }
 0x1a1   : > { %v1455_v34 = vunpack.i.h.bf16 %v1453_v36  ;;  %v1454_v38 = vunpack.i.l.bf16 %v1453_v36  ;;  %v1458_v49 = vpop.permute.xlu0 %1457  ;;  %v847_v57 = vpack.c.bf16 %v829_v11, %v828_v51 }
 0x1a2   : > { %v1460_v0 = vunpack.i.h.bf16 %v1458_v49  ;;  %v1459_v53 = vunpack.i.l.bf16 %v1458_v49 }
 0x1a3   : > { %1333 = vmatpush3.bf16.msra.mxu1 %v838_v48  ;;  %v814_v3 = vsel %vm801_vm3, %v1781_v20, %v1454_v38  ;;  %v815_v7 = vsel %vm801_vm3, %v1799_v26, %v1455_v34 }
 0x1a4   : > { %v1468_v63 = vpop.permute.xlu1 %1467  ;;  %1334 = vmatprep.subr.bf16.mxu1 %v847_v57  ;;  %v830_v50 = vsel %vm801_vm3, %v1948_v55, %v1459_v53  ;;  %v831_v62 = vsel %vm801_vm3, %v1966_v10, %v1460_v0  ;;  %v840_v13 = vpack.c.bf16 %v815_v7, %v814_v3 }
 0x1a5   : > { %v1470_v17 = vunpack.i.h.bf16 %v1468_v63  ;;  %v1469_v2 = vunpack.i.l.bf16 %v1468_v63  ;;  %v1463_v42 = vpop.permute.xlu0 %1462  ;;  %v848_v4 = vpack.c.bf16 %v831_v62, %v830_v50 }
 0x1a6   : > { %v1465_v40 = vunpack.i.h.bf16 %v1463_v42  ;;  %v1464_v46 = vunpack.i.l.bf16 %v1463_v42 }
 0x1a7   : > { %1335 = vmatpush3.bf16.msra.mxu1 %v839_v45  ;;  %v816_v20 = vsel %vm801_vm3, %v1777_v18, %v1469_v2  ;;  %v817_v26 = vsel %vm801_vm3, %v1785_v22, %v1470_v17 }
 0x1a8   : > { %1336 = vmatprep.subr.bf16.mxu1 %v848_v4  ;;  %v832_v55 = vsel %vm801_vm3, %v1942_v58, %v1464_v46  ;;  %v833_v10 = vsel %vm801_vm3, %v1954_v14, %v1465_v40  ;;  %v841_v15 = vpack.c.bf16 %v817_v26, %v816_v20 }
 0x1a9   : > { %v849_v21 = vpack.c.bf16 %v833_v10, %v832_v55 }
 0x1ab   : > { %1337 = vmatpush3.bf16.msra.mxu1 %v840_v13 }
 0x1ac   : > { %1338 = vmatprep.subr.bf16.mxu1 %v849_v21 }
 0x1af   : > { %1339 = vmatpush3.bf16.msra.mxu1 %v841_v15 }
 0x1b2   : > { %883 = vmatmul.mubr.bf16.vlgmr.msra.gmra.mrb[0].mxu1 %v1480_v8 }
 0x285   : > { %v1340_v25 = vpop.f32.mrb[0].mxu1 }
 0x286   : > { %v1341_v18 = vpop.f32.mrb[1].mxu1 }
 0x287   : > { %v1342_v22 = vadd.f32 %v1341_v18, %v1340_v25  ;;  %v1343_v33 = vpop.f32.mrb[2].mxu1 }
 0x288   : > { %v1344_v58 = vpop.f32.mrb[3].mxu1 }
 0x289   : > { %891 = vst.msk [vmem:[%s233_s11] sm:$0x1] %vm890_vm4, %v1342_v22 }
 0x28a PF: > { %s16_s18 = sadd.s32 1, %s1477_s18  }
 0x28b   : > { %p13_p4 = scmp.ge.s32.totalorder %s16_s18, 4  }
 0x28d   :  { %15 = sbr.rel (!%p13_p4) target bundleno = 1 (0x1), region = 78 }

// kernel: bottleneck_forward.7
= control target key start
LH: loop header
LB: loop body
LE: loop exit
PB: predicated region body
PF: predicated region fallthrough
CT: control target
= control target key end

     0   :  { %9 = vsyncpa [#allocation3], 0  ;;  %s1112_s0 = inlined_call_operand.vmem [shape: bf16[2,16,16,16], index: 0, kind: input, shape index: {}]   ;;  %s1113_s1 = inlined_call_operand.vmem [shape: f32[2,16,16,16], index: 1, kind: input, shape index: {}]   ;;  %s1114_s2 = inlined_call_operand.vmem [shape: f32[1,16], index: 2, kind: input, shape index: {}]   ;;  %s1115_s3 = inlined_call_operand.vmem [shape: f32[1,16], index: 3, kind: input, shape index: {}]   ;;  %s1116_s4 = inlined_call_operand.hbm [shape: f32[2,16,16,16], index: 4, kind: output, shape index: {}]  }
   0x1   :  { %11 = vsyncpa [#allocation3 + $0x1], 0  ;;  %s806_s15 = smov 0   ;;  %s808_s16 = smov 0  }
   0x2   :  { %s810_s17 = smov 0   ;;  %s812_s18 = smov 0  }
   0x3 LB: > { %s827_s19 = sadd.s32 4294967295, %s776_s18   ;;  %s575_s20 = sadd.s32 4294967294, %s776_s18   ;;  %s776_s18 = sphi %s812_s18, %s1122_s18   ;;  %s772_s17 = sphi %s810_s17, %s1121_s17   ;;  %s768_s16 = sphi %s808_s16, %s1120_s16   ;;  %s764_s15 = sphi %s806_s15, %s1119_s15  }
   0x4   : > { %s831_s21 = sadd.s32 1, %s776_s18   ;;  %s118_s22 = sadd.s32 1, %s772_s17 }
   0x5   : > { %s115_s23 = ssub.s32 %s776_s18, %s831_s21  ;;  %p128_p0 = scmp.ne.s32.totalorder %s772_s17, %s768_s16 }
   0x6   : > { %p116_p1 = scmp.eq.s32.totalorder %s115_s23, 0  ;;  %p129_p2 = scmp.eq.s32.totalorder %s827_s19, 1 }
   0x7   : > { %p134_p3 = scmp.ne.s32.totalorder %s768_s16, %s764_s15  ;;  %p135_p4 = scmp.eq.s32.totalorder %s575_s20, 1 }
   0x8   : > { %s842_s24 = scalar_select %p116_p1, %s772_s17, %s118_s22  }
   0x9   : > { %p844_p5 = por %p129_p2, %p128_p0  ;;  %p848_p6 = por %p135_p4, %p134_p3 }
   0xa   : > { %p578_p7 = scmp.ge.s32.totalorder %s776_s18, 1  ;;  %p175_p8 = scmp.lt.s32.totalorder %s776_s18, 3 }
   0xc   : > { %p176_p9 = pnand %p578_p7, %p175_p8 }
   0xd   : > { %p206_p10 = scmp.lt.s32.totalorder (!%p176_p9), %s827_s19, 1  ;;  %v864_v0 = vld [vmem:[%s1114_s2] ss:$0 sm:$0xff] (!%p176_p9)  ;;  %s203_s12 = sand.u32 (!%p176_p9), 1, %s768_s16   ;;  %vm454_vm0 = vcmask (!%p176_p9), 130048  }
   0xe   : > { %179 = sbr.rel (%p176_p9) target bundleno = 83 (0x53), region = 36  ;;  %v877_v5 = vld [vmem:[%s1115_s3] ss:$0 sm:$0xff] (!%p176_p9)  ;;  %s889_s20 = sshll.u32 (!%p176_p9), %s203_s12, 8 }
   0xf   : > { %s913_s22 = scalar_lea.vmem (!%p176_p9), [#allocation2], %s889_s20  ;;  %s593_s23 = sshll.u32 (!%p176_p9), %s827_s19, 12 }
  0x10   : > { %s1071_s30 = scalar_lea.sflag (!%p176_p9), [#allocation3], %s203_s12 }
  0x15   : > { %s207_s27 = scalar_select %p206_p10, %s827_s19, 1 }
  0x17   : > { %s591_s28 = sshll.u32 %s207_s27, 7  ;;  %s592_s29 = sshll.u32 %s207_s27, 8 }
  0x18   : > { %s859_s6 = scalar_lea.vmem %s1112_s0, %s591_s28  ;;  %s870_s11 = scalar_lea.vmem %s1113_s1, %s592_s29 }
  0x19   : > { %v595_v1 = vld [vmem:[%s859_s6] sm:$0xff]   ;;  %v658_v4 = vld [vmem:[%s859_s6 + $0x8] sm:$0xff]   ;;  %v659_v8 = vld [vmem:[%s859_s6 + $0x10] sm:$0xff]   ;;  %s501_s27 = sshll.u32 %s913_s22, 4  ;;  %s1053_s29 = scalar_lea.hbm %s1116_s4, %s593_s23  ;;  %s1055_s27 = int_to_ptr.vmem [resolvable:$true] %s501_s27 }
  0x1a   : > { %v596_v2 = vunpack.c.l.bf16 %v595_v1  ;;  %v597_v3 = vunpack.c.h.bf16 %v595_v1  ;;  %v600_v6 = vunpack.c.l.bf16 %v658_v4  ;;  %v601_v7 = vunpack.c.h.bf16 %v658_v4  ;;  %v660_v13 = vld [vmem:[%s859_s6 + $0x18] sm:$0xff]   ;;  %v358_v14 = vld [vmem:[%s870_s11] sm:$0xff]  ;;  %v359_v15 = vld [vmem:[%s870_s11 + $0x8] sm:$0xff]  ;;  %s714_s5 = scalar_lea.vmem %s1055_s27, 4096 }
  0x1b   : > { %v604_v11 = vunpack.c.l.bf16 %v659_v8  ;;  %v605_v12 = vunpack.c.h.bf16 %v659_v8  ;;  %v608_v18 = vunpack.c.l.bf16 %v660_v13  ;;  %v609_v19 = vunpack.c.h.bf16 %v660_v13  ;;  %v360_v22 = vld [vmem:[%s870_s11 + $0x10] sm:$0xff]  ;;  %v361_v23 = vld [vmem:[%s870_s11 + $0x18] sm:$0xff]  ;;  %v362_v28 = vld [vmem:[%s870_s11 + $0x20] sm:$0xff]  ;;  %p715_p11 = scmp.ne.s32.totalorder %s1055_s27, %s714_s5 }
  0x1c   : > { %v288_v9 = vmul.f32 %v596_v2, %v864_v0  ;;  %v289_v10 = vmul.f32 %v597_v3, %v864_v0  ;;  %v290_v16 = vmul.f32 %v600_v6, %v864_v0  ;;  %v291_v17 = vmul.f32 %v601_v7, %v864_v0  ;;  %v363_v29 = vld [vmem:[%s870_s11 + $0x28] sm:$0xff]  ;;  %v364_v36 = vld [vmem:[%s870_s11 + $0x30] sm:$0xff]  ;;  %v365_v37 = vld [vmem:[%s870_s11 + $0x38] sm:$0xff] }
  0x1d   : > { %v292_v24 = vmul.f32 %v604_v11, %v864_v0  ;;  %v293_v25 = vmul.f32 %v605_v12, %v864_v0  ;;  %v294_v30 = vmul.f32 %v608_v18, %v864_v0  ;;  %v295_v31 = vmul.f32 %v609_v19, %v864_v0  ;;  %v661_v42 = vld [vmem:[%s859_s6 + $0x20] sm:$0xff]   ;;  %v662_v47 = vld [vmem:[%s859_s6 + $0x28] sm:$0xff]   ;;  %v663_v52 = vld [vmem:[%s859_s6 + $0x30] sm:$0xff]   ;;  %p716_p12 = pnand %p715_p11, %p844_p5 }
  0x1e   : > { %v326_v20 = vadd.f32 %v877_v5, %v288_v9  ;;  %v327_v21 = vadd.f32 %v877_v5, %v289_v10  ;;  %v328_v26 = vadd.f32 %v877_v5, %v290_v16  ;;  %v329_v27 = vadd.f32 %v877_v5, %v291_v17  ;;  %v664_v57 = vld [vmem:[%s859_s6 + $0x38] sm:$0xff]   ;;  %v366_v3 = vld [vmem:[%s870_s11 + $0x40] sm:$0xff]  ;;  %v367_v4 = vld [vmem:[%s870_s11 + $0x48] sm:$0xff] }
  0x1f   : > { %v330_v34 = vadd.f32 %v877_v5, %v292_v24  ;;  %v331_v35 = vadd.f32 %v877_v5, %v293_v25  ;;  %v332_v40 = vadd.f32 %v877_v5, %v294_v30  ;;  %v333_v41 = vadd.f32 %v877_v5, %v295_v31  ;;  %v368_v12 = vld [vmem:[%s870_s11 + $0x50] sm:$0xff]  ;;  %v369_v13 = vld [vmem:[%s870_s11 + $0x58] sm:$0xff]  ;;  %v370_v18 = vld [vmem:[%s870_s11 + $0x60] sm:$0xff]  ;;  %p717_p13 = pneg %p716_p12 }
  0x20   : > { %v390_v32 = vadd.f32 %v358_v14, %v326_v20  ;;  %v391_v33 = vadd.f32 %v359_v15, %v327_v21  ;;  %v392_v38 = vadd.f32 %v360_v22, %v328_v26  ;;  %v393_v39 = vadd.f32 %v361_v23, %v329_v27  ;;  %v371_v19 = vld [vmem:[%s870_s11 + $0x68] sm:$0xff]  ;;  %v372_v26 = vld [vmem:[%s870_s11 + $0x70] sm:$0xff]  ;;  %v373_v27 = vld [vmem:[%s870_s11 + $0x78] sm:$0xff] }
  0x21   : > { %v394_v45 = vadd.f32 %v362_v28, %v330_v34  ;;  %v395_v46 = vadd.f32 %v363_v29, %v331_v35  ;;  %v396_v50 = vadd.f32 %v364_v36, %v332_v40  ;;  %v397_v51 = vadd.f32 %v365_v37, %v333_v41  ;;  %v666_v37 = vld [vmem:[%s859_s6 + $0x48] sm:$0xff]  }
  0x22   : > { %v422_v43 = vmax.f32 %v390_v32, 0.0  ;;  %v423_v44 = vmax.f32 %v391_v33, 0.0  ;;  %v424_v48 = vmax.f32 %v392_v38, 0.0  ;;  %v425_v49 = vmax.f32 %v393_v39, 0.0  ;;  %v665_v32 = vld [vmem:[%s859_s6 + $0x40] sm:$0xff]  }
  0x23   : > { %v426_v53 = vmax.f32 %v394_v45, 0.0  ;;  %v427_v54 = vmax.f32 %v395_v46, 0.0  ;;  %v612_v55 = vunpack.c.l.bf16 %v661_v42  ;;  %v613_v56 = vunpack.c.h.bf16 %v661_v42  ;;  %v667_v42 = vld [vmem:[%s859_s6 + $0x50] sm:$0xff]  }
  0x24   : > { %455 = vst.msk [vmem:[%s913_s22] sm:$0xff] %vm454_vm0, %v422_v43  ;;  %456 = vst.msk [vmem:[%s913_s22 + $0x8] sm:$0xff] %vm454_vm0, %v423_v44  ;;  %v428_v58 = vmax.f32 %v396_v50, 0.0  ;;  %v429_v59 = vmax.f32 %v397_v51, 0.0  ;;  %v616_v60 = vunpack.c.l.bf16 %v662_v47  ;;  %v617_v61 = vunpack.c.h.bf16 %v662_v47  ;;  %v668_v47 = vld [vmem:[%s859_s6 + $0x58] sm:$0xff]  }
  0x25   : > { %457 = vst.msk [vmem:[%s913_s22 + $0x10] sm:$0xff] %vm454_vm0, %v424_v48  ;;  %458 = vst.msk [vmem:[%s913_s22 + $0x18] sm:$0xff] %vm454_vm0, %v425_v49  ;;  %v296_v62 = vmul.f32 %v612_v55, %v864_v0  ;;  %v297_v63 = vmul.f32 %v613_v56, %v864_v0  ;;  %v620_v1 = vunpack.c.l.bf16 %v663_v52  ;;  %v621_v2 = vunpack.c.h.bf16 %v663_v52  ;;  %v374_v56 = vld [vmem:[%s870_s11 + $0x80] sm:$0xff] }
  0x26   : > { %459 = vst.msk [vmem:[%s913_s22 + $0x20] sm:$0xff] %vm454_vm0, %v426_v53  ;;  %460 = vst.msk [vmem:[%s913_s22 + $0x28] sm:$0xff] %vm454_vm0, %v427_v54  ;;  %v298_v6 = vmul.f32 %v616_v60, %v864_v0  ;;  %v299_v7 = vmul.f32 %v617_v61, %v864_v0  ;;  %v624_v8 = vunpack.c.l.bf16 %v664_v57  ;;  %v625_v9 = vunpack.c.h.bf16 %v664_v57  ;;  %v375_v57 = vld [vmem:[%s870_s11 + $0x88] sm:$0xff] }
  0x27   : > { %461 = vst.msk [vmem:[%s913_s22 + $0x30] sm:$0xff] %vm454_vm0, %v428_v58  ;;  %462 = vst.msk [vmem:[%s913_s22 + $0x38] sm:$0xff] %vm454_vm0, %v429_v59  ;;  %v334_v10 = vadd.f32 %v877_v5, %v296_v62  ;;  %v335_v11 = vadd.f32 %v877_v5, %v297_v63  ;;  %v300_v14 = vmul.f32 %v620_v1, %v864_v0  ;;  %v628_v45 = vunpack.c.l.bf16 %v665_v32  ;;  %v376_v1 = vld [vmem:[%s870_s11 + $0x90] sm:$0xff] }
  0x28   : > { %v301_v15 = vmul.f32 %v621_v2, %v864_v0  ;;  %v336_v16 = vadd.f32 %v877_v5, %v298_v6  ;;  %v337_v17 = vadd.f32 %v877_v5, %v299_v7  ;;  %v302_v20 = vmul.f32 %v624_v8, %v864_v0  ;;  %v377_v2 = vld [vmem:[%s870_s11 + $0x98] sm:$0xff]  ;;  %v378_v8 = vld [vmem:[%s870_s11 + $0xa0] sm:$0xff] }
  0x29   : > { %v303_v21 = vmul.f32 %v625_v9, %v864_v0  ;;  %v398_v22 = vadd.f32 %v366_v3, %v334_v10  ;;  %v399_v23 = vadd.f32 %v367_v4, %v335_v11  ;;  %v338_v24 = vadd.f32 %v877_v5, %v300_v14  ;;  %v379_v9 = vld [vmem:[%s870_s11 + $0xa8] sm:$0xff] }
  0x2a   : > { %v339_v25 = vadd.f32 %v877_v5, %v301_v15  ;;  %v400_v28 = vadd.f32 %v368_v12, %v336_v16  ;;  %v401_v29 = vadd.f32 %v369_v13, %v337_v17  ;;  %v340_v30 = vadd.f32 %v877_v5, %v302_v20  ;;  %v380_v16 = vld [vmem:[%s870_s11 + $0xb0] sm:$0xff]  ;;  %v381_v17 = vld [vmem:[%s870_s11 + $0xb8] sm:$0xff] }
  0x2b   : > { %v341_v31 = vadd.f32 %v877_v5, %v303_v21  ;;  %v430_v33 = vmax.f32 %v398_v22, 0.0  ;;  %v431_v34 = vmax.f32 %v399_v23, 0.0  ;;  %v402_v35 = vadd.f32 %v370_v18, %v338_v24  ;;  %v669_v22 = vld [vmem:[%s859_s6 + $0x60] sm:$0xff]  }
  0x2c   : > { %v403_v36 = vadd.f32 %v371_v19, %v339_v25  ;;  %v432_v38 = vmax.f32 %v400_v28, 0.0  ;;  %v433_v39 = vmax.f32 %v401_v29, 0.0  ;;  %v404_v40 = vadd.f32 %v372_v26, %v340_v30 }
  0x2d   : > { %v405_v41 = vadd.f32 %v373_v27, %v341_v31  ;;  %463 = vst.msk [vmem:[%s913_s22 + $0x40] sm:$0xff] %vm454_vm0, %v430_v33  ;;  %464 = vst.msk [vmem:[%s913_s22 + $0x48] sm:$0xff] %vm454_vm0, %v431_v34  ;;  %v434_v43 = vmax.f32 %v402_v35, 0.0  ;;  %v629_v46 = vunpack.c.h.bf16 %v665_v32  ;;  %v632_v50 = vunpack.c.l.bf16 %v666_v37  ;;  %v670_v27 = vld [vmem:[%s859_s6 + $0x68] sm:$0xff]   ;;  %v671_v32 = vld [vmem:[%s859_s6 + $0x70] sm:$0xff]  }
  0x2e   : > { %v435_v44 = vmax.f32 %v403_v36, 0.0  ;;  %465 = vst.msk [vmem:[%s913_s22 + $0x50] sm:$0xff] %vm454_vm0, %v432_v38  ;;  %466 = vst.msk [vmem:[%s913_s22 + $0x58] sm:$0xff] %vm454_vm0, %v433_v39  ;;  %v436_v48 = vmax.f32 %v404_v40, 0.0  ;;  %v633_v51 = vunpack.c.h.bf16 %v666_v37  ;;  %v304_v52 = vmul.f32 %v628_v45, %v864_v0  ;;  %v672_v37 = vld [vmem:[%s859_s6 + $0x78] sm:$0xff]   ;;  %s778_s6 = smov [#allocation2]  }
  0x2f   : > { %v437_v49 = vmax.f32 %v405_v41, 0.0  ;;  %467 = vst.msk [vmem:[%s913_s22 + $0x60] sm:$0xff] %vm454_vm0, %v434_v43  ;;  %v305_v53 = vmul.f32 %v629_v46, %v864_v0  ;;  %v636_v54 = vunpack.c.l.bf16 %v667_v42  ;;  %v637_v55 = vunpack.c.h.bf16 %v667_v42  ;;  %v382_v46 = vld [vmem:[%s870_s11 + $0xc0] sm:$0xff]  ;;  %s718_s7 = sshll.u32 %s778_s6, 4  ;;  %s719_s7 = int_to_ptr.vmem [resolvable:$false] %s718_s7 }
  0x30   : > { %468 = vst.msk [vmem:[%s913_s22 + $0x68] sm:$0xff] %vm454_vm0, %v435_v44  ;;  %469 = vst.msk [vmem:[%s913_s22 + $0x70] sm:$0xff] %vm454_vm0, %v436_v48  ;;  %v306_v58 = vmul.f32 %v632_v50, %v864_v0  ;;  %v307_v59 = vmul.f32 %v633_v51, %v864_v0  ;;  %v640_v60 = vunpack.c.l.bf16 %v668_v47  ;;  %v641_v61 = vunpack.c.h.bf16 %v668_v47  ;;  %v383_v47 = vld [vmem:[%s870_s11 + $0xc8] sm:$0xff]  ;;  %s720_s8 = scalar_lea.vmem %s719_s7, 8192  ;;  %p721_p0 = scmp.lt.s32.totalorder %s1055_s27, %s719_s7 }
  0x31   : > { %470 = vst.msk [vmem:[%s913_s22 + $0x78] sm:$0xff] %vm454_vm0, %v437_v49  ;;  %v342_v62 = vadd.f32 %v877_v5, %v304_v52  ;;  %v343_v63 = vadd.f32 %v877_v5, %v305_v53  ;;  %v308_v3 = vmul.f32 %v636_v54, %v864_v0  ;;  %v309_v4 = vmul.f32 %v637_v55, %v864_v0  ;;  %v384_v54 = vld [vmem:[%s870_s11 + $0xd0] sm:$0xff]  ;;  %v385_v55 = vld [vmem:[%s870_s11 + $0xd8] sm:$0xff]  ;;  %p722_p1 = scmp.lt.s32.totalorder %s720_s8, %s714_s5 }
  0x32   : > { %v344_v6 = vadd.f32 %v877_v5, %v306_v58  ;;  %v345_v7 = vadd.f32 %v877_v5, %v307_v59  ;;  %v310_v10 = vmul.f32 %v640_v60, %v864_v0  ;;  %v311_v11 = vmul.f32 %v641_v61, %v864_v0  ;;  %v386_v60 = vld [vmem:[%s870_s11 + $0xe0] sm:$0xff]  ;;  %v387_v61 = vld [vmem:[%s870_s11 + $0xe8] sm:$0xff] }
  0x33   : > { %v406_v12 = vadd.f32 %v374_v56, %v342_v62  ;;  %v407_v13 = vadd.f32 %v375_v57, %v343_v63  ;;  %v346_v14 = vadd.f32 %v877_v5, %v308_v3  ;;  %v347_v15 = vadd.f32 %v877_v5, %v309_v4  ;;  %p723_p2 = por %p722_p1, %p721_p0 }
  0x34   : > { %v408_v18 = vadd.f32 %v376_v1, %v344_v6  ;;  %v409_v19 = vadd.f32 %v377_v2, %v345_v7  ;;  %v348_v20 = vadd.f32 %v877_v5, %v310_v10  ;;  %v349_v21 = vadd.f32 %v877_v5, %v311_v11  ;;  %v388_v6 = vld [vmem:[%s870_s11 + $0xf0] sm:$0xff]  ;;  %v389_v7 = vld [vmem:[%s870_s11 + $0xf8] sm:$0xff] }
  0x35   : > { %v438_v23 = vmax.f32 %v406_v12, 0.0  ;;  %v439_v24 = vmax.f32 %v407_v13, 0.0  ;;  %v410_v25 = vadd.f32 %v378_v8, %v346_v14  ;;  %v411_v26 = vadd.f32 %v379_v9, %v347_v15  ;;  %p724_p3 = pnand %p723_p2, %p717_p13 }
  0x36   : > { %v440_v28 = vmax.f32 %v408_v18, 0.0  ;;  %v441_v29 = vmax.f32 %v409_v19, 0.0  ;;  %v412_v30 = vadd.f32 %v380_v16, %v348_v20  ;;  %v413_v31 = vadd.f32 %v381_v17, %v349_v21 }
  0x37   : > { %471 = vst.msk [vmem:[%s913_s22 + $0x80] sm:$0xff] %vm454_vm0, %v438_v23  ;;  %472 = vst.msk [vmem:[%s913_s22 + $0x88] sm:$0xff] %vm454_vm0, %v439_v24  ;;  %v442_v33 = vmax.f32 %v410_v25, 0.0  ;;  %v443_v34 = vmax.f32 %v411_v26, 0.0  ;;  %v644_v35 = vunpack.c.l.bf16 %v669_v22  ;;  %v645_v36 = vunpack.c.h.bf16 %v669_v22 }
  0x38   : > { %473 = vst.msk [vmem:[%s913_s22 + $0x90] sm:$0xff] %vm454_vm0, %v440_v28  ;;  %474 = vst.msk [vmem:[%s913_s22 + $0x98] sm:$0xff] %vm454_vm0, %v441_v29  ;;  %v444_v38 = vmax.f32 %v412_v30, 0.0  ;;  %v445_v39 = vmax.f32 %v413_v31, 0.0  ;;  %v648_v40 = vunpack.c.l.bf16 %v670_v27  ;;  %v649_v41 = vunpack.c.h.bf16 %v670_v27 }
  0x39   : > { %475 = vst.msk [vmem:[%s913_s22 + $0xa0] sm:$0xff] %vm454_vm0, %v442_v33  ;;  %476 = vst.msk [vmem:[%s913_s22 + $0xa8] sm:$0xff] %vm454_vm0, %v443_v34  ;;  %v312_v42 = vmul.f32 %v644_v35, %v864_v0  ;;  %v313_v43 = vmul.f32 %v645_v36, %v864_v0  ;;  %v652_v44 = vunpack.c.l.bf16 %v671_v32  ;;  %v653_v45 = vunpack.c.h.bf16 %v671_v32 }
  0x3a   : > { %477 = vst.msk [vmem:[%s913_s22 + $0xb0] sm:$0xff] %vm454_vm0, %v444_v38  ;;  %478 = vst.msk [vmem:[%s913_s22 + $0xb8] sm:$0xff] %vm454_vm0, %v445_v39  ;;  %v314_v48 = vmul.f32 %v648_v40, %v864_v0  ;;  %v315_v49 = vmul.f32 %v649_v41, %v864_v0  ;;  %v656_v50 = vunpack.c.l.bf16 %v672_v37  ;;  %v657_v51 = vunpack.c.h.bf16 %v672_v37 }
  0x3b   : > { %v350_v52 = vadd.f32 %v877_v5, %v312_v42  ;;  %v351_v53 = vadd.f32 %v877_v5, %v313_v43  ;;  %v316_v56 = vmul.f32 %v652_v44, %v864_v0  ;;  %v317_v57 = vmul.f32 %v653_v45, %v864_v0 }
  0x3c   : > { %v352_v58 = vadd.f32 %v877_v5, %v314_v48  ;;  %v353_v59 = vadd.f32 %v877_v5, %v315_v49  ;;  %v318_v62 = vmul.f32 %v656_v50, %v864_v0  ;;  %v319_v63 = vmul.f32 %v657_v51, %v864_v0 }
  0x3d   : > { %v414_v1 = vadd.f32 %v382_v46, %v350_v52  ;;  %v415_v2 = vadd.f32 %v383_v47, %v351_v53  ;;  %v354_v3 = vadd.f32 %v877_v5, %v316_v56  ;;  %v355_v4 = vadd.f32 %v877_v5, %v317_v57 }
  0x3e   : > { %v416_v8 = vadd.f32 %v384_v54, %v352_v58  ;;  %v417_v9 = vadd.f32 %v385_v55, %v353_v59  ;;  %v356_v10 = vadd.f32 %v877_v5, %v318_v62  ;;  %v357_v11 = vadd.f32 %v877_v5, %v319_v63 }
  0x3f   : > { %v446_v0 = vmax.f32 %v414_v1, 0.0  ;;  %v447_v12 = vmax.f32 %v415_v2, 0.0  ;;  %v418_v13 = vadd.f32 %v386_v60, %v354_v3  ;;  %v419_v14 = vadd.f32 %v387_v61, %v355_v4 }
  0x40   : > { %v448_v15 = vmax.f32 %v416_v8, 0.0  ;;  %v449_v16 = vmax.f32 %v417_v9, 0.0  ;;  %v420_v17 = vadd.f32 %v388_v6, %v356_v10  ;;  %v421_v18 = vadd.f32 %v389_v7, %v357_v11 }
  0x41   : > { %479 = vst.msk [vmem:[%s913_s22 + $0xc0] sm:$0xff] %vm454_vm0, %v446_v0  ;;  %480 = vst.msk [vmem:[%s913_s22 + $0xc8] sm:$0xff] %vm454_vm0, %v447_v12  ;;  %v450_v5 = vmax.f32 %v418_v13, 0.0  ;;  %v451_v19 = vmax.f32 %v419_v14, 0.0 }
  0x42   : > { %481 = vst.msk [vmem:[%s913_s22 + $0xd0] sm:$0xff] %vm454_vm0, %v448_v15  ;;  %482 = vst.msk [vmem:[%s913_s22 + $0xd8] sm:$0xff] %vm454_vm0, %v449_v16  ;;  %v452_v20 = vmax.f32 %v420_v17, 0.0  ;;  %v453_v21 = vmax.f32 %v421_v18, 0.0 }
  0x43   : > { %483 = vst.msk [vmem:[%s913_s22 + $0xe0] sm:$0xff] %vm454_vm0, %v450_v5  ;;  %484 = vst.msk [vmem:[%s913_s22 + $0xe8] sm:$0xff] %vm454_vm0, %v451_v19 }
  0x44   : > { %485 = vst.msk [vmem:[%s913_s22 + $0xf0] sm:$0xff] %vm454_vm0, %v452_v20  ;;  %486 = vst.msk [vmem:[%s913_s22 + $0xf8] sm:$0xff] %vm454_vm0, %v453_v21 }
  0x45   : > { %727 = shalt.err (!%p724_p3)
}
  0x46   : > { %s728_s9 = scalar_lea.hbm %s1053_s29, 4096  ;;  %s732_s12 = scalar_lea.hbm %s1116_s4, 8192 }
  0x47   : > { %p729_p4 = scmp.ne.s32.totalorder %s1053_s29, %s728_s9  ;;  %p733_p9 = scmp.lt.u32.totalorder %s1053_s29, %s1116_s4 }
  0x48   : > { %p734_p10 = scmp.lt.u32.totalorder %s732_s12, %s728_s9  ;;  %p736_p12 = scmp.lt.u32.totalorder %s728_s9, %s1053_s29 }
  0x49   : > { %p730_p7 = pnand %p729_p4, %p844_p5 }
  0x4a   : > { %p735_p11 = por %p734_p10, %p733_p9 }
  0x4b   : > { %p731_p8 = pneg %p730_p7 }
  0x4c   : > { %p737_p13 = por %p736_p12, %p735_p11 }
  0x4e   : > { %p738_p0 = pnand %p737_p13, %p731_p8 }
  0x50   : > { %741 = shalt.err (!%p738_p0)
}
  0x51   : > { %s779_s20 = smov 128   ;;  %s780_s22 = smov 8  }
  0x52   : > { %673 = dma.vmem_to_hbm [thread:$0]  (%p844_p5), %s1055_s27, 4096, %s1053_s29, %s1071_s30, %s779_s20, %s779_s20, %s780_s22  }
  0x53 PF: > { %p679_p1 = scmp.ge.s32.totalorder %s776_s18, 2  ;;  %s516_s23 = sand.u32 1, %s764_s15  }
  0x54   : > { %s517_s19 = scalar_lea.sflag [#allocation3], %s516_s23 }
  0x55   : > { %p676_p2 = pnand %p679_p1, %p848_p6 }
  0x57   : > { %759 = dma.done.wait (!%p676_p2), %s517_s19, 4096  }
  0x58   : > { %761 = vsyncadd (!%p676_p2), %s517_s19, 4294963200  ;;  %p14_p3 = scmp.ge.s32.totalorder %s831_s21, 4   ;;  %s1119_s15 = smov %s768_s16 }
  0x59   : > { %s1120_s16 = smov %s772_s17  ;;  %s1121_s17 = smov %s842_s24 }
  0x5a   : > { %s1122_s18 = smov %s831_s21  ;;  %16 = sbr.rel (!%p14_p3) target bundleno = 3 (0x3), region = 74 }
  0x61   :  { %522 = vsyncpa [#allocation3], 1 }
  0x62   :  { %524 = vsyncpa [#allocation3 + $0x1], 1 }

// kernel: bottleneck_forward.5
= control target key start
LH: loop header
LB: loop body
LE: loop exit
PB: predicated region body
PF: predicated region fallthrough
CT: control target
= control target key end

     0   :  { %s4973_s18 = smov 0   ;;  %s6543_s0 = inlined_call_operand.vmem [shape: bf16[2,16,16,4], index: 0, kind: input, shape index: {}]   ;;  %s6544_s1 = inlined_call_operand.vmem [shape: f32[1,4], index: 1, kind: input, shape index: {}]   ;;  %s6545_s2 = inlined_call_operand.vmem [shape: f32[1,4], index: 2, kind: input, shape index: {}]   ;;  %s6546_s3 = inlined_call_operand.vmem [shape: bf16[3,12,4], index: 3, kind: input, shape index: {}]   ;;  %s6547_s4 = inlined_call_operand.vmem [shape: bf16[2,16,16,4], index: 4, kind: output, shape index: {0}]   ;;  %s6548_s5 = inlined_call_operand.vmem [shape: f32[2,1,8], index: 5, kind: output, shape index: {1}]  }
   0x1 LB: > { %s4029_s19 = sadd.s32 4294967295, %s4937_s18   ;;  %p4033_p0 = scmp.ge.s32.totalorder %s4937_s18, 1  ;;  %s4937_s18 = sphi %s4973_s18, %s16_s18  }
   0x2   : > { %p190_p1 = scmp.lt.s32.totalorder %s4937_s18, 3 }
   0x4   : > { %p191_p2 = pnand %p4033_p0, %p190_p1 }
   0x6   : > { %194 = sbr.rel (%p191_p2) target bundleno = 992 (0x3e0), region = 36 }
   0xd   : > { %vm410_vm0 = vcmask 27648   ;;  %vm413_vm1 = vcmask 24576   ;;  %vm420_vm2 = vsmask.f32 256  ;;  %v4939_v0 = vmov 0   ;;  %p221_p3 = scmp.lt.s32.totalorder %s4029_s19, 1 }
   0xe   : > { %411 = vst.msk [vmem:[#allocation2] sm:$0xf] %vm410_vm0, %v4939_v0  ;;  %412 = vst.msk [vmem:[#allocation2 + $0x4] sm:$0xf] %vm410_vm0, %v4939_v0  ;;  %vm476_vm4 = vsmask.f32 7938 }
   0xf   : > { %414 = vst.msk [vmem:[#allocation2 + $0x8] sm:$0x1] %vm413_vm1, %v4939_v0  ;;  %vm4984_vm3 = vmand %vm413_vm1, %vm420_vm2  ;;  %v428_v3 = vld [vmem:[#allocation2 + $0x18] sm:$0x1]  ;;  %v484_v4 = vld [vmem:[#allocation2 + $0x20] sm:$0x1] }
  0x10   : > { %416 = vst.msk [vmem:[#allocation2 + $0xcc] sm:$0xf] %vm410_vm0, %v4939_v0  ;;  %417 = vst.msk [vmem:[#allocation2 + $0xd0] sm:$0xf] %vm410_vm0, %v4939_v0  ;;  %s6600_s19 = smov (!%p221_p3, %s4029_s19), 1  ;;  %v429_v5 = vsel %vm4984_vm3, 0, %v428_v3 }
  0x11   : > { %418 = vst.msk [vmem:[#allocation2 + $0xd4] sm:$0x1] %vm413_vm1, %v4939_v0  ;;  %vm4991_vm5 = vmand %vm413_vm1, %vm476_vm4  ;;  %v425_v7 = vld [vmem:[#allocation2 + $0xc] sm:$0x1]  ;;  %v481_v9 = vld [vmem:[#allocation2 + $0x14] sm:$0x1]  ;;  %s233_s26 = scalar_lea.vmem %s6548_s5, %s6600_s19 }
  0x12   : > { %v485_v6 = vsel %vm4991_vm5, 0, %v484_v4  ;;  %430 = vst [vmem:[#allocation2 + $0x18] sm:$0x1] %v429_v5  ;;  %v426_v8 = vsel %vm4984_vm3, 0, %v425_v7  ;;  %v434_v10 = vld [vmem:[#allocation2 + $0x30] sm:$0x1]  ;;  %vm5069_vm9 = vmand %vm410_vm0, %vm476_vm4 }
  0x13   : > { %486 = vst [vmem:[#allocation2 + $0x20] sm:$0x1] %v485_v6  ;;  %s4305_s20 = sshll.u32 %s6600_s19, 7  ;;  %427 = vst [vmem:[#allocation2 + $0xc] sm:$0x1] %v426_v8  ;;  %v482_v11 = vsel %vm4991_vm5, 0, %v481_v9 }
  0x14   : > { %v435_v12 = vsel %vm4984_vm3, 0, %v434_v10  ;;  %v490_v13 = vld [vmem:[#allocation2 + $0x38] sm:$0x1]  ;;  %s5013_s23 = scalar_lea.vmem %s6543_s0, %s4305_s20  ;;  %v5018_v14 = vld [vmem:[%s6544_s1] ss:$0 sm:$0xff]  ;;  %vm1530_vm6 = vcmask 1046528   ;;  %s6198_s24 = scalar_lea.vmem %s6547_s4, %s4305_s20 }
  0x15   : > { %483 = vst [vmem:[#allocation2 + $0x14] sm:$0x1] %v482_v11  ;;  %436 = vst [vmem:[#allocation2 + $0x30] sm:$0x1] %v435_v12  ;;  %v491_v15 = vsel %vm4991_vm5, 0, %v490_v13  ;;  %v4435_v22 = vld [vmem:[%s5013_s23 + $0x8] sm:$0xff]  }
  0x16   : > { %v422_v16 = vld [vmem:[#allocation2] sm:$0x1]  ;;  %v478_v17 = vld [vmem:[#allocation2 + $0x8] sm:$0x1]  ;;  %v1066_v18 = vld [vmem:[#allocation2 + $0x4] sm:$0xf]  ;;  %v4377_v25 = vunpack.c.l.bf16 %v4435_v22  ;;  %v4378_v26 = vunpack.c.h.bf16 %v4435_v22 }
  0x17   : > { %492 = vst [vmem:[#allocation2 + $0x38] sm:$0x1] %v491_v15  ;;  %v423_v19 = vsel %vm4984_vm3, 0, %v422_v16  ;;  %v479_v20 = vsel %vm4991_vm5, 0, %v478_v17  ;;  %v1113_v21 = vld [vmem:[#allocation2] sm:$0xe] }
  0x18   : > { %v4372_v23 = vld [vmem:[%s5013_s23] sm:$0xff]   ;;  %424 = vst [vmem:[#allocation2] sm:$0x1] %v423_v19  ;;  %480 = vst [vmem:[#allocation2 + $0x8] sm:$0x1] %v479_v20  ;;  %v4104_v24 = vcombine.low %v1113_v21, %v1066_v18  ;;  %v4437_v28 = vld [vmem:[%s5013_s23 + $0x18] sm:$0xff]   ;;  %v310_v36 = vmul.f32 %v4377_v25, %v5018_v14  ;;  %v311_v37 = vmul.f32 %v4378_v26, %v5018_v14 }
  0x19   : > { %v4373_v27 = vunpack.c.l.bf16 %v4372_v23  ;;  %v4436_v29 = vld [vmem:[%s5013_s23 + $0x10] sm:$0xff]   ;;  %v5033_v30 = vld [vmem:[%s6545_s2] ss:$0 sm:$0xff]  ;;  %v4374_v31 = vunpack.c.h.bf16 %v4372_v23  ;;  %v4385_v32 = vunpack.c.l.bf16 %v4437_v28  ;;  %v4386_v33 = vunpack.c.h.bf16 %v4437_v28  ;;  %v5046_v47 = vld [vmem:[%s5013_s23 + $0x28] sm:$0xff]   ;;  %s4940_s28 = smov 8   ;;  %s4941_s29 = smov 4  }
  0x1a   : > { %v4381_v34 = vunpack.c.l.bf16 %v4436_v29  ;;  %v1531_v35 = vrot.slane %v4104_v24, 1  ;;  %vm628_vm7 = vsmask.f32 4368  ;;  %v4382_v42 = vunpack.c.h.bf16 %v4436_v29  ;;  %v960_v28 = vld [vmem:[#allocation2 + $0x18] sm:$0xf] }
  0x1b   : > { %v308_v38 = vmul.f32 %v4373_v27, %v5018_v14  ;;  %v309_v39 = vmul.f32 %v4374_v31, %v5018_v14  ;;  %v314_v40 = vmul.f32 %v4385_v32, %v5018_v14  ;;  %v315_v41 = vmul.f32 %v4386_v33, %v5018_v14  ;;  %vm5076_vm10 = vmor %vm420_vm2, %vm628_vm7  ;;  %v964_v29 = vld [vmem:[#allocation2 + $0x20] sm:$0x1] }
  0x1c   : > { %v348_v43 = vadd.f32 %v5033_v30, %v310_v36  ;;  %v349_v44 = vadd.f32 %v5033_v30, %v311_v37  ;;  %v312_v46 = vmul.f32 %v4381_v34, %v5018_v14  ;;  %vm1257_vm8 = vsmask.f32 7424 }
  0x1d   : > { %v346_v45 = vadd.f32 %v5033_v30, %v308_v38  ;;  %v347_v48 = vadd.f32 %v5033_v30, %v309_v39  ;;  %v352_v49 = vadd.f32 %v5033_v30, %v314_v40  ;;  %v353_v50 = vadd.f32 %v5033_v30, %v315_v41  ;;  %v953_v38 = vld [vmem:[#allocation2 + $0xc] sm:$0xf] }
  0x1e   : > { %v313_v51 = vmul.f32 %v4382_v42, %v5018_v14  ;;  %v380_v52 = vmax.f32 %v348_v43, 0.0  ;;  %v381_v53 = vmax.f32 %v349_v44, 0.0  ;;  %v5053_v55 = vadd.f32 %v5033_v30, %v312_v46  ;;  %v431_v43 = vld [vmem:[#allocation2 + $0x24] sm:$0x1] }
  0x1f   : > { %v378_v54 = vmax.f32 %v346_v45, 0.0  ;;  %v1065_v56 = vld [vmem:[#allocation2] sm:$0xf]  ;;  %v379_v57 = vmax.f32 %v347_v48, 0.0  ;;  %v384_v58 = vmax.f32 %v352_v49, 0.0  ;;  %v4393_v60 = vunpack.c.l.bf16 %v5046_v47 }
  0x20   : > { %v5056_v59 = vadd.f32 %v5033_v30, %v313_v51  ;;  %v5059_v61 = vcombine.low %v1065_v56, %v1066_v18  ;;  %v4785_v62 = vld [vmem:[#allocation2 + $0x8] ss:$0 sps:$4 sm:$0x11]   ;;  %v4309_v63 = vpack.c.bf16 %v380_v52, %v380_v52  ;;  %v4310_v0 = vpack.c.bf16 %v381_v53, %v381_v53  ;;  %v957_v48 = vld [vmem:[#allocation2 + $0x14] sm:$0x1] }
  0x21   : > { %v4307_v3 = vpack.c.bf16 %v378_v54, %v378_v54  ;;  %v4308_v4 = vpack.c.bf16 %v379_v57, %v379_v57  ;;  %v385_v5 = vmax.f32 %v353_v50, 0.0  ;;  %v5061_v6 = vpack.c.bf16 %v384_v58, %v384_v58  ;;  %v487_v50 = vld [vmem:[#allocation2 + $0x2c] sm:$0x1]  ;;  %v974_v56 = vld [vmem:[#allocation2 + $0x30] sm:$0xf] }
  0x22   : > { %v382_v7 = vmax.f32 %v5053_v55, 0.0  ;;  %v1259_v8 = vshrl.u32 %v5059_v61, 16  ;;  %v1261_v9 = vshll.u32 %v5059_v61, 16  ;;  %v1266_v10 = vshll.u32 %v4785_v62, 16  ;;  %v440_v57 = vld [vmem:[#allocation2 + $0x48] sm:$0x1] }
  0x23   : > { %v1532_v11 = vrot.slane %v4785_v62, 1  ;;  %v648_v12 = vshrl.u32 %v4309_v63, 16  ;;  %v651_v13 = vshll.u32 %v4309_v63, 16  ;;  %v656_v15 = vshrl.u32 %v4310_v0, 16 }
  0x24   : > { %v659_v16 = vshll.u32 %v4310_v0, 16  ;;  %v1263_v17 = vrot.slane %v1261_v9, 1  ;;  %v1268_v18 = vrot.slane %v1266_v10, 1  ;;  %v631_v20 = vshrl.u32 %v4307_v3, 16 }
  0x25   : > { %v1533_v19 = vsel %vm1530_vm6, %v1531_v35, %v1532_v11  ;;  %v650_v22 = vrot.slane %v648_v12, 7  ;;  %v658_v23 = vrot.slane %v656_v15, 7  ;;  %v634_v24 = vshll.u32 %v4307_v3, 16  ;;  %v978_v11 = vld [vmem:[#allocation2 + $0x38] sm:$0x1] }
  0x26   : > { %1579 = vrot.lane.b32.xlu1 %v1533_v19, %s4940_s28  ;;  %v639_v25 = vshrl.u32 %v4308_v4, 16  ;;  %v1264_v26 = vor.u32 %v1263_v17, %v1259_v8  ;;  %v633_v31 = vrot.slane %v631_v20, 7  ;;  %v642_v32 = vshll.u32 %v4308_v4, 16  ;;  %v4438_v17 = vld [vmem:[%s5013_s23 + $0x20] sm:$0xff]  }
  0x27   : > { %v4314_v33 = vpack.c.bf16 %v385_v5, %v385_v5  ;;  %v653_v34 = vor.u32 %v651_v13, %v650_v22  ;;  %v654_v35 = vrot.slane %v650_v22, 4  ;;  %v661_v36 = vor.u32 %v659_v16, %v658_v23 }
  0x28   : > { %v663_v37 = vrot.slane %v658_v23, 4  ;;  %v1269_v39 = vsel %vm1257_vm8, %v1264_v26, %v1268_v18  ;;  %v636_v40 = vor.u32 %v634_v24, %v633_v31  ;;  %v637_v41 = vrot.slane %v633_v31, 4 }
  0x29   : > { %v641_v42 = vrot.slane %v639_v25, 7  ;;  %1450 = vrot.lane.b32.xlu0 %v1269_v39, %s4941_s29  ;;  %v662_v44 = vsel %vm5076_vm10, %v654_v35, %v661_v36  ;;  %v961_v45 = vsel %vm5069_vm9, %v653_v34, %v960_v28  ;;  %v682_v49 = vshrl.u32 %v5061_v6, 16 }
  0x2a   : > { %v965_v46 = vsel %vm4984_vm3, %v663_v37, %v964_v29  ;;  %962 = vst [vmem:[#allocation2 + $0x18] sm:$0xf] %v961_v45  ;;  %963 = vst.msk [vmem:[#allocation2 + $0x1c] sm:$0xf] %vm410_vm0, %v662_v44  ;;  %v954_v53 = vsel %vm5069_vm9, %v636_v40, %v953_v38  ;;  %v685_v54 = vshll.u32 %v5061_v6, 16  ;;  %v690_v62 = vshrl.u32 %v4314_v33, 16 }
  0x2b   : > { %966 = vst [vmem:[#allocation2 + $0x20] sm:$0x1] %v965_v46  ;;  %v644_v51 = vor.u32 %v642_v32, %v641_v42  ;;  %v646_v52 = vrot.slane %v641_v42, 4  ;;  %955 = vst [vmem:[#allocation2 + $0xc] sm:$0xf] %v954_v53  ;;  %v684_v58 = vrot.slane %v682_v49, 7  ;;  %v4394_v13 = vunpack.c.h.bf16 %v5046_v47 }
  0x2c   : > { %v693_v63 = vshll.u32 %v4314_v33, 16  ;;  %v383_v0 = vmax.f32 %v5056_v59, 0.0  ;;  %v432_v5 = vsel %vm4984_vm3, 0, %v431_v43  ;;  %v488_v6 = vsel %vm4991_vm5, 0, %v487_v50  ;;  %v496_v42 = vld [vmem:[#allocation2 + $0x50] sm:$0x1] }
  0x2d   : > { %v645_v3 = vsel %vm5076_vm10, %v637_v41, %v644_v51  ;;  %v958_v4 = vsel %vm4984_vm3, %v646_v52, %v957_v48  ;;  %v687_v8 = vor.u32 %v685_v54, %v684_v58  ;;  %v688_v9 = vrot.slane %v684_v58, 4  ;;  %433 = vst [vmem:[#allocation2 + $0x24] sm:$0x1] %v432_v5  ;;  %489 = vst [vmem:[#allocation2 + $0x2c] sm:$0x1] %v488_v6 }
  0x2e   : > { %956 = vst.msk [vmem:[#allocation2 + $0x10] sm:$0xf] %vm410_vm0, %v645_v3  ;;  %959 = vst [vmem:[#allocation2 + $0x14] sm:$0x1] %v958_v4  ;;  %v692_v10 = vrot.slane %v690_v62, 7  ;;  %v4311_v59 = vpack.c.bf16 %v382_v7, %v382_v7  ;;  %v4312_v12 = vpack.c.bf16 %v383_v0, %v383_v0  ;;  %v318_v15 = vmul.f32 %v4393_v60, %v5018_v14 }
  0x2f   : > { %v441_v16 = vsel %vm4984_vm3, 0, %v440_v57  ;;  %v975_v20 = vsel %vm5069_vm9, %v687_v8, %v974_v56  ;;  %v319_v24 = vmul.f32 %v4394_v13, %v5018_v14  ;;  %v4389_v29 = vunpack.c.l.bf16 %v4438_v17  ;;  %v437_v13 = vld [vmem:[#allocation2 + $0x3c] sm:$0x1] }
  0x30   : > { %v695_v18 = vor.u32 %v693_v63, %v692_v10  ;;  %v697_v19 = vrot.slane %v692_v10, 4  ;;  %v665_v55 = vshrl.u32 %v4311_v59, 16  ;;  %442 = vst [vmem:[#allocation2 + $0x48] sm:$0x1] %v441_v16  ;;  %976 = vst [vmem:[#allocation2 + $0x30] sm:$0xf] %v975_v20  ;;  %v356_v28 = vadd.f32 %v5033_v30, %v318_v15 }
  0x31   : > { %v668_v7 = vshll.u32 %v4311_v59, 16  ;;  %v673_v22 = vshrl.u32 %v4312_v12, 16  ;;  %v676_v23 = vshll.u32 %v4312_v12, 16  ;;  %v1070_v25 = vld [vmem:[#allocation2 + $0x1c] sm:$0xf]  ;;  %v357_v35 = vadd.f32 %v5033_v30, %v319_v24 }
  0x32   : > { %v1115_v47 = vld [vmem:[#allocation2 + $0x18] sm:$0xe]  ;;  %v696_v60 = vsel %vm5076_vm10, %v688_v9, %v695_v18  ;;  %v979_v26 = vsel %vm4984_vm3, %v697_v19, %v978_v11  ;;  %v5121_v31 = vld [vmem:[#allocation2 + $0x20] ss:$0 sps:$4 sm:$0x11]   ;;  %v667_v34 = vrot.slane %v665_v55, 7  ;;  %v4390_v36 = vunpack.c.h.bf16 %v4438_v17 }
  0x33   : > { %v4106_v32 = vcombine.low %v1115_v47, %v1070_v25  ;;  %v1069_v33 = vld [vmem:[#allocation2 + $0x18] sm:$0xf]  ;;  %977 = vst.msk [vmem:[#allocation2 + $0x34] sm:$0xf] %vm410_vm0, %v696_v60  ;;  %980 = vst [vmem:[#allocation2 + $0x38] sm:$0x1] %v979_v26  ;;  %v316_v43 = vmul.f32 %v4389_v29, %v5018_v14 }
  0x34   : > { %v5125_v37 = vcombine.low %v1069_v33, %v1070_v25  ;;  %v1114_v38 = vld [vmem:[#allocation2 + $0xc] sm:$0xe]  ;;  %v675_v40 = vrot.slane %v673_v22, 7  ;;  %v388_v41 = vmax.f32 %v356_v28, 0.0  ;;  %v1538_v45 = vrot.slane %v5121_v31, 1  ;;  %v4441_v25 = vld [vmem:[%s5013_s23 + $0x38] sm:$0xff]  }
  0x35   : > { %v1067_v39 = vld [vmem:[#allocation2 + $0xc] sm:$0xf]  ;;  %v1537_v44 = vrot.slane %v4106_v32, 1  ;;  %v1068_v46 = vld [vmem:[#allocation2 + $0x10] sm:$0xf]  ;;  %v670_v48 = vor.u32 %v668_v7, %v667_v34  ;;  %v317_v49 = vmul.f32 %v4390_v36, %v5018_v14  ;;  %v671_v53 = vrot.slane %v667_v34, 4 }
  0x36   : > { %v5130_v50 = vld [vmem:[#allocation2 + $0x14] ss:$0 sps:$4 sm:$0x11]   ;;  %v4105_v51 = vcombine.low %v1114_v38, %v1068_v46  ;;  %v5132_v52 = vcombine.low %v1067_v39, %v1068_v46  ;;  %v678_v54 = vor.u32 %v676_v23, %v675_v40  ;;  %v967_v56 = vld [vmem:[#allocation2 + $0x24] sm:$0xf]  ;;  %v680_v58 = vrot.slane %v675_v40, 4 }
  0x37   : > { %v1539_v57 = vsel %vm1530_vm6, %v1537_v44, %v1538_v45  ;;  %v968_v62 = vsel %vm5069_vm9, %v670_v48, %v967_v56  ;;  %v971_v63 = vld [vmem:[#allocation2 + $0x2c] sm:$0x1]  ;;  %v389_v0 = vmax.f32 %v357_v35, 0.0  ;;  %v1535_v4 = vrot.slane %v5130_v50, 1  ;;  %v1073_v5 = vld [vmem:[#allocation2 + $0x30] sm:$0xf] }
  0x38   : > { %1583 = vrot.lane.b32.xlu0 %v1539_v57, %s4940_s28  ;;  %v1534_v3 = vrot.slane %v4105_v51, 1  ;;  %v1117_v6 = vld [vmem:[#allocation2 + $0x30] sm:$0xe]  ;;  %v679_v8 = vsel %vm5076_vm10, %v671_v53, %v678_v54  ;;  %969 = vst [vmem:[#allocation2 + $0x24] sm:$0xf] %v968_v62  ;;  %v4317_v9 = vpack.c.bf16 %v388_v41, %v388_v41  ;;  %v972_v10 = vsel %vm4984_vm3, %v680_v58, %v971_v63 }
  0x39   : > { %970 = vst.msk [vmem:[#allocation2 + $0x28] sm:$0xf] %vm410_vm0, %v679_v8  ;;  %v497_v59 = vsel %vm4991_vm5, 0, %v496_v42  ;;  %v4318_v11 = vpack.c.bf16 %v389_v0, %v389_v0  ;;  %v354_v12 = vadd.f32 %v5033_v30, %v316_v43  ;;  %v493_v15 = vld [vmem:[#allocation2 + $0x44] sm:$0x1]  ;;  %v355_v20 = vadd.f32 %v5033_v30, %v317_v49 }
  0x3a   : > { %v1536_v16 = vsel %vm1530_vm6, %v1534_v3, %v1535_v4  ;;  %v1074_v17 = vld [vmem:[#allocation2 + $0x34] sm:$0xf]  ;;  %973 = vst [vmem:[#allocation2 + $0x2c] sm:$0x1] %v972_v10  ;;  %498 = vst [vmem:[#allocation2 + $0x50] sm:$0x1] %v497_v59  ;;  %v4401_v48 = vunpack.c.l.bf16 %v4441_v25  ;;  %v4402_v8 = vunpack.c.h.bf16 %v4441_v25 }
  0x3b   : > { %v716_v18 = vshrl.u32 %v4317_v9, 16  ;;  %v719_v19 = vshll.u32 %v4317_v9, 16  ;;  %1581 = vrot.lane.b32.xlu1 %v1536_v16, %s4940_s28  ;;  %v5150_v55 = vcombine.low %v1073_v5, %v1074_v17  ;;  %v5152_v7 = vld [vmem:[#allocation2 + $0x38] ss:$0 sps:$4 sm:$0x11]   ;;  %v4108_v22 = vcombine.low %v1117_v6, %v1074_v17 }
  0x3c   : > { %v724_v23 = vshrl.u32 %v4318_v11, 16  ;;  %v727_v24 = vshll.u32 %v4318_v11, 16  ;;  %v386_v60 = vmax.f32 %v354_v12, 0.0  ;;  %v387_v26 = vmax.f32 %v355_v20, 0.0  ;;  %v988_v34 = vld [vmem:[#allocation2 + $0x48] sm:$0xf] }
  0x3d   : > { %v718_v47 = vrot.slane %v716_v18, 7  ;;  %v438_v28 = vsel %vm4984_vm3, 0, %v437_v13  ;;  %v1543_v29 = vrot.slane %v4108_v22, 1  ;;  %v1544_v32 = vrot.slane %v5152_v7, 1  ;;  %v446_v41 = vld [vmem:[#allocation2 + $0x60] sm:$0x1] }
  0x3e   : > { %v726_v33 = vrot.slane %v724_v23, 7  ;;  %439 = vst [vmem:[#allocation2 + $0x3c] sm:$0x1] %v438_v28  ;;  %v494_v35 = vsel %vm4991_vm5, 0, %v493_v15  ;;  %v4315_v39 = vpack.c.bf16 %v386_v60, %v386_v60  ;;  %v4316_v40 = vpack.c.bf16 %v387_v26, %v387_v26  ;;  %v502_v57 = vld [vmem:[#allocation2 + $0x68] sm:$0x1] }
  0x3f   : > { %v721_v36 = vor.u32 %v719_v19, %v718_v47  ;;  %v722_v38 = vrot.slane %v718_v47, 4  ;;  %495 = vst [vmem:[#allocation2 + $0x44] sm:$0x1] %v494_v35  ;;  %v1545_v42 = vsel %vm1530_vm6, %v1543_v29, %v1544_v32  ;;  %v1071_v43 = vld [vmem:[#allocation2 + $0x24] sm:$0xf]  ;;  %v322_v9 = vmul.f32 %v4401_v48, %v5018_v14  ;;  %v4440_v13 = vld [vmem:[%s5013_s23 + $0x30] sm:$0xff]  }
  0x40   : > { %v1116_v44 = vld [vmem:[#allocation2 + $0x24] sm:$0xe]  ;;  %v729_v45 = vor.u32 %v727_v24, %v726_v33  ;;  %v731_v46 = vrot.slane %v726_v33, 4  ;;  %1587 = vrot.lane.b32.xlu0 %v1545_v42, %s4940_s28  ;;  %v1072_v49 = vld [vmem:[#allocation2 + $0x28] sm:$0xf]  ;;  %v699_v53 = vshrl.u32 %v4315_v39, 16  ;;  %v323_v24 = vmul.f32 %v4402_v8, %v5018_v14 }
  0x41   : > { %v989_v51 = vsel %vm5069_vm9, %v721_v36, %v988_v34  ;;  %v702_v54 = vshll.u32 %v4315_v39, 16  ;;  %v707_v56 = vshrl.u32 %v4316_v40, 16  ;;  %v5164_v58 = vcombine.low %v1071_v43, %v1072_v49  ;;  %v5166_v62 = vld [vmem:[#allocation2 + $0x2c] ss:$0 sps:$4 sm:$0x11]   ;;  %v4442_v26 = vld [vmem:[%s5013_s23 + $0x40] sm:$0xff]  }
  0x42   : > { %v4107_v63 = vcombine.low %v1116_v44, %v1072_v49  ;;  %v730_v0 = vsel %vm5076_vm10, %v722_v38, %v729_v45  ;;  %990 = vst [vmem:[#allocation2 + $0x48] sm:$0xf] %v989_v51  ;;  %v710_v3 = vshll.u32 %v4316_v40, 16  ;;  %v992_v4 = vld [vmem:[#allocation2 + $0x50] sm:$0x1]  ;;  %v701_v5 = vrot.slane %v699_v53, 7 }
  0x43   : > { %991 = vst.msk [vmem:[#allocation2 + $0x4c] sm:$0xf] %vm410_vm0, %v730_v0  ;;  %v709_v6 = vrot.slane %v707_v56, 7  ;;  %v1541_v59 = vrot.slane %v5166_v62, 1  ;;  %v993_v11 = vsel %vm4984_vm3, %v731_v46, %v992_v4  ;;  %v447_v12 = vsel %vm4984_vm3, 0, %v446_v41  ;;  %v5206_v0 = vld [vmem:[%s5013_s23 + $0x50] sm:$0xff]  }
  0x44   : > { %v1540_v10 = vrot.slane %v4107_v63, 1  ;;  %994 = vst [vmem:[#allocation2 + $0x50] sm:$0x1] %v993_v11  ;;  %v704_v15 = vor.u32 %v702_v54, %v701_v5  ;;  %v705_v16 = vrot.slane %v701_v5, 4  ;;  %448 = vst [vmem:[#allocation2 + $0x60] sm:$0x1] %v447_v12  ;;  %v360_v25 = vadd.f32 %v5033_v30, %v322_v9 }
  0x45   : > { %v712_v17 = vor.u32 %v710_v3, %v709_v6  ;;  %v714_v18 = vrot.slane %v709_v6, 4  ;;  %v981_v19 = vld [vmem:[#allocation2 + $0x3c] sm:$0xf]  ;;  %v443_v20 = vld [vmem:[#allocation2 + $0x54] sm:$0x1]  ;;  %v503_v47 = vsel %vm4991_vm5, 0, %v502_v57  ;;  %v4397_v33 = vunpack.c.l.bf16 %v4440_v13 }
  0x46   : > { %v1542_v22 = vsel %vm1530_vm6, %v1540_v10, %v1541_v59  ;;  %v985_v23 = vld [vmem:[#allocation2 + $0x44] sm:$0x1]  ;;  %v499_v60 = vld [vmem:[#allocation2 + $0x5c] sm:$0x1]  ;;  %v982_v29 = vsel %vm5069_vm9, %v704_v15, %v981_v19  ;;  %504 = vst [vmem:[#allocation2 + $0x68] sm:$0x1] %v503_v47  ;;  %v361_v35 = vadd.f32 %v5033_v30, %v323_v24  ;;  %v4398_v38 = vunpack.c.h.bf16 %v4440_v13 }
  0x47   : > { %1585 = vrot.lane.b32.xlu1 %v1542_v22, %s4940_s28  ;;  %v713_v28 = vsel %vm5076_vm10, %v705_v16, %v712_v17  ;;  %v986_v32 = vsel %vm4984_vm3, %v714_v18, %v985_v23  ;;  %v449_v34 = vld [vmem:[#allocation2 + $0x6c] sm:$0x1]  ;;  %983 = vst [vmem:[#allocation2 + $0x3c] sm:$0xf] %v982_v29  ;;  %v392_v36 = vmax.f32 %v360_v25, 0.0  ;;  %v444_v39 = vsel %vm4984_vm3, 0, %v443_v20 }
  0x48   : > { %984 = vst.msk [vmem:[#allocation2 + $0x40] sm:$0xf] %vm410_vm0, %v713_v28  ;;  %987 = vst [vmem:[#allocation2 + $0x44] sm:$0x1] %v986_v32  ;;  %v320_v42 = vmul.f32 %v4397_v33, %v5018_v14  ;;  %v500_v43 = vsel %vm4991_vm5, 0, %v499_v60  ;;  %v4405_v44 = vunpack.c.l.bf16 %v4442_v26  ;;  %v4406_v45 = vunpack.c.h.bf16 %v4442_v26 }
  0x49   : > { %v1077_v40 = vld [vmem:[#allocation2 + $0x48] sm:$0xf]  ;;  %445 = vst [vmem:[#allocation2 + $0x54] sm:$0x1] %v444_v39  ;;  %v393_v48 = vmax.f32 %v361_v35, 0.0  ;;  %v4321_v49 = vpack.c.bf16 %v392_v36, %v392_v36  ;;  %v321_v51 = vmul.f32 %v4398_v38, %v5018_v14  ;;  %v450_v53 = vsel %vm4984_vm3, 0, %v449_v34 }
  0x4a   : > { %v1119_v41 = vld [vmem:[#allocation2 + $0x48] sm:$0xe]  ;;  %v1078_v46 = vld [vmem:[#allocation2 + $0x4c] sm:$0xf]  ;;  %501 = vst [vmem:[#allocation2 + $0x5c] sm:$0x1] %v500_v43  ;;  %v358_v57 = vadd.f32 %v5033_v30, %v320_v42  ;;  %v324_v63 = vmul.f32 %v4405_v44, %v5018_v14  ;;  %v325_v8 = vmul.f32 %v4406_v45, %v5018_v14  ;;  %v4413_v23 = vunpack.c.l.bf16 %v5206_v0 }
  0x4b   : > { %v5201_v54 = vcombine.low %v1077_v40, %v1078_v46  ;;  %v4110_v56 = vcombine.low %v1119_v41, %v1078_v46  ;;  %451 = vst [vmem:[#allocation2 + $0x6c] sm:$0x1] %v450_v53  ;;  %v5208_v3 = vld [vmem:[#allocation2 + $0x50] ss:$0 sps:$4 sm:$0x11]   ;;  %v4322_v4 = vpack.c.bf16 %v393_v48, %v393_v48  ;;  %v750_v5 = vshrl.u32 %v4321_v49, 16 }
  0x4c   : > { %v359_v6 = vadd.f32 %v5033_v30, %v321_v51  ;;  %v753_v10 = vshll.u32 %v4321_v49, 16  ;;  %v390_v59 = vmax.f32 %v358_v57, 0.0  ;;  %v362_v11 = vadd.f32 %v5033_v30, %v324_v63  ;;  %v1002_v17 = vld [vmem:[#allocation2 + $0x60] sm:$0xf]  ;;  %v505_v36 = vld [vmem:[#allocation2 + $0x74] sm:$0x1] }
  0x4d   : > { %v1549_v9 = vrot.slane %v4110_v56, 1  ;;  %v1550_v12 = vrot.slane %v5208_v3, 1  ;;  %v752_v13 = vrot.slane %v750_v5, 7  ;;  %v758_v15 = vshrl.u32 %v4322_v4, 16  ;;  %v1006_v40 = vld [vmem:[#allocation2 + $0x68] sm:$0x1] }
  0x4e   : > { %v761_v16 = vshll.u32 %v4322_v4, 16  ;;  %v1075_v18 = vld [vmem:[#allocation2 + $0x3c] sm:$0xf]  ;;  %v4319_v20 = vpack.c.bf16 %v390_v59, %v390_v59  ;;  %v363_v22 = vadd.f32 %v5033_v30, %v325_v8  ;;  %v4414_v24 = vunpack.c.h.bf16 %v5206_v0 }
  0x4f   : > { %v1076_v19 = vld [vmem:[#allocation2 + $0x40] sm:$0xf]  ;;  %v1551_v25 = vsel %vm1530_vm6, %v1549_v9, %v1550_v12  ;;  %v1118_v47 = vld [vmem:[#allocation2 + $0x3c] sm:$0xe]  ;;  %v755_v28 = vor.u32 %v753_v10, %v752_v13  ;;  %v756_v29 = vrot.slane %v752_v13, 4  ;;  %v760_v33 = vrot.slane %v758_v15, 7 }
  0x50   : > { %v5218_v60 = vcombine.low %v1075_v18, %v1076_v19  ;;  %v5220_v26 = vld [vmem:[#allocation2 + $0x44] ss:$0 sps:$4 sm:$0x11]   ;;  %1591 = vrot.lane.b32.xlu0 %v1551_v25, %s4940_s28  ;;  %v4109_v32 = vcombine.low %v1118_v47, %v1076_v19  ;;  %v391_v34 = vmax.f32 %v359_v6, 0.0  ;;  %v733_v35 = vshrl.u32 %v4319_v20, 16 }
  0x51   : > { %v1547_v38 = vrot.slane %v5220_v26, 1  ;;  %v1003_v39 = vsel %vm5069_vm9, %v755_v28, %v1002_v17  ;;  %v736_v41 = vshll.u32 %v4319_v20, 16  ;;  %v394_v42 = vmax.f32 %v362_v11, 0.0  ;;  %v995_v4 = vld [vmem:[#allocation2 + $0x54] sm:$0xf] }
  0x52   : > { %v1546_v43 = vrot.slane %v4109_v32, 1  ;;  %v763_v44 = vor.u32 %v761_v16, %v760_v33  ;;  %v765_v45 = vrot.slane %v760_v33, 4  ;;  %1004 = vst [vmem:[#allocation2 + $0x60] sm:$0xf] %v1003_v39  ;;  %v4320_v46 = vpack.c.bf16 %v391_v34, %v391_v34  ;;  %v999_v15 = vld [vmem:[#allocation2 + $0x5c] sm:$0x1] }
  0x53   : > { %v735_v48 = vrot.slane %v733_v35, 7  ;;  %v395_v49 = vmax.f32 %v363_v22, 0.0  ;;  %v506_v51 = vsel %vm4991_vm5, 0, %v505_v36  ;;  %v4323_v53 = vpack.c.bf16 %v394_v42, %v394_v42  ;;  %v1009_v28 = vld [vmem:[#allocation2 + $0x6c] sm:$0xf] }
  0x54   : > { %v1548_v56 = vsel %vm1530_vm6, %v1546_v43, %v1547_v38  ;;  %v764_v57 = vsel %vm5076_vm10, %v756_v29, %v763_v44  ;;  %v1007_v63 = vsel %vm4984_vm3, %v765_v45, %v1006_v40  ;;  %v741_v0 = vshrl.u32 %v4320_v46, 16  ;;  %507 = vst [vmem:[#allocation2 + $0x74] sm:$0x1] %v506_v51  ;;  %v4443_v44 = vld [vmem:[%s5013_s23 + $0x48] sm:$0xff]  }
  0x55   : > { %1589 = vrot.lane.b32.xlu1 %v1548_v56, %s4940_s28  ;;  %1005 = vst.msk [vmem:[#allocation2 + $0x64] sm:$0xf] %vm410_vm0, %v764_v57  ;;  %1008 = vst [vmem:[#allocation2 + $0x68] sm:$0x1] %v1007_v63  ;;  %v738_v5 = vor.u32 %v736_v41, %v735_v48  ;;  %v739_v6 = vrot.slane %v735_v48, 4  ;;  %v744_v8 = vshll.u32 %v4320_v46, 16  ;;  %v4324_v9 = vpack.c.bf16 %v395_v49, %v395_v49 }
  0x56   : > { %v743_v10 = vrot.slane %v741_v0, 7  ;;  %v767_v59 = vshrl.u32 %v4323_v53, 16  ;;  %v770_v11 = vshll.u32 %v4323_v53, 16  ;;  %v1271_v12 = vshrl.u32 %v5132_v52, 16 }
  0x57   : > { %v996_v13 = vsel %vm5069_vm9, %v738_v5, %v995_v4  ;;  %v775_v16 = vshrl.u32 %v4324_v9, 16  ;;  %v778_v17 = vshll.u32 %v4324_v9, 16  ;;  %v1273_v18 = vshll.u32 %v5132_v52, 16 }
  0x58   : > { %v746_v19 = vor.u32 %v744_v8, %v743_v10  ;;  %v748_v20 = vrot.slane %v743_v10, 4  ;;  %997 = vst [vmem:[#allocation2 + $0x54] sm:$0xf] %v996_v13  ;;  %v769_v22 = vrot.slane %v767_v59, 7  ;;  %v1278_v25 = vshll.u32 %v5130_v50, 16 }
  0x59   : > { %v777_v47 = vrot.slane %v775_v16, 7  ;;  %v1275_v29 = vrot.slane %v1273_v18, 1  ;;  %v328_v32 = vmul.f32 %v4413_v23, %v5018_v14  ;;  %v329_v33 = vmul.f32 %v4414_v24, %v5018_v14  ;;  %v1081_v34 = vld [vmem:[#allocation2 + $0x60] sm:$0xf] }
  0x5a   : > { %v1121_v35 = vld [vmem:[#allocation2 + $0x60] sm:$0xe]  ;;  %v747_v36 = vsel %vm5076_vm10, %v739_v6, %v746_v19  ;;  %v1000_v38 = vsel %vm4984_vm3, %v748_v20, %v999_v15  ;;  %v772_v39 = vor.u32 %v770_v11, %v769_v22  ;;  %v773_v40 = vrot.slane %v769_v22, 4 }
  0x5b   : > { %998 = vst.msk [vmem:[#allocation2 + $0x58] sm:$0xf] %vm410_vm0, %v747_v36  ;;  %1001 = vst [vmem:[#allocation2 + $0x5c] sm:$0x1] %v1000_v38  ;;  %v780_v50 = vor.u32 %v778_v17, %v777_v47  ;;  %v782_v41 = vrot.slane %v777_v47, 4  ;;  %v1276_v43 = vor.u32 %v1275_v29, %v1271_v12  ;;  %v1280_v23 = vrot.slane %v1278_v25, 1 }
  0x5c   : > { %v1013_v42 = vld [vmem:[#allocation2 + $0x74] sm:$0x1]  ;;  %v1082_v24 = vld [vmem:[#allocation2 + $0x64] sm:$0xf]  ;;  %v1010_v45 = vsel %vm5069_vm9, %v772_v39, %v1009_v28  ;;  %v1295_v46 = vshrl.u32 %v5164_v58, 16  ;;  %v1297_v48 = vshll.u32 %v5164_v58, 16  ;;  %v5253_v49 = vadd.f32 %v5033_v30, %v328_v32 }
  0x5d   : > { %v5255_v51 = vcombine.low %v1081_v34, %v1082_v24  ;;  %v5257_v53 = vld [vmem:[#allocation2 + $0x68] ss:$0 sps:$4 sm:$0x11]   ;;  %v4112_v56 = vcombine.low %v1121_v35, %v1082_v24  ;;  %v781_v57 = vsel %vm5076_vm10, %v773_v40, %v780_v50  ;;  %1011 = vst [vmem:[#allocation2 + $0x6c] sm:$0xf] %v1010_v45  ;;  %v1014_v63 = vsel %vm4984_vm3, %v782_v41, %v1013_v42 }
  0x5e   : > { %1012 = vst.msk [vmem:[#allocation2 + $0x70] sm:$0xf] %vm410_vm0, %v781_v57  ;;  %1015 = vst [vmem:[#allocation2 + $0x74] sm:$0x1] %v1014_v63  ;;  %v1281_v0 = vsel %vm1257_vm8, %v1276_v43, %v1280_v23  ;;  %v1299_v4 = vrot.slane %v1297_v48, 1  ;;  %v1302_v5 = vshll.u32 %v5166_v62, 16  ;;  %v5269_v59 = vadd.f32 %v5033_v30, %v329_v33 }
  0x5f   : > { %v1283_v6 = vshrl.u32 %v5125_v37, 16  ;;  %v1555_v8 = vrot.slane %v4112_v56, 1  ;;  %v1556_v9 = vrot.slane %v5257_v53, 1  ;;  %v1079_v10 = vld [vmem:[#allocation2 + $0x54] sm:$0xf]  ;;  %v4409_v11 = vunpack.c.l.bf16 %v4443_v44 }
  0x60   : > { %v1120_v12 = vld [vmem:[#allocation2 + $0x54] sm:$0xe]  ;;  %v1300_v13 = vor.u32 %v1299_v4, %v1295_v46  ;;  %v1304_v15 = vrot.slane %v1302_v5, 1  ;;  %v1285_v16 = vshll.u32 %v5125_v37, 16  ;;  %v1290_v17 = vshll.u32 %v5121_v31, 16 }
  0x61   : > { %v1557_v18 = vsel %vm1530_vm6, %v1555_v8, %v1556_v9  ;;  %v1319_v62 = vshrl.u32 %v5218_v60, 16  ;;  %v1321_v19 = vshll.u32 %v5218_v60, 16  ;;  %v1326_v20 = vshll.u32 %v5220_v26, 16 }
  0x62   : > { %1595 = vrot.lane.b32.xlu0 %v1557_v18, %s4940_s28  ;;  %v1080_v30 = vld [vmem:[#allocation2 + $0x58] sm:$0xf]  ;;  %v5279_v22 = vsel %vm1257_vm8, %v1300_v13, %v1304_v15  ;;  %v1287_v25 = vrot.slane %v1285_v16, 1  ;;  %v1292_v47 = vrot.slane %v1290_v17, 1  ;;  %v4410_v28 = vunpack.c.h.bf16 %v4443_v44 }
  0x63   : > { %v5281_v29 = vcombine.low %v1079_v10, %v1080_v30  ;;  %v4808_v31 = vld [vmem:[#allocation2 + $0x5c] ss:$0 sps:$4 sm:$0x11]   ;;  %v4111_v32 = vcombine.low %v1120_v12, %v1080_v30  ;;  %v1323_v33 = vrot.slane %v1321_v19, 1  ;;  %v1328_v34 = vrot.slane %v1326_v20, 1 }
  0x64   : > { %v1083_v35 = vld [vmem:[#allocation2 + $0x6c] sm:$0xf]  ;;  %v1288_v38 = vor.u32 %v1287_v25, %v1283_v6  ;;  %v1307_v26 = vshrl.u32 %v5150_v55, 16  ;;  %v1309_v39 = vshll.u32 %v5150_v55, 16  ;;  %v5286_v40 = vmul.f32 %v4409_v11, %v5018_v14  ;;  %v455_v19 = vld [vmem:[#allocation2 + $0x84] sm:$0x1] }
  0x65   : > { %v1122_v36 = vld [vmem:[#allocation2 + $0x6c] sm:$0xe]  ;;  %v1552_v50 = vrot.slane %v4111_v32, 1  ;;  %v1553_v41 = vrot.slane %v4808_v31, 1  ;;  %v1084_v42 = vld [vmem:[#allocation2 + $0x70] sm:$0xf]  ;;  %v1324_v43 = vor.u32 %v1323_v33, %v1319_v62  ;;  %v327_v23 = vmul.f32 %v4410_v28, %v5018_v14 }
  0x66   : > { %v5289_v44 = vcombine.low %v1083_v35, %v1084_v42  ;;  %v4811_v24 = vld [vmem:[#allocation2 + $0x74] ss:$0 sps:$4 sm:$0x11]   ;;  %v4113_v45 = vcombine.low %v1122_v36, %v1084_v42  ;;  %1452 = vrot.lane.b32.xlu0 %v1281_v0, %s4941_s29  ;;  %v1293_v46 = vsel %vm1257_vm8, %v1288_v38, %v1292_v47  ;;  %v1311_v48 = vrot.slane %v1309_v39, 1  ;;  %v511_v28 = vld [vmem:[#allocation2 + $0x8c] sm:$0x1] }
  0x67   : > { %v1554_v56 = vsel %vm1530_vm6, %v1552_v50, %v1553_v41  ;;  %v5295_v57 = vsel %vm1257_vm8, %v1324_v43, %v1328_v34  ;;  %v1314_v63 = vshll.u32 %v5152_v7, 16  ;;  %v1343_v4 = vshrl.u32 %v5281_v29, 16 }
  0x68   : > { %1593 = vrot.lane.b32.xlu1 %v1554_v56, %s4940_s28  ;;  %v1558_v14 = vrot.slane %v4113_v45, 1  ;;  %v1559_v5 = vrot.slane %v4811_v24, 1  ;;  %v1312_v6 = vor.u32 %v1311_v48, %v1307_v26  ;;  %v1345_v8 = vshll.u32 %v5281_v29, 16  ;;  %v508_v56 = vld [vmem:[#allocation2 + $0x80] sm:$0x1] }
  0x69   : > { %v1316_v0 = vrot.slane %v1314_v63, 1  ;;  %v1350_v9 = vshll.u32 %v4808_v31, 16  ;;  %v1331_v10 = vshrl.u32 %v5201_v54, 16  ;;  %v1333_v11 = vshll.u32 %v5201_v54, 16  ;;  %v4446_v63 = vld [vmem:[%s5013_s23 + $0x60] sm:$0xff]  }
  0x6a   : > { %v1560_v12 = vsel %vm1530_vm6, %v1558_v14, %v1559_v5  ;;  %1454 = vrot.lane.b32.xlu0 %v1293_v46, %s4941_s29  ;;  %v1347_v7 = vrot.slane %v1345_v8, 1  ;;  %v1338_v13 = vshll.u32 %v5208_v3, 16  ;;  %v1367_v15 = vshrl.u32 %v5289_v44, 16  ;;  %v5330_v46 = vld [vmem:[%s6545_s2] ss:$0 sm:$0xff] }
  0x6b   : > { %v1317_v16 = vsel %vm1257_vm8, %v1312_v6, %v1316_v0  ;;  %v1352_v17 = vrot.slane %v1350_v9, 1  ;;  %v1335_v18 = vrot.slane %v1333_v11, 1  ;;  %v1369_v62 = vshll.u32 %v5289_v44, 16  ;;  %v461_v8 = vld [vmem:[#allocation2 + $0x9c] sm:$0x1] }
  0x6c   : > { %1597 = vrot.lane.b32.xlu1 %v1560_v12, %s4940_s28  ;;  %v1348_v20 = vor.u32 %v1347_v7, %v1343_v4  ;;  %v1340_v30 = vrot.slane %v1338_v13, 1  ;;  %v1374_v25 = vshll.u32 %v4811_v24, 16  ;;  %v1355_v47 = vshrl.u32 %v5255_v51, 16 }
  0x6d   : > { %v1336_v31 = vor.u32 %v1335_v18, %v1331_v10  ;;  %v1371_v32 = vrot.slane %v1369_v62, 1  ;;  %v1357_v3 = vshll.u32 %v5255_v51, 16  ;;  %v1362_v33 = vshll.u32 %v5257_v53, 16  ;;  %v517_v18 = vld [vmem:[#allocation2 + $0xa4] sm:$0x1] }
  0x6e   : > { %1458 = vrot.lane.b32.xlu0 %v1317_v16, %s4941_s29  ;;  %v1353_v34 = vsel %vm1257_vm8, %v1348_v20, %v1352_v17  ;;  %v1376_v35 = vrot.slane %v1374_v25, 1  ;;  %v398_v36 = vmax.f32 %v5253_v49, 0.0  ;;  %v399_v38 = vmax.f32 %v5269_v59, 0.0  ;;  %v452_v49 = vld [vmem:[#allocation2 + $0x78] sm:$0x1] }
  0x6f   : > { %v1341_v26 = vsel %vm1257_vm8, %v1336_v31, %v1340_v30  ;;  %v1372_v39 = vor.u32 %v1371_v32, %v1367_v15  ;;  %v1359_v50 = vrot.slane %v1357_v3, 1  ;;  %v1364_v41 = vrot.slane %v1362_v33, 1  ;;  %v4445_v31 = vld [vmem:[%s5013_s23 + $0x58] sm:$0xff]  }
  0x70   : > { %1456 = vrot.lane.b32.xlu1 %v5279_v22, %s4941_s29  ;;  %v456_v53 = vsel %vm4984_vm3, 0, %v455_v19  ;;  %v512_v42 = vsel %vm4991_vm5, 0, %v511_v28  ;;  %v4327_v43 = vpack.c.bf16 %v398_v36, %v398_v36  ;;  %v4328_v24 = vpack.c.bf16 %v399_v38, %v399_v38 }
  0x71   : > { %v5325_v59 = vsel %vm1257_vm8, %v1372_v39, %v1376_v35  ;;  %v1360_v45 = vor.u32 %v1359_v50, %v1355_v47  ;;  %457 = vst [vmem:[#allocation2 + $0x84] sm:$0x1] %v456_v53  ;;  %513 = vst [vmem:[#allocation2 + $0x8c] sm:$0x1] %v512_v42  ;;  %v364_v22 = vadd.f32 %v5330_v46, %v5286_v40  ;;  %v453_v11 = vsel %vm4984_vm3, 0, %v452_v49 }
  0x72   : > { %v365_v48 = vadd.f32 %v5330_v46, %v327_v23  ;;  %1462 = vrot.lane.b32.xlu0 %v1341_v26, %s4941_s29  ;;  %v801_v4 = vshrl.u32 %v4327_v43, 16  ;;  %v804_v14 = vshll.u32 %v4327_v43, 16  ;;  %v809_v5 = vshrl.u32 %v4328_v24, 16  ;;  %454 = vst [vmem:[#allocation2 + $0x78] sm:$0x1] %v453_v11 }
  0x73   : > { %v812_v6 = vshll.u32 %v4328_v24, 16  ;;  %v1365_v0 = vsel %vm1257_vm8, %v1360_v45, %v1364_v41  ;;  %v396_v9 = vmax.f32 %v364_v22, 0.0  ;;  %v509_v12 = vsel %vm4991_vm5, 0, %v508_v56  ;;  %v5354_v35 = vld [vmem:[%s6544_s1] ss:$0 sm:$0xff]  ;;  %v4448_v22 = vld [vmem:[%s5013_s23 + $0x70] sm:$0xff]  }
  0x74   : > { %v397_v10 = vmax.f32 %v365_v48, 0.0  ;;  %1460 = vrot.lane.b32.xlu1 %v5295_v57, %s4941_s29  ;;  %v803_v40 = vrot.slane %v801_v4, 7  ;;  %v811_v23 = vrot.slane %v809_v5, 7  ;;  %v4421_v7 = vunpack.c.l.bf16 %v4446_v63  ;;  %510 = vst [vmem:[#allocation2 + $0x80] sm:$0x1] %v509_v12 }
  0x75   : > { %v4325_v13 = vpack.c.bf16 %v396_v9, %v396_v9  ;;  %v4422_v16 = vunpack.c.h.bf16 %v4446_v63  ;;  %v462_v17 = vsel %vm4984_vm3, 0, %v461_v8  ;;  %v518_v26 = vsel %vm4991_vm5, 0, %v517_v18  ;;  %v458_v49 = vld [vmem:[#allocation2 + $0x90] sm:$0x1]  ;;  %v514_v45 = vld [vmem:[#allocation2 + $0x98] sm:$0x1] }
  0x76   : > { %v4326_v15 = vpack.c.bf16 %v397_v10, %v397_v10  ;;  %1466 = vrot.lane.b32.xlu0 %v1365_v0, %s4941_s29  ;;  %v806_v62 = vor.u32 %v804_v14, %v803_v40  ;;  %v807_v57 = vrot.slane %v803_v40, 4  ;;  %v814_v19 = vor.u32 %v812_v6, %v811_v23  ;;  %463 = vst [vmem:[#allocation2 + $0x9c] sm:$0x1] %v462_v17  ;;  %v467_v10 = vld [vmem:[#allocation2 + $0xb4] sm:$0x1] }
  0x77   : > { %v816_v20 = vrot.slane %v811_v23, 4  ;;  %v784_v30 = vshrl.u32 %v4325_v13, 16  ;;  %v787_v25 = vshll.u32 %v4325_v13, 16  ;;  %v332_v36 = vmul.f32 %v5354_v35, %v4421_v7  ;;  %519 = vst [vmem:[#allocation2 + $0xa4] sm:$0x1] %v518_v26 }
  0x78   : > { %v792_v47 = vshrl.u32 %v4326_v15, 16  ;;  %v795_v28 = vshll.u32 %v4326_v15, 16  ;;  %1464 = vrot.lane.b32.xlu1 %v1353_v34, %s4941_s29  ;;  %v815_v32 = vsel %vm5076_vm10, %v807_v57, %v814_v19  ;;  %v1023_v3 = vld [vmem:[#allocation2 + $0x84] sm:$0xf]  ;;  %v1027_v33 = vld [vmem:[#allocation2 + $0x8c] sm:$0x1]  ;;  %v333_v38 = vmul.f32 %v5354_v35, %v4422_v16 }
  0x79   : > { %v1024_v34 = vsel %vm5069_vm9, %v806_v62, %v1023_v3  ;;  %1026 = vst.msk [vmem:[#allocation2 + $0x88] sm:$0xf] %vm410_vm0, %v815_v32  ;;  %v1028_v39 = vsel %vm4984_vm3, %v816_v20, %v1027_v33  ;;  %v786_v50 = vrot.slane %v784_v30, 7  ;;  %v370_v53 = vadd.f32 %v5330_v46, %v332_v36  ;;  %v1016_v14 = vld [vmem:[#allocation2 + $0x78] sm:$0xf]  ;;  %v5384_v16 = vld [vmem:[%s5013_s23 + $0x68] sm:$0xff]  }
  0x7a   : > { %v794_v41 = vrot.slane %v792_v47, 7  ;;  %1025 = vst [vmem:[#allocation2 + $0x84] sm:$0xf] %v1024_v34  ;;  %1029 = vst [vmem:[#allocation2 + $0x8c] sm:$0x1] %v1028_v39  ;;  %v371_v42 = vadd.f32 %v5330_v46, %v333_v38  ;;  %v4417_v43 = vunpack.c.l.bf16 %v4445_v31  ;;  %v4418_v24 = vunpack.c.h.bf16 %v4445_v31 }
  0x7b   : > { %v789_v48 = vor.u32 %v787_v25, %v786_v50  ;;  %v790_v56 = vrot.slane %v786_v50, 4  ;;  %v1020_v5 = vld [vmem:[#allocation2 + $0x80] sm:$0x1]  ;;  %v402_v6 = vmax.f32 %v370_v53, 0.0  ;;  %v515_v17 = vsel %vm4991_vm5, 0, %v514_v45 }
  0x7c   : > { %v797_v63 = vor.u32 %v795_v28, %v794_v41  ;;  %v799_v4 = vrot.slane %v794_v41, 4  ;;  %1468 = vrot.lane.b32.xlu1 %v5325_v59, %s4941_s29  ;;  %v403_v8 = vmax.f32 %v371_v42, 0.0  ;;  %v330_v0 = vmul.f32 %v5354_v35, %v4417_v43  ;;  %516 = vst [vmem:[#allocation2 + $0x98] sm:$0x1] %v515_v17 }
  0x7d   : > { %v331_v9 = vmul.f32 %v5354_v35, %v4418_v24  ;;  %v1017_v40 = vsel %vm5069_vm9, %v789_v48, %v1016_v14  ;;  %v459_v59 = vsel %vm4984_vm3, 0, %v458_v49  ;;  %v4331_v12 = vpack.c.bf16 %v402_v6, %v402_v6  ;;  %v1037_v48 = vld [vmem:[#allocation2 + $0x9c] sm:$0xf] }
  0x7e   : > { %v798_v11 = vsel %vm5076_vm10, %v790_v56, %v797_v63  ;;  %v1021_v23 = vsel %vm4984_vm3, %v799_v4, %v1020_v5  ;;  %1018 = vst [vmem:[#allocation2 + $0x78] sm:$0xf] %v1017_v40  ;;  %v4332_v7 = vpack.c.bf16 %v403_v8, %v403_v8  ;;  %v368_v13 = vadd.f32 %v5330_v46, %v330_v0  ;;  %v1041_v5 = vld [vmem:[#allocation2 + $0xa4] sm:$0x1] }
  0x7f   : > { %1019 = vst.msk [vmem:[#allocation2 + $0x7c] sm:$0xf] %vm410_vm0, %v798_v11  ;;  %1022 = vst [vmem:[#allocation2 + $0x80] sm:$0x1] %v1021_v23  ;;  %v369_v15 = vadd.f32 %v5330_v46, %v331_v9  ;;  %v4429_v18 = vunpack.c.l.bf16 %v4448_v22  ;;  %v4430_v62 = vunpack.c.h.bf16 %v4448_v22  ;;  %v468_v57 = vsel %vm4984_vm3, 0, %v467_v10 }
  0x80   : > { %460 = vst [vmem:[#allocation2 + $0x90] sm:$0x1] %v459_v59  ;;  %v1088_v19 = vld [vmem:[#allocation2 + $0x88] sm:$0xf]  ;;  %v835_v20 = vshrl.u32 %v4331_v12, 16  ;;  %v838_v30 = vshll.u32 %v4331_v12, 16  ;;  %v4425_v33 = vunpack.c.l.bf16 %v5384_v16  ;;  %v4426_v36 = vunpack.c.h.bf16 %v5384_v16 }
  0x81   : > { %v843_v25 = vshrl.u32 %v4332_v7, 16  ;;  %v846_v47 = vshll.u32 %v4332_v7, 16  ;;  %469 = vst [vmem:[#allocation2 + $0xb4] sm:$0x1] %v468_v57  ;;  %v1087_v28 = vld [vmem:[#allocation2 + $0x84] sm:$0xf]  ;;  %v336_v32 = vmul.f32 %v5354_v35, %v4429_v18  ;;  %v337_v3 = vmul.f32 %v5354_v35, %v4430_v62 }
  0x82   : > { %v1124_v31 = vld [vmem:[#allocation2 + $0x84] sm:$0xe]  ;;  %v5394_v38 = vcombine.low %v1087_v28, %v1088_v19  ;;  %v4814_v26 = vld [vmem:[#allocation2 + $0x8c] ss:$0 sps:$4 sm:$0x11]   ;;  %v837_v39 = vrot.slane %v835_v20, 7 }
  0x83   : > { %v4115_v34 = vcombine.low %v1124_v31, %v1088_v19  ;;  %v845_v50 = vrot.slane %v843_v25, 7  ;;  %v400_v41 = vmax.f32 %v368_v13, 0.0  ;;  %v401_v53 = vmax.f32 %v369_v15, 0.0 }
  0x84   : > { %v374_v42 = vadd.f32 %v5330_v46, %v336_v32  ;;  %v375_v43 = vadd.f32 %v5330_v46, %v337_v3  ;;  %v1391_v24 = vshrl.u32 %v5394_v38, 16  ;;  %v1393_v49 = vshll.u32 %v5394_v38, 16 }
  0x85   : > { %v1398_v45 = vshll.u32 %v4814_v26, 16  ;;  %v1564_v22 = vrot.slane %v4115_v34, 1  ;;  %v1085_v56 = vld [vmem:[#allocation2 + $0x78] sm:$0xf]  ;;  %v840_v4 = vor.u32 %v838_v30, %v837_v39  ;;  %v848_v14 = vor.u32 %v846_v47, %v845_v50 }
  0x86   : > { %v1086_v63 = vld [vmem:[#allocation2 + $0x7c] sm:$0xf]  ;;  %v4329_v6 = vpack.c.bf16 %v400_v41, %v400_v41  ;;  %v4330_v8 = vpack.c.bf16 %v401_v53, %v401_v53  ;;  %v1395_v0 = vrot.slane %v1393_v49, 1  ;;  %v4816_v11 = vld [vmem:[#allocation2 + $0x80] ss:$0 sps:$4 sm:$0x11]  }
  0x87   : > { %v1400_v9 = vrot.slane %v1398_v45, 1  ;;  %v5400_v10 = vcombine.low %v1085_v56, %v1086_v63  ;;  %v1565_v40 = vrot.slane %v4814_v26, 1  ;;  %v1123_v23 = vld [vmem:[#allocation2 + $0x78] sm:$0xe]  ;;  %v841_v59 = vrot.slane %v837_v39, 4 }
  0x88   : > { %v850_v12 = vrot.slane %v845_v50, 4  ;;  %v1038_v7 = vsel %vm5069_vm9, %v840_v4, %v1037_v48  ;;  %v818_v13 = vshrl.u32 %v4329_v6, 16  ;;  %v1396_v15 = vor.u32 %v1395_v0, %v1391_v24  ;;  %v523_v39 = vld [vmem:[#allocation2 + $0xbc] sm:$0x1]  ;;  %v1030_v53 = vld [vmem:[#allocation2 + $0x90] sm:$0xf] }
  0x89   : > { %v1379_v17 = vshrl.u32 %v5400_v10, 16  ;;  %v1381_v18 = vshll.u32 %v5400_v10, 16  ;;  %v1386_v62 = vshll.u32 %v4816_v11, 16  ;;  %1039 = vst [vmem:[#allocation2 + $0x9c] sm:$0xf] %v1038_v7  ;;  %v1566_v57 = vsel %vm1530_vm6, %v1564_v22, %v1565_v40 }
  0x8a   : > { %v4114_v19 = vcombine.low %v1123_v23, %v1086_v63  ;;  %v1562_v20 = vrot.slane %v4816_v11, 1  ;;  %v849_v30 = vsel %vm5076_vm10, %v841_v59, %v848_v14  ;;  %v1401_v25 = vsel %vm1257_vm8, %v1396_v15, %v1400_v9  ;;  %v1034_v4 = vld [vmem:[#allocation2 + $0x98] sm:$0x1]  ;;  %v464_v7 = vld [vmem:[#allocation2 + $0xa8] sm:$0x1] }
  0x8b   : > { %v1383_v47 = vrot.slane %v1381_v18, 1  ;;  %v1388_v28 = vrot.slane %v1386_v62, 1  ;;  %1040 = vst.msk [vmem:[#allocation2 + $0xa0] sm:$0xf] %vm410_vm0, %v849_v30  ;;  %v1042_v31 = vsel %vm4984_vm3, %v850_v12, %v1041_v5  ;;  %1472 = vrot.lane.b32.xlu1 %v1401_v25, %s4941_s29  ;;  %v820_v3 = vrot.slane %v818_v13, 7 }
  0x8c   : > { %v1561_v32 = vrot.slane %v4114_v19, 1  ;;  %1043 = vst [vmem:[#allocation2 + $0xa4] sm:$0x1] %v1042_v31  ;;  %v821_v26 = vshll.u32 %v4329_v6, 16  ;;  %v826_v34 = vshrl.u32 %v4330_v8, 16  ;;  %v829_v41 = vshll.u32 %v4330_v8, 16 }
  0x8d   : > { %v1384_v50 = vor.u32 %v1383_v47, %v1379_v17  ;;  %v406_v24 = vmax.f32 %v374_v42, 0.0  ;;  %v407_v49 = vmax.f32 %v375_v43, 0.0  ;;  %v824_v48 = vrot.slane %v820_v3, 4  ;;  %v520_v47 = vld [vmem:[#allocation2 + $0xb0] sm:$0x1] }
  0x8e   : > { %v1563_v45 = vsel %vm1530_vm6, %v1561_v32, %v1562_v20  ;;  %v823_v22 = vor.u32 %v821_v26, %v820_v3  ;;  %v828_v56 = vrot.slane %v826_v34, 7  ;;  %v524_v14 = vsel %vm4991_vm5, 0, %v523_v39  ;;  %v1051_v31 = vld [vmem:[#allocation2 + $0xb4] sm:$0xf] }
  0x8f   : > { %v1389_v63 = vsel %vm1257_vm8, %v1384_v50, %v1388_v28  ;;  %v4335_v5 = vpack.c.bf16 %v406_v24, %v406_v24  ;;  %v4336_v6 = vpack.c.bf16 %v407_v49, %v407_v49  ;;  %1601 = vrot.lane.b32.xlu1 %v1566_v57, %s4940_s28  ;;  %525 = vst [vmem:[#allocation2 + $0xbc] sm:$0x1] %v524_v14  ;;  %v465_v16 = vsel %vm4984_vm3, 0, %v464_v7 }
  0x90   : > { %1470 = vrot.lane.b32.xlu0 %v1389_v63, %s4941_s29  ;;  %v1091_v8 = vld [vmem:[#allocation2 + $0x9c] sm:$0xf]  ;;  %v831_v42 = vor.u32 %v829_v41, %v828_v56  ;;  %v833_v43 = vrot.slane %v828_v56, 4  ;;  %v1031_v0 = vsel %vm5069_vm9, %v823_v22, %v1030_v53  ;;  %v334_v11 = vmul.f32 %v5354_v35, %v4425_v33  ;;  %466 = vst [vmem:[#allocation2 + $0xa8] sm:$0x1] %v465_v16 }
  0x91   : > { %v1126_v9 = vld [vmem:[#allocation2 + $0x9c] sm:$0xe]  ;;  %1032 = vst [vmem:[#allocation2 + $0x90] sm:$0xf] %v1031_v0  ;;  %v869_v40 = vshrl.u32 %v4335_v5, 16  ;;  %v872_v23 = vshll.u32 %v4335_v5, 16  ;;  %v335_v18 = vmul.f32 %v5354_v35, %v4426_v36 }
  0x92   : > { %v877_v59 = vshrl.u32 %v4336_v6, 16  ;;  %v880_v12 = vshll.u32 %v4336_v6, 16  ;;  %v1092_v13 = vld [vmem:[#allocation2 + $0xa0] sm:$0xf]  ;;  %v832_v15 = vsel %vm5076_vm10, %v824_v48, %v831_v42  ;;  %v1035_v17 = vsel %vm4984_vm3, %v833_v43, %v1034_v4  ;;  %v2695_v42 = vld [vmem:[#allocation2 + $0x18] sm:$0xf] }
  0x93   : > { %v372_v62 = vadd.f32 %v5330_v46, %v334_v11  ;;  %v5433_v33 = vcombine.low %v1091_v8, %v1092_v13  ;;  %v4819_v57 = vld [vmem:[#allocation2 + $0xa4] ss:$0 sps:$4 sm:$0x11]   ;;  %1033 = vst.msk [vmem:[#allocation2 + $0x94] sm:$0xf] %vm410_vm0, %v832_v15  ;;  %v4117_v19 = vcombine.low %v1126_v9, %v1092_v13  ;;  %v871_v20 = vrot.slane %v869_v40, 7 }
  0x94   : > { %1036 = vst [vmem:[#allocation2 + $0x98] sm:$0x1] %v1035_v17  ;;  %1599 = vrot.lane.b32.xlu0 %v1563_v45, %s4940_s28  ;;  %v879_v30 = vrot.slane %v877_v59, 7  ;;  %v373_v25 = vadd.f32 %v5330_v46, %v335_v18  ;;  %v1422_v28 = vshll.u32 %v4819_v57, 16  ;;  %v1571_v45 = vrot.slane %v4819_v57, 1 }
  0x95   : > { %v1415_v35 = vshrl.u32 %v5433_v33, 16  ;;  %v1417_v36 = vshll.u32 %v5433_v33, 16  ;;  %v404_v32 = vmax.f32 %v372_v62, 0.0  ;;  %v1570_v3 = vrot.slane %v4117_v19, 1 }
  0x96   : > { %v874_v26 = vor.u32 %v872_v23, %v871_v20  ;;  %v875_v34 = vrot.slane %v871_v20, 4  ;;  %v882_v39 = vor.u32 %v880_v12, %v879_v30  ;;  %v1424_v41 = vrot.slane %v1422_v28, 1  ;;  %v1055_v46 = vld [vmem:[#allocation2 + $0xbc] sm:$0x1] }
  0x97   : > { %v1419_v50 = vrot.slane %v1417_v36, 1  ;;  %v884_v53 = vrot.slane %v879_v30, 4  ;;  %v405_v24 = vmax.f32 %v373_v25, 0.0  ;;  %v521_v63 = vsel %vm4991_vm5, 0, %v520_v47  ;;  %v5454_v23 = vld [vmem:[#allocation2 + $0x1c] sm:$0xf] }
  0x98   : > { %v1089_v49 = vld [vmem:[#allocation2 + $0x90] sm:$0xf]  ;;  %v883_v48 = vsel %vm5076_vm10, %v875_v34, %v882_v39  ;;  %v1052_v56 = vsel %vm5069_vm9, %v874_v26, %v1051_v31  ;;  %522 = vst [vmem:[#allocation2 + $0xb0] sm:$0x1] %v521_v63  ;;  %v4333_v5 = vpack.c.bf16 %v404_v32, %v404_v32  ;;  %v1572_v18 = vsel %vm1530_vm6, %v1570_v3, %v1571_v45  ;;  %v1044_v19 = vld [vmem:[#allocation2 + $0xa8] sm:$0xf] }
  0x99   : > { %v1125_v22 = vld [vmem:[#allocation2 + $0x90] sm:$0xe]  ;;  %v1420_v4 = vor.u32 %v1419_v50, %v1415_v35  ;;  %1053 = vst [vmem:[#allocation2 + $0xb4] sm:$0xf] %v1052_v56  ;;  %1054 = vst.msk [vmem:[#allocation2 + $0xb8] sm:$0xf] %vm410_vm0, %v883_v48  ;;  %v1056_v14 = vsel %vm4984_vm3, %v884_v53, %v1055_v46  ;;  %v4334_v6 = vpack.c.bf16 %v405_v24, %v405_v24 }
  0x9a   : > { %v1090_v8 = vld [vmem:[#allocation2 + $0x94] sm:$0xf]  ;;  %1057 = vst [vmem:[#allocation2 + $0xbc] sm:$0x1] %v1056_v14  ;;  %v852_v40 = vshrl.u32 %v4333_v5, 16  ;;  %v855_v59 = vshll.u32 %v4333_v5, 16  ;;  %v5461_v20 = vcombine.low %v2695_v42, %v5454_v23 }
  0x9b   : > { %v1425_v43 = vsel %vm1257_vm8, %v1420_v4, %v1424_v41  ;;  %v5452_v0 = vcombine.low %v1089_v49, %v1090_v8  ;;  %v4821_v9 = vld [vmem:[#allocation2 + $0x98] ss:$0 sps:$4 sm:$0x11]   ;;  %v4116_v11 = vcombine.low %v1125_v22, %v1090_v8  ;;  %v860_v12 = vshrl.u32 %v4334_v6, 16  ;;  %v1679_v14 = vld [vmem:[#allocation2 + $0xc] sm:$0xf] }
  0x9c   : > { %1476 = vrot.lane.b32.xlu1 %v1425_v43, %s4941_s29  ;;  %v863_v7 = vshll.u32 %v4334_v6, 16  ;;  %v1410_v17 = vshll.u32 %v4821_v9, 16  ;;  %v854_v62 = vrot.slane %v852_v40, 7  ;;  %v5463_v47 = vld [vmem:[#allocation2 + $0x20] ss:$0 sps:$4 sm:$0x11]  }
  0x9d   : > { %v1403_v13 = vshrl.u32 %v5452_v0, 16  ;;  %v1405_v15 = vshll.u32 %v5452_v0, 16  ;;  %v862_v57 = vrot.slane %v860_v12, 7  ;;  %v1567_v16 = vrot.slane %v4116_v11, 1  ;;  %v1680_v43 = vld [vmem:[#allocation2 + $0x10] sm:$0xf] }
  0x9e   : > { %v1412_v25 = vrot.slane %v1410_v17, 1  ;;  %v1568_v35 = vrot.slane %v4821_v9, 1  ;;  %v857_v31 = vor.u32 %v855_v59, %v854_v62  ;;  %v858_v32 = vrot.slane %v854_v62, 4  ;;  %v5487_v62 = vld [vmem:[#allocation2 + $0x1c] sm:$0xf] }
  0x9f   : > { %v1407_v30 = vrot.slane %v1405_v15, 1  ;;  %v865_v26 = vor.u32 %v863_v7, %v862_v57  ;;  %v867_v50 = vrot.slane %v862_v57, 4  ;;  %v1048_v46 = vld [vmem:[#allocation2 + $0xb0] sm:$0x1]  ;;  %v2890_v49 = vshll.u32 %v5461_v20, 16 }
  0xa0   : > { %1605 = vrot.lane.b32.xlu1 %v1572_v18, %s4940_s28  ;;  %v1095_v36 = vld [vmem:[#allocation2 + $0xb4] sm:$0xf]  ;;  %v1096_v28 = vld [vmem:[#allocation2 + $0xb8] sm:$0xf]  ;;  %v1045_v53 = vsel %vm5069_vm9, %v857_v31, %v1044_v19  ;;  %v1569_v5 = vsel %vm1530_vm6, %v1567_v16, %v1568_v35  ;;  %v2895_v42 = vshll.u32 %v5463_v47, 16  ;;  %v2888_v9 = vshrl.u32 %v5461_v20, 16 }
  0xa1   : > { %v1408_v3 = vor.u32 %v1407_v30, %v1403_v13  ;;  %v5466_v34 = vcombine.low %v1095_v36, %v1096_v28  ;;  %v4824_v39 = vld [vmem:[#allocation2 + $0xbc] ss:$0 sps:$4 sm:$0x11]   ;;  %v866_v41 = vsel %vm5076_vm10, %v858_v32, %v865_v26  ;;  %v1128_v24 = vld [vmem:[#allocation2 + $0xb4] sm:$0xe]  ;;  %v1049_v63 = vsel %vm4984_vm3, %v867_v50, %v1048_v46 }
  0xa2   : > { %v1446_v56 = vshll.u32 %v4824_v39, 16  ;;  %1046 = vst [vmem:[#allocation2 + $0xa8] sm:$0xf] %v1045_v53  ;;  %1047 = vst.msk [vmem:[#allocation2 + $0xac] sm:$0xf] %vm410_vm0, %v866_v41  ;;  %v4119_v4 = vcombine.low %v1128_v24, %v1096_v28  ;;  %v2892_v11 = vrot.slane %v2890_v49, 1  ;;  %v5484_v7 = vcombine.low %v1679_v14, %v1680_v43 }
  0xa3   : > { %v1413_v45 = vsel %vm1257_vm8, %v1408_v3, %v1412_v25  ;;  %v1439_v22 = vshrl.u32 %v5466_v34, 16  ;;  %v1441_v48 = vshll.u32 %v5466_v34, 16  ;;  %1050 = vst [vmem:[#allocation2 + $0xb0] sm:$0x1] %v1049_v63  ;;  %v1577_v12 = vrot.slane %v4824_v39, 1 }
  0xa4   : > { %1474 = vrot.lane.b32.xlu0 %v1413_v45, %s4941_s29  ;;  %v1448_v8 = vrot.slane %v1446_v56, 1  ;;  %v1576_v59 = vrot.slane %v4119_v4, 1  ;;  %6571 = vst [vmem:[#allocation3_spill] sm:$0xff] %v5484_v7  ;;  %v1727_v13 = vld [vmem:[#allocation2 + $0xc] sm:$0xe]  ;;  %v2897_v18 = vrot.slane %v2895_v42, 1  ;;  %v2893_v16 = vor.u32 %v2892_v11, %v2888_v9 }
  0xa5   : > { %v1443_v6 = vrot.slane %v1441_v48, 1  ;;  %v1681_v15 = vld [vmem:[#allocation2 + $0x18] sm:$0xf]  ;;  %v4831_v35 = vld [vmem:[#allocation2 + $0x14] ss:$0 sps:$4 sm:$0x11]   ;;  %v4152_v31 = vcombine.low %v1727_v13, %v1680_v43 }
  0xa6   : > { %v2743_v57 = vld [vmem:[#allocation2 + $0x18] sm:$0xe]  ;;  %v1578_v28 = vsel %vm1530_vm6, %v1576_v59, %v1577_v12  ;;  %v2699_v32 = vld [vmem:[#allocation2 + $0x30] sm:$0xf]  ;;  %v5493_v26 = vld [vmem:[#allocation2 + $0x34] sm:$0xf]  ;;  %v5497_v50 = vcombine.low %v1681_v15, %v5487_v62  ;;  %v2898_v45 = vsel %vm1257_vm8, %v2893_v16, %v2897_v18 }
  0xa7   : > { %v1444_v40 = vor.u32 %v1443_v6, %v1439_v22  ;;  %v1874_v39 = vshll.u32 %v5484_v7, 16  ;;  %v2697_v24 = vld [vmem:[#allocation2 + $0x24] sm:$0xf]  ;;  %v1872_v22 = vshrl.u32 %v5484_v7, 16  ;;  %v4236_v56 = vcombine.low %v2743_v57, %v5454_v23  ;;  %v2698_v63 = vld [vmem:[#allocation2 + $0x28] sm:$0xf] }
  0xa8   : > { %1603 = vrot.lane.b32.xlu0 %v1569_v5, %s4940_s28  ;;  %6572 = vst [vmem:[#allocation4_spill] sm:$0xff] %v5497_v50  ;;  %v5504_v48 = vld [vmem:[#allocation2 + $0x20] ss:$0 sps:$4 sm:$0x11]   ;;  %v2744_v4 = vld [vmem:[#allocation2 + $0x24] sm:$0xe]  ;;  %v5511_v13 = vcombine.low %v2697_v24, %v2698_v63 }
  0xa9   : > { %v1449_v17 = vsel %vm1257_vm8, %v1444_v40, %v1448_v8  ;;  %v1093_v19 = vld [vmem:[#allocation2 + $0xa8] sm:$0xf]  ;;  %v1094_v30 = vld [vmem:[#allocation2 + $0xac] sm:$0xf]  ;;  %v2143_v5 = vrot.slane %v4152_v31, 1  ;;  %v2144_v6 = vrot.slane %v4831_v35, 1  ;;  %v5508_v8 = vcombine.low %v2699_v32, %v5493_v26 }
  0xaa   : > { %1480 = vrot.lane.b32.xlu1 %v1449_v17, %s4941_s29  ;;  %v1127_v25 = vld [vmem:[#allocation2 + $0xa8] sm:$0xe]  ;;  %v5490_v36 = vcombine.low %v1093_v19, %v1094_v30  ;;  %v4826_v3 = vld [vmem:[#allocation2 + $0xb0] ss:$0 sps:$4 sm:$0x11]   ;;  %v1876_v43 = vrot.slane %v1874_v39, 1  ;;  %v4237_v17 = vcombine.low %v2744_v4, %v2698_v63 }
  0xab   : > { %v4118_v46 = vcombine.low %v1127_v25, %v1094_v30  ;;  %v1434_v49 = vshll.u32 %v4826_v3, 16  ;;  %6573 = vst [vmem:[#allocation5_spill] sm:$0xff] %v5508_v8  ;;  %v1879_v9 = vshll.u32 %v4831_v35, 16  ;;  %v1886_v11 = vshll.u32 %v5497_v50, 16  ;;  %6574 = vst [vmem:[#allocation6_spill] sm:$0xff] %v5511_v13 }
  0xac   : > { %v1427_v41 = vshrl.u32 %v5490_v36, 16  ;;  %v1429_v53 = vshll.u32 %v5490_v36, 16  ;;  %v1574_v12 = vrot.slane %v4826_v3, 1  ;;  %v3159_v23 = vrot.slane %v4236_v56, 1 }
  0xad   : > { %v1436_v42 = vrot.slane %v1434_v49, 1  ;;  %v1573_v59 = vrot.slane %v4118_v46, 1  ;;  %v3160_v15 = vrot.slane %v5463_v47, 1  ;;  %v5515_v18 = vld [vmem:[#allocation2 + $0x38] ss:$0 sps:$4 sm:$0x11]   ;;  %v2145_v19 = vsel %vm1530_vm6, %v2143_v5, %v2144_v6 }
  0xae   : > { %1609 = vrot.lane.b32.xlu1 %v1578_v28, %s4940_s28  ;;  %v1431_v14 = vrot.slane %v1429_v53, 1  ;;  %v1884_v30 = vshrl.u32 %v5497_v50, 16  ;;  %v2914_v25 = vshll.u32 %v5508_v8, 16  ;;  %v1877_v16 = vor.u32 %v1876_v43, %v1872_v22  ;;  %v4837_v32 = vld [vmem:[#allocation2 + $0x2c] ss:$0 sps:$4 sm:$0x11]  }
  0xaf   : > { %v1881_v35 = vrot.slane %v1879_v9, 1  ;;  %v1888_v28 = vrot.slane %v1886_v11, 1  ;;  %v1891_v31 = vshll.u32 %v5504_v48, 16  ;;  %v1575_v47 = vsel %vm1530_vm6, %v1573_v59, %v1574_v12  ;;  %v1683_v53 = vld [vmem:[#allocation2 + $0x24] sm:$0xf] }
  0xb0   : > { %v1432_v40 = vor.u32 %v1431_v14, %v1427_v41  ;;  %v2902_v3 = vshll.u32 %v5511_v13, 16  ;;  %v3161_v39 = vsel %vm1530_vm6, %v3159_v23, %v3160_v15  ;;  %v3162_v41 = vrot.slane %v4237_v17, 1  ;;  %v1684_v46 = vld [vmem:[#allocation2 + $0x28] sm:$0xf]  ;;  %v1728_v49 = vld [vmem:[#allocation2 + $0x18] sm:$0xe] }
  0xb1   : > { %v3163_v24 = vrot.slane %v4837_v32, 1  ;;  %v2916_v22 = vrot.slane %v2914_v25, 1  ;;  %v2919_v56 = vshll.u32 %v5515_v18, 16  ;;  %v1882_v63 = vsel %vm1257_vm8, %v1877_v16, %v1881_v35  ;;  %v1729_v5 = vld [vmem:[#allocation2 + $0x24] sm:$0xe] }
  0xb2   : > { %3079 = vrot.lane.b32.xlu1 %v2898_v45, %s4941_s29  ;;  %v1437_v57 = vsel %vm1257_vm8, %v1432_v40, %v1436_v42  ;;  %v2912_v45 = vshrl.u32 %v5508_v8, 16  ;;  %v1889_v4 = vor.u32 %v1888_v28, %v1884_v30  ;;  %v1893_v14 = vrot.slane %v1891_v31, 1  ;;  %v1685_v6 = vld [vmem:[#allocation2 + $0x30] sm:$0xf]  ;;  %v5534_v40 = vld [vmem:[#allocation2 + $0x34] sm:$0xf] }
  0xb3   : > { %1478 = vrot.lane.b32.xlu0 %v1437_v57, %s4941_s29  ;;  %v2900_v42 = vshrl.u32 %v5511_v13, 16  ;;  %v2904_v43 = vrot.slane %v2902_v3, 1  ;;  %v2907_v9 = vshll.u32 %v4837_v32, 16  ;;  %v5532_v11 = vcombine.low %v1683_v53, %v1684_v46  ;;  %v2745_v17 = vld [vmem:[#allocation2 + $0x30] sm:$0xe]  ;;  %v5547_v32 = vpop.permute.xlu0 %1450 }
  0xb4   : > { %v3164_v59 = vsel %vm1530_vm6, %v3162_v41, %v3163_v24  ;;  %v2917_v12 = vor.u32 %v2916_v22, %v2912_v45  ;;  %v2921_v23 = vrot.slane %v2919_v56, 1  ;;  %v4154_v15 = vcombine.low %v1729_v5, %v1684_v46  ;;  %v2703_v30 = vld [vmem:[#allocation2 + $0x48] sm:$0xf]  ;;  %v5543_v25 = vld [vmem:[#allocation2 + $0x4c] sm:$0xf] }
  0xb5   : > { %6575 = vst [vmem:[#allocation7_spill] sm:$0xff] %v5532_v11  ;;  %v4153_v57 = vcombine.low %v1728_v49, %v5487_v62  ;;  %v1894_v16 = vsel %vm1257_vm8, %v1889_v4, %v1893_v14  ;;  %v2905_v35 = vor.u32 %v2904_v43, %v2900_v42  ;;  %v2909_v28 = vrot.slane %v2907_v9, 1  ;;  %v4843_v31 = vld [vmem:[#allocation2 + $0x2c] ss:$0 sps:$4 sm:$0x11]  }
  0xb6   : > { %2191 = vrot.lane.b32.xlu1 %v2145_v19, %s4940_s28  ;;  %v5541_v19 = vcombine.low %v1685_v6, %v5534_v40  ;;  %v5550_v3 = vld [vmem:[#allocation2 + $0x38] ss:$0 sps:$4 sm:$0x11]   ;;  %v4238_v62 = vcombine.low %v2745_v17, %v5493_v26  ;;  %v2702_v41 = vld [vmem:[#allocation2 + $0x40] sm:$0xf]  ;;  %v2922_v53 = vsel %vm1257_vm8, %v2917_v12, %v2921_v23  ;;  %v2149_v46 = vrot.slane %v4154_v15, 1  ;;  %v1580_v15 = vpop.permute.xlu1 %1579 }
  0xb7   : > { %1607 = vrot.lane.b32.xlu0 %v1575_v47, %s4940_s28  ;;  %v1898_v47 = vshll.u32 %v5532_v11, 16  ;;  %v2150_v24 = vrot.slane %v4843_v31, 1  ;;  %v2746_v49 = vld [vmem:[#allocation2 + $0x3c] sm:$0xe]  ;;  %v5555_v45 = vcombine.low %v2703_v30, %v5543_v25  ;;  %v2146_v22 = vrot.slane %v4153_v57, 1  ;;  %v5570_v17 = vpop.permute.xlu0 %1583 }
  0xb8   : > { %6576 = vst [vmem:[#allocation8_spill] sm:$0xff] %v5541_v19  ;;  %v2147_v56 = vrot.slane %v5504_v48, 1  ;;  %v1910_v4 = vshll.u32 %v5541_v19, 16  ;;  %v2910_v26 = vsel %vm1257_vm8, %v2905_v35, %v2909_v28  ;;  %v1903_v5 = vshll.u32 %v4843_v31, 16  ;;  %v1687_v35 = vld [vmem:[#allocation2 + $0x3c] sm:$0xf] }
  0xb9   : > { %6577 = vst [vmem:[#allocation9_spill] sm:$0xff] %v5555_v45  ;;  %v1900_v14 = vrot.slane %v1898_v47, 1  ;;  %v4849_v42 = vld [vmem:[#allocation2 + $0x44] ss:$0 sps:$4 sm:$0x11]   ;;  %v3165_v43 = vrot.slane %v4238_v62, 1  ;;  %v2151_v12 = vsel %vm1530_vm6, %v2149_v46, %v2150_v24 }
  0xba   : > { %3207 = vrot.lane.b32.xlu1 %v3161_v39, %s4940_s28  ;;  %v2701_v39 = vld [vmem:[#allocation2 + $0x3c] sm:$0xf]  ;;  %v3166_v9 = vrot.slane %v5515_v18, 1  ;;  %v5567_v48 = vld [vmem:[#allocation2 + $0x50] ss:$0 sps:$4 sm:$0x11]   ;;  %v2148_v18 = vsel %vm1530_vm6, %v2146_v22, %v2147_v56 }
  0xbb   : > { %2063 = vrot.lane.b32.xlu0 %v1882_v63, %s4941_s29  ;;  %v1896_v63 = vshrl.u32 %v5532_v11, 16  ;;  %v5562_v6 = vcombine.low %v2701_v39, %v2702_v41  ;;  %v2938_v23 = vshll.u32 %v5555_v45, 16  ;;  %v1908_v57 = vshrl.u32 %v5541_v19, 16  ;;  %v1688_v62 = vld [vmem:[#allocation2 + $0x40] sm:$0xf] }
  0xbc   : > { %v1912_v30 = vrot.slane %v1910_v4, 1  ;;  %v1905_v31 = vrot.slane %v1903_v5, 1  ;;  %v3167_v39 = vsel %vm1530_vm6, %v3165_v43, %v3166_v9  ;;  %v3169_v46 = vrot.slane %v4849_v42, 1  ;;  %v1730_v9 = vld [vmem:[#allocation2 + $0x30] sm:$0xe] }
  0xbd   : > { %6578 = vst [vmem:[#allocation10_spill] sm:$0xff] %v5562_v6  ;;  %v1901_v28 = vor.u32 %v1900_v14, %v1896_v63  ;;  %v2926_v47 = vshll.u32 %v5562_v6, 16  ;;  %v2936_v24 = vshrl.u32 %v5555_v45, 16  ;;  %v2943_v4 = vshll.u32 %v5567_v48, 16  ;;  %v1689_v45 = vld [vmem:[#allocation2 + $0x48] sm:$0xf] }
  0xbe   : > { %3209 = vrot.lane.b32.xlu1 %v3164_v59, %s4940_s28  ;;  %v4239_v59 = vcombine.low %v2746_v49, %v2702_v41  ;;  %v2931_v41 = vshll.u32 %v4849_v42, 16  ;;  %v2940_v49 = vrot.slane %v2938_v23, 1  ;;  %v1913_v22 = vor.u32 %v1912_v30, %v1908_v57  ;;  %v5588_v42 = vpop.permute.xlu0 %1587  ;;  %v1733_v8 = vld [vmem:[#allocation2 + $0x54] sm:$0xe] }
  0xbf   : > { %2065 = vrot.lane.b32.xlu0 %v1894_v16, %s4941_s29  ;;  %v1915_v16 = vshll.u32 %v5550_v3, 16  ;;  %v5582_v63 = vcombine.low %v1687_v35, %v1688_v62  ;;  %v1906_v14 = vsel %vm1257_vm8, %v1901_v28, %v1905_v31  ;;  %v2924_v5 = vshrl.u32 %v5562_v6, 16  ;;  %v2747_v28 = vld [vmem:[#allocation2 + $0x48] sm:$0xe]  ;;  %v5598_v6 = vld [vmem:[#allocation2 + $0x64] sm:$0xf] }
  0xc0   : > { %v2928_v43 = vrot.slane %v2926_v47, 1  ;;  %v2933_v57 = vrot.slane %v2931_v41, 1  ;;  %v2945_v35 = vrot.slane %v2943_v4, 1  ;;  %v4155_v47 = vcombine.low %v1730_v9, %v5534_v40  ;;  %v2706_v40 = vld [vmem:[#allocation2 + $0x58] sm:$0xf] }
  0xc1   : > { %v1917_v56 = vrot.slane %v1915_v16, 1  ;;  %6579 = vst [vmem:[#allocation11_spill] sm:$0xff] %v5582_v63  ;;  %v2941_v16 = vor.u32 %v2940_v49, %v2936_v24  ;;  %v1922_v19 = vshll.u32 %v5582_v63, 16  ;;  %vm1611_vm11 = vcmask 31744   ;;  %v2705_v24 = vld [vmem:[#allocation2 + $0x54] sm:$0xf] }
  0xc2   : > { %3083 = vrot.lane.b32.xlu1 %v2922_v53, %s4941_s29  ;;  %v3168_v53 = vrot.slane %v4239_v59, 1  ;;  %v5586_v59 = vpop.permute.xlu1 %1581  ;;  %vm1644_vm12 = vcmask 64512   ;;  %vm2295_vm13 = vcmask 97280   ;;  %vm2328_vm14 = vcmask 1045504  }
  0xc3   : > { %3081 = vrot.lane.b32.xlu0 %v2910_v26, %s4941_s29  ;;  %v1731_v26 = vld [vmem:[#allocation2 + $0x3c] sm:$0xe]  ;;  %v1918_v31 = vsel %vm1257_vm8, %v1913_v22, %v1917_v56  ;;  %v2946_v4 = vsel %vm1257_vm8, %v2941_v16, %v2945_v35  ;;  %v5609_v22 = vld [vmem:[#allocation2 + $0x50] ss:$0 sps:$4 sm:$0x11]   ;;  %v5625_v16 = vcombine.low %v2705_v24, %v2706_v40  ;;  %vm3787_vm15 = vcmask 57344  }
  0xc4   : > { %v4156_v23 = vcombine.low %v1731_v26, %v1688_v62  ;;  %v3170_v30 = vsel %vm1530_vm6, %v3168_v53, %v3169_v46  ;;  %v2929_v62 = vor.u32 %v2928_v43, %v2924_v5  ;;  %v1613_v53 = vsel %vm1611_vm11, %v5059_v61, %v5547_v32  ;;  %v2748_v56 = vld [vmem:[#allocation2 + $0x54] sm:$0xe]  ;;  %v5618_v32 = vpop.permute.xlu0 %1591  ;;  %v4861_v35 = vld [vmem:[#allocation2 + $0x5c] ss:$0 sps:$4 sm:$0x11]  }
  0xc5   : > { %v1646_v49 = vsel %vm1644_vm12, %v1613_v53, %v1580_v15  ;;  %v2153_v15 = vrot.slane %v5550_v3, 1  ;;  %v1920_v5 = vshrl.u32 %v5582_v63, 16  ;;  %v1924_v43 = vrot.slane %v1922_v19, 1  ;;  %6582 = vst [vmem:[#allocation14_spill] sm:$0xff] %v5625_v16 }
  0xc6   : > { %2195 = vrot.lane.b32.xlu1 %v2151_v12, %s4940_s28  ;;  %v4855_v12 = vld [vmem:[#allocation2 + $0x44] ss:$0 sps:$4 sm:$0x11]   ;;  %v2155_v46 = vrot.slane %v4156_v23, 1  ;;  %4559 = vmatprep.mubr.msk.bf16.mxu0 %vm2295_vm13, %v1646_v49  ;;  %v5616_v61 = vpop.permute.xlu1 %1585  ;;  %v2152_v23 = vrot.slane %v4155_v47, 1  ;;  %v3172_v3 = vrot.slane %v5567_v48, 1 }
  0xc7   : > { %2193 = vrot.lane.b32.xlu0 %v2148_v18, %s4940_s28  ;;  %v5591_v18 = vld [vmem:[#allocation2 + $0x4c] sm:$0xf]  ;;  %v2156_v26 = vrot.slane %v4855_v12, 1  ;;  %v1927_v9 = vshll.u32 %v4855_v12, 16  ;;  %v1925_v12 = vor.u32 %v1924_v43, %v1920_v5  ;;  %v1939_v47 = vshll.u32 %v5609_v22, 16 }
  0xc8   : > { %v5601_v41 = vcombine.low %v1689_v45, %v5591_v18  ;;  %v4240_v45 = vcombine.low %v2747_v28, %v5543_v25  ;;  %v2934_v25 = vsel %vm1257_vm8, %v2929_v62, %v2933_v57  ;;  %v4241_v28 = vcombine.low %v2748_v56, %v2706_v40  ;;  %v5630_v53 = vld [vmem:[#allocation2 + $0x68] ss:$0 sps:$4 sm:$0x11]   ;;  %v1691_v62 = vld [vmem:[#allocation2 + $0x54] sm:$0xf] }
  0xc9   : > { %v1929_v57 = vrot.slane %v1927_v9, 1  ;;  %v2154_v24 = vsel %vm1530_vm6, %v2152_v23, %v2153_v15  ;;  %v3175_v56 = vrot.slane %v4861_v35, 1  ;;  %v1732_v5 = vld [vmem:[#allocation2 + $0x48] sm:$0xe]  ;;  %v1693_v43 = vld [vmem:[#allocation2 + $0x60] sm:$0xf] }
  0xca   : > { %3211 = vrot.lane.b32.xlu1 %v3167_v39, %s4940_s28  ;;  %v2707_v39 = vld [vmem:[#allocation2 + $0x60] sm:$0xf]  ;;  %6580 = vst [vmem:[#allocation12_spill] sm:$0xff] %v5601_v41  ;;  %v1932_v40 = vshrl.u32 %v5601_v41, 16  ;;  %v5640_v48 = vpop.permute.xlu1 %1589  ;;  %v2967_v23 = vshll.u32 %v5630_v53, 16  ;;  %v1941_v63 = vrot.slane %v1939_v47, 1 }
  0xcb   : > { %2067 = vrot.lane.b32.xlu0 %v1906_v14, %s4941_s29  ;;  %v5613_v14 = vcombine.low %v2707_v39, %v5598_v6  ;;  %v2157_v39 = vsel %vm1530_vm6, %v2155_v46, %v2156_v26  ;;  %v2950_v46 = vshll.u32 %v5625_v16, 16  ;;  %v2955_v11 = vshll.u32 %v4861_v35, 16  ;;  %v5665_v35 = vld [vmem:[%s6546_s3 + $0x8] sm:$0x3f]  }
  0xcc   : > { %v5672_v47 = vld [vmem:[#allocation2 + $0x68] ss:$0 sps:$4 sm:$0x11]   ;;  %4689 = vmatprep.subr.msk.bf16.mxu1 %vm2328_vm14, %v5665_v35  ;;  %v5722_v7 = vld [vmem:[#allocation2 + $0x80] ss:$0 sps:$4 sm:$0x11]  }
  0xcd   : > { %6581 = vst [vmem:[#allocation13_spill] sm:$0xff] %v5613_v14  ;;  %v2962_v19 = vshll.u32 %v5613_v14, 16  ;;  %v2960_v15 = vshrl.u32 %v5613_v14, 16  ;;  %v2952_v14 = vrot.slane %v2950_v46, 1  ;;  %v2749_v46 = vld [vmem:[#allocation2 + $0x60] sm:$0xe] }
  0xce   : > { %3213 = vrot.lane.b32.xlu1 %v3170_v30, %s4940_s28  ;;  %v1934_v30 = vshll.u32 %v5601_v41, 16  ;;  %v1930_v41 = vsel %vm1257_vm8, %v1925_v12, %v1929_v57  ;;  %v2330_v2 = vsel %vm2328_vm14, %v5665_v35, 0 }
  0xcf   : > { %2069 = vrot.lane.b32.xlu0 %v1918_v31, %s4941_s29  ;;  %v3171_v31 = vrot.slane %v4240_v45, 1  ;;  %v3174_v45 = vrot.slane %v4241_v28, 1  ;;  %4524 = vmatpush3.bf16.msra.mxu1 %v2330_v2 }
  0xd0   : > { %v1936_v49 = vrot.slane %v1934_v30, 1  ;;  %v5648_v30 = vld [vmem:[#allocation2 + $0x64] sm:$0xf] }
  0xd1   : > { %v3173_v9 = vsel %vm1530_vm6, %v3171_v31, %v3172_v3  ;;  %v4883_v31 = vld [vmem:[%s6546_s3] sm:$0x3f]   ;;  %v3176_v12 = vsel %vm1530_vm6, %v3174_v45, %v3175_v56  ;;  %v5670_v57 = vcombine.low %v1693_v43, %v5648_v30  ;;  %v2957_v45 = vrot.slane %v2955_v11, 1 }
  0xd2   : > { %3087 = vrot.lane.b32.xlu1 %v2946_v4, %s4941_s29  ;;  %v5638_v4 = vld [vmem:[#allocation2 + $0x58] sm:$0xf]  ;;  %v1937_v3 = vor.u32 %v1936_v49, %v1932_v40  ;;  %v2969_v40 = vrot.slane %v2967_v23, 1  ;;  %v2159_v56 = vrot.slane %v5609_v22, 1  ;;  %4690 = vmatprep.subr.msk.bf16.mxu0 %vm2328_vm14, %v4883_v31  ;;  %v2709_v23 = vld [vmem:[#allocation2 + $0x6c] sm:$0xf] }
  0xd3   : > { %3085 = vrot.lane.b32.xlu0 %v2934_v25, %s4941_s29  ;;  %v2964_v25 = vrot.slane %v2962_v19, 1  ;;  %v5653_v28 = vcombine.low %v1691_v62, %v5638_v4  ;;  %v2948_v19 = vshrl.u32 %v5625_v16, 16  ;;  %6584 = vst [vmem:[#allocation16_spill] sm:$0xff] %v5670_v57  ;;  %v5677_v62 = vld [vmem:[%s6546_s3 + $0x10] sm:$0x3f]   ;;  %v4158_v49 = vcombine.low %v1733_v8, %v5638_v4 }
  0xd4   : > { %v5642_v26 = vpop.permute.xlu0 %1595  ;;  %v1942_v8 = vsel %vm1257_vm8, %v1937_v3, %v1941_v63  ;;  %v4242_v63 = vcombine.low %v2749_v46, %v5598_v6  ;;  %v2750_v3 = vld [vmem:[#allocation2 + $0x6c] sm:$0xe]  ;;  %v1963_v46 = vshll.u32 %v5672_v47, 16 }
  0xd5   : > { %6583 = vst [vmem:[#allocation15_spill] sm:$0xff] %v5653_v28  ;;  %v1946_v43 = vshll.u32 %v5653_v28, 16  ;;  %v2953_v4 = vor.u32 %v2952_v14, %v2948_v19  ;;  %v2710_v14 = vld [vmem:[#allocation2 + $0x70] sm:$0xf]  ;;  %v1944_v6 = vshrl.u32 %v5653_v28, 16 }
  0xd6   : > { %2199 = vrot.lane.b32.xlu1 %v2157_v39, %s4940_s28  ;;  %v5655_v39 = vld [vmem:[#allocation2 + $0x5c] ss:$0 sps:$4 sm:$0x11]   ;;  %v3177_v28 = vrot.slane %v4242_v63, 1  ;;  %v1965_v63 = vrot.slane %v1963_v46, 1 }
  0xd7   : > { %2197 = vrot.lane.b32.xlu0 %v2154_v24, %s4940_s28  ;;  %v4157_v24 = vcombine.low %v1732_v5, %v5591_v18  ;;  %v2965_v18 = vor.u32 %v2964_v25, %v2960_v15  ;;  %v2711_v5 = vld [vmem:[#allocation2 + $0x78] sm:$0xf]  ;;  %v2531_v15 = vsel %vm2328_vm14, %v4883_v31, 0  ;;  %v1951_v22 = vshll.u32 %v5655_v39, 16 }
  0xd8   : > { %v1453_v50 = vpop.permute.xlu0 %1452  ;;  %4558 = vmatpush3.bf16.msra.mxu0 %v2531_v15  ;;  %v2162_v13 = vrot.slane %v5655_v39, 1  ;;  %v1958_v31 = vshll.u32 %v5670_v57, 16  ;;  %v5718_v15 = vcombine.low %v2709_v23, %v2710_v14 }
  0xd9   : > { %v2158_v25 = vrot.slane %v4157_v24, 1  ;;  %4691 = vmatprep.subr.msk.bf16.mxu0 %vm2328_vm14, %v5677_v62 }
  0xda   : > { %3215 = vrot.lane.b32.xlu1 %v3173_v9, %s4940_s28  ;;  %v5680_v16 = vpop.permute.xlu1 %1593  ;;  %v5685_v9 = vld [vmem:[#allocation2 + $0x7c] sm:$0xf] }
  0xdb   : > { %2071 = vrot.lane.b32.xlu0 %v1930_v41, %s4941_s29  ;;  %v1615_v41 = vsel %vm1611_vm11, %v5132_v52, %v1453_v50  ;;  %v2970_v52 = vsel %vm1257_vm8, %v2965_v18, %v2969_v40  ;;  %v2161_v50 = vrot.slane %v4158_v49, 1  ;;  %v5703_v19 = vcombine.low %v2711_v5, %v5685_v9 }
  0xdc   : > { %v1455_v11 = vpop.permute.xlu0 %1454  ;;  %v1648_v39 = vsel %vm1644_vm12, %v1615_v41, %v5586_v59  ;;  %v2958_v40 = vsel %vm1257_vm8, %v2953_v4, %v2957_v45  ;;  %v2160_v49 = vsel %vm1530_vm6, %v2158_v25, %v2159_v56  ;;  %v3178_v5 = vrot.slane %v5630_v53, 1  ;;  %v4873_v59 = vld [vmem:[#allocation2 + $0x74] ss:$0 sps:$4 sm:$0x11]   ;;  %v1695_v53 = vld [vmem:[#allocation2 + $0x6c] sm:$0xf] }
  0xdd   : > { %4560 = vmatmul.mubr.msk.bf16.vlgmr.msra.gmra.mrb[0].mxu0 %vm2295_vm13, %v1648_v39  ;;  %v1617_v18 = vsel %vm1611_vm11, %v5125_v37, %v1455_v11  ;;  %v1960_v41 = vrot.slane %v1958_v31, 1  ;;  %v4243_v39 = vcombine.low %v2750_v3, %v2710_v14  ;;  %v1953_v11 = vrot.slane %v1951_v22, 1  ;;  %v5726_v4 = vld [vmem:[#allocation2 + $0x70] sm:$0xf] }
  0xde   : > { %3217 = vrot.lane.b32.xlu1 %v3176_v12, %s4940_s28  ;;  %v5705_v24 = vpop.permute.xlu1 %1597  ;;  %v1948_v12 = vrot.slane %v1946_v43, 1  ;;  %v1956_v43 = vshrl.u32 %v5670_v57, 16  ;;  %v2163_v45 = vsel %vm1530_vm6, %v2161_v50, %v2162_v13  ;;  %v2986_v56 = vshll.u32 %v5703_v19, 16  ;;  %v5736_v57 = vld [vmem:[#allocation2 + $0x7c] sm:$0xf] }
  0xdf   : > { %2073 = vrot.lane.b32.xlu0 %v1942_v8, %s4941_s29  ;;  %v1734_v8 = vld [vmem:[#allocation2 + $0x60] sm:$0xe]  ;;  %v1650_v23 = vsel %vm1644_vm12, %v1617_v18, %v5570_v17  ;;  %v2974_v13 = vshll.u32 %v5718_v15, 16  ;;  %v2979_v50 = vshll.u32 %v4873_v59, 16  ;;  %v3181_v3 = vrot.slane %v4873_v59, 1 }
  0xe0   : > { %v1459_v37 = vpop.permute.xlu0 %1458  ;;  %v1949_v31 = vor.u32 %v1948_v12, %v1944_v6  ;;  %v4159_v14 = vcombine.low %v1734_v8, %v5648_v30  ;;  %4563 = vmatprep.mubr.msk.bf16.mxu0 %vm2295_vm13, %v1650_v23  ;;  %v1961_v6 = vor.u32 %v1960_v41, %v1956_v43  ;;  %v3179_v30 = vsel %vm1530_vm6, %v3177_v28, %v3178_v5  ;;  %v1735_v59 = vld [vmem:[#allocation2 + $0x6c] sm:$0xe]  ;;  %v5751_v41 = vld [vmem:[#allocation2 + $0x74] ss:$0 sps:$4 sm:$0x11]  }
  0xe1   : > { %v1621_v17 = vsel %vm1611_vm11, %v5150_v55, %v1459_v37  ;;  %v3180_v12 = vrot.slane %v4243_v39, 1  ;;  %v5743_v46 = vcombine.low %v1695_v53, %v5726_v4  ;;  %v2988_v18 = vrot.slane %v2986_v56, 1  ;;  %v5763_v56 = vld [vmem:[#allocation2 + $0x88] sm:$0xf]  ;;  %v2751_v23 = vld [vmem:[#allocation2 + $0x78] sm:$0xe] }
  0xe2   : > { %3091 = vrot.lane.b32.xlu1 %v2970_v52, %s4941_s29  ;;  %v1457_v25 = vpop.permute.xlu1 %1456  ;;  %v1697_v52 = vld [vmem:[#allocation2 + $0x78] sm:$0xf]  ;;  %v2164_v55 = vrot.slane %v4159_v14, 1  ;;  %v2165_v43 = vrot.slane %v5672_v47, 1  ;;  %v1654_v5 = vsel %vm1644_vm12, %v1621_v17, %v5588_v42  ;;  %v1954_v39 = vsel %vm1257_vm8, %v1949_v31, %v1953_v11  ;;  %v5771_v17 = vld [vmem:[#allocation2 + $0x94] sm:$0xf] }
  0xe3   : > { %3089 = vrot.lane.b32.xlu0 %v2958_v40, %s4941_s29  ;;  %v1619_v22 = vsel %vm1611_vm11, %v5164_v58, %v1457_v25  ;;  %v2984_v58 = vshrl.u32 %v5703_v19, 16  ;;  %v2991_v40 = vshll.u32 %v5722_v7, 16  ;;  %v5754_v28 = vcombine.low %v1697_v52, %v5736_v57 }
  0xe4   : > { %v1652_v8 = vsel %vm1644_vm12, %v1619_v22, %v5616_v61  ;;  %v2972_v37 = vshrl.u32 %v5718_v15, 16  ;;  %v2976_v61 = vrot.slane %v2974_v13, 1  ;;  %v1966_v53 = vsel %vm1257_vm8, %v1961_v6, %v1965_v63  ;;  %v1463_v11 = vpop.permute.xlu0 %1462  ;;  %v2715_v13 = vld [vmem:[#allocation2 + $0x90] sm:$0xf] }
  0xe5   : > { %4564 = vmatmul.mubr.msk.bf16.gmra.mrb[4].mxu0 %vm2295_vm13, %v1652_v8  ;;  %v2981_v25 = vrot.slane %v2979_v50, 1  ;;  %v1970_v42 = vshll.u32 %v5743_v46, 16  ;;  %v3182_v31 = vsel %vm1530_vm6, %v3180_v12, %v3181_v3  ;;  %v2989_v14 = vor.u32 %v2988_v18, %v2984_v58  ;;  %v2752_v58 = vld [vmem:[#allocation2 + $0x84] sm:$0xe] }
  0xe6   : > { %2203 = vrot.lane.b32.xlu1 %v2163_v45, %s4940_s28  ;;  %v5761_v45 = vld [vmem:[#allocation2 + $0x80] ss:$0 sps:$4 sm:$0x11]   ;;  %v1461_v47 = vpop.permute.xlu1 %1460  ;;  %4567 = vmatprep.mubr.msk.bf16.mxu0 %vm2295_vm13, %v1654_v5  ;;  %v2993_v52 = vrot.slane %v2991_v40, 1  ;;  %v4160_v22 = vcombine.low %v1735_v59, %v5726_v4  ;;  %v5775_v63 = vsel %vm1530_vm6, %v2164_v55, %v2165_v43  ;;  %v1982_v50 = vshll.u32 %v5754_v28, 16 }
  0xe7   : > { %2201 = vrot.lane.b32.xlu0 %v2160_v49, %s4940_s28  ;;  %v2713_v49 = vld [vmem:[#allocation2 + $0x84] sm:$0xf]  ;;  %v1623_v3 = vsel %vm1611_vm11, %v5218_v60, %v1461_v47  ;;  %v1975_v12 = vshll.u32 %v5751_v41, 16  ;;  %v4244_v4 = vcombine.low %v2751_v23, %v5685_v9  ;;  %v1625_v40 = vsel %vm1611_vm11, %v5201_v54, %v1463_v11  ;;  %v5793_v60 = vld [vmem:[#allocation2 + $0x88] sm:$0xf] }
  0xe8   : > { %v5779_v6 = vcombine.low %v2713_v49, %v5763_v56  ;;  %v1699_v18 = vld [vmem:[#allocation2 + $0x84] sm:$0xf]  ;;  %v1968_v59 = vshrl.u32 %v5743_v46, 16  ;;  %v1972_v8 = vrot.slane %v1970_v42, 1  ;;  %v2168_v55 = vrot.slane %v5751_v41, 1 }
  0xe9   : > { %v5791_v43 = vcombine.low %v2715_v13, %v5771_v17  ;;  %v2994_v5 = vsel %vm1257_vm8, %v2989_v14, %v2993_v52  ;;  %v2167_v9 = vrot.slane %v4160_v22, 1  ;;  %v1656_v54 = vsel %vm1644_vm12, %v1623_v3, %v5640_v48  ;;  %v1736_v47 = vld [vmem:[#allocation2 + $0x78] sm:$0xe]  ;;  %v5815_v13 = vld [vmem:[#allocation2 + $0x98] ss:$0 sps:$4 sm:$0x11]  }
  0xea   : > { %3219 = vrot.lane.b32.xlu1 %v3179_v30, %s4940_s28  ;;  %v2977_v30 = vor.u32 %v2976_v61, %v2972_v37  ;;  %v5797_v37 = vld [vmem:[#allocation2 + $0x8c] ss:$0 sps:$4 sm:$0x11]   ;;  %v1980_v61 = vshrl.u32 %v5754_v28, 16  ;;  %v1984_v41 = vrot.slane %v1982_v50, 1  ;;  %v2998_v49 = vshll.u32 %v5779_v6, 16 }
  0xeb   : > { %2075 = vrot.lane.b32.xlu0 %v1954_v39, %s4941_s29  ;;  %v1987_v39 = vshll.u32 %v5761_v45, 16  ;;  %v1658_v42 = vsel %vm1644_vm12, %v1625_v40, %v5618_v32  ;;  %v3183_v11 = vrot.slane %v4244_v4, 1  ;;  %v5810_v48 = vcombine.low %v1699_v18, %v5793_v60  ;;  %v5821_v4 = vld [vmem:[#allocation2 + $0x8c] ss:$0 sps:$4 sm:$0x11]  }
  0xec   : > { %v2982_v23 = vsel %vm1257_vm8, %v2977_v30, %v2981_v25  ;;  %v1973_v14 = vor.u32 %v1972_v8, %v1968_v59  ;;  %v1977_v52 = vrot.slane %v1975_v12, 1  ;;  %v4245_v22 = vcombine.low %v2752_v58, %v5763_v56  ;;  %v1467_v25 = vpop.permute.xlu0 %1466  ;;  %v1701_v40 = vld [vmem:[#allocation2 + $0x90] sm:$0xf]  ;;  %v5827_v59 = vld [vmem:[#allocation2 + $0x94] sm:$0xf] }
  0xed   : > { %4568 = vmatmul.mubr.msk.bf16.gmra.mrb[8].mxu0 %vm2295_vm13, %v1656_v54  ;;  %v3010_v32 = vshll.u32 %v5791_v43, 16  ;;  %v2169_v50 = vsel %vm1530_vm6, %v2167_v9, %v2168_v55  ;;  %v3003_v3 = vshll.u32 %v5797_v37, 16  ;;  %v4161_v30 = vcombine.low %v1736_v47, %v5736_v57 }
  0xee   : > { %3221 = vrot.lane.b32.xlu1 %v3182_v31, %s4940_s28  ;;  %v3184_v31 = vrot.slane %v5722_v7, 1  ;;  %4571 = vmatprep.mubr.msk.bf16.mxu0 %vm2295_vm13, %v1658_v42  ;;  %v1989_v7 = vrot.slane %v1987_v39, 1  ;;  %v1985_v18 = vor.u32 %v1984_v41, %v1980_v61  ;;  %v2996_v12 = vshrl.u32 %v5779_v6, 16  ;;  %v1737_v61 = vld [vmem:[#allocation2 + $0x84] sm:$0xe] }
  0xef   : > { %2077 = vrot.lane.b32.xlu0 %v1966_v53, %s4941_s29  ;;  %v1465_v53 = vpop.permute.xlu1 %1464  ;;  %v3000_v56 = vrot.slane %v2998_v49, 1  ;;  %v3187_v55 = vrot.slane %v5797_v37, 1  ;;  %v1994_v57 = vshll.u32 %v5810_v48, 16  ;;  %v3186_v9 = vrot.slane %v4245_v22, 1 }
  0xf0   : > { %v1627_v58 = vsel %vm1611_vm11, %v5281_v29, %v1465_v53  ;;  %v3185_v8 = vsel %vm1530_vm6, %v3183_v11, %v3184_v31  ;;  %v3008_v39 = vshrl.u32 %v5791_v43, 16  ;;  %v3012_v54 = vrot.slane %v3010_v32, 1  ;;  %v2753_v11 = vld [vmem:[#allocation2 + $0x90] sm:$0xe] }
  0xf1   : > { %v3015_v29 = vshll.u32 %v5815_v13, 16  ;;  %v2170_v41 = vrot.slane %v4161_v30, 1  ;;  %v2171_v49 = vrot.slane %v5761_v45, 1  ;;  %v5839_v47 = vcombine.low %v1701_v40, %v5827_v59  ;;  %v5852_v32 = vld [vmem:[#allocation2 + $0x98] ss:$0 sps:$4 sm:$0x11]  }
  0xf2   : > { %3095 = vrot.lane.b32.xlu1 %v2994_v5, %s4941_s29  ;;  %v1629_v5 = vsel %vm1611_vm11, %v5255_v51, %v1467_v25  ;;  %v1660_v37 = vsel %vm1644_vm12, %v1627_v58, %v5680_v16  ;;  %v3001_v51 = vor.u32 %v3000_v56, %v2996_v12  ;;  %v3005_v42 = vrot.slane %v3003_v3, 1  ;;  %v2717_v30 = vld [vmem:[#allocation2 + $0x9c] sm:$0xf]  ;;  %v2719_v12 = vld [vmem:[#allocation2 + $0xa8] sm:$0xf] }
  0xf3   : > { %3093 = vrot.lane.b32.xlu0 %v2982_v23, %s4941_s29  ;;  %v1999_v23 = vshll.u32 %v5821_v4, 16  ;;  %v1662_v31 = vsel %vm1644_vm12, %v1629_v5, %v5642_v26  ;;  %v1978_v45 = vsel %vm1257_vm8, %v1973_v14, %v1977_v52  ;;  %v1992_v53 = vshrl.u32 %v5810_v48, 16  ;;  %v5863_v56 = vld [vmem:[#allocation2 + $0xac] sm:$0xf]  ;;  %v4449_v58 = vld [vmem:[%s5013_s23 + $0x78] sm:$0xff]  }
  0xf4   : > { %v1996_v22 = vrot.slane %v1994_v57, 1  ;;  %v4162_v16 = vcombine.low %v1737_v61, %v5793_v60  ;;  %v1990_v25 = vsel %vm1257_vm8, %v1985_v18, %v1989_v7  ;;  %v3017_v3 = vrot.slane %v3015_v29, 1  ;;  %v2754_v57 = vld [vmem:[#allocation2 + $0x9c] sm:$0xe] }
  0xf5   : > { %4572 = vmatmul.mubr.msk.bf16.gmra.mrb[12].mxu0 %vm2295_vm13, %v1660_v37  ;;  %v3188_v26 = vsel %vm1530_vm6, %v3186_v9, %v3187_v55  ;;  %v5859_v14 = vsel %vm1530_vm6, %v2170_v41, %v2171_v49  ;;  %v2006_v52 = vshll.u32 %v5839_v47, 16  ;;  %v4246_v60 = vcombine.low %v2753_v11, %v5771_v17  ;;  %v2718_v55 = vld [vmem:[#allocation2 + $0xa0] sm:$0xf]  ;;  %v5876_v41 = vld [vmem:[#allocation2 + $0xa4] ss:$0 sps:$4 sm:$0x11]  }
  0xf6   : > { %2207 = vrot.lane.b32.xlu1 %v2169_v50, %s4940_s28  ;;  %4575 = vmatprep.mubr.msk.bf16.mxu0 %vm2295_vm13, %v1662_v31  ;;  %v3013_v50 = vor.u32 %v3012_v54, %v3008_v39  ;;  %v3006_v7 = vsel %vm1257_vm8, %v3001_v51, %v3005_v42  ;;  %v2001_v18 = vrot.slane %v1999_v23, 1  ;;  %v2174_v40 = vrot.slane %v5821_v4, 1  ;;  %v470_v54 = vld [vmem:[#allocation2 + $0xc0] sm:$0x1]  ;;  %v526_v49 = vld [vmem:[#allocation2 + $0xc8] sm:$0x1] }
  0xf7   : > { %2205 = vrot.lane.b32.xlu0 %v5775_v63, %s4940_s28  ;;  %v1469_v63 = vpop.permute.xlu1 %1468  ;;  %v1997_v5 = vor.u32 %v1996_v22, %v1992_v53  ;;  %v2173_v9 = vrot.slane %v4162_v16, 1  ;;  %v2011_v17 = vshll.u32 %v5852_v32, 16  ;;  %v3190_v39 = vrot.slane %v5815_v13, 1  ;;  %v4929_v53 = vld [vmem:[%s6544_s1] ss:$0 sm:$0xff] }
  0xf8   : > { %v3018_v29 = vsel %vm1257_vm8, %v3013_v50, %v3017_v3  ;;  %v2004_v61 = vshrl.u32 %v5839_v47, 16  ;;  %v5879_v4 = vcombine.low %v2719_v12, %v5863_v56  ;;  %v2008_v37 = vrot.slane %v2006_v52, 1  ;;  %v473_v3 = vld [vmem:[#allocation2 + $0xcc] sm:$0x1]  ;;  %v4930_v12 = vld [vmem:[%s6545_s2] ss:$0 sm:$0xff] }
  0xf9   : > { %v3189_v51 = vrot.slane %v4246_v60, 1  ;;  %v4434_v23 = vunpack.c.h.bf16 %v4449_v58  ;;  %v5884_v11 = vcombine.low %v2717_v30, %v2718_v55  ;;  %v4247_v31 = vcombine.low %v2754_v57, %v2718_v55 }
  0xfa   : > { %3223 = vrot.lane.b32.xlu1 %v3185_v8, %s4940_s28  ;;  %v1631_v8 = vsel %vm1611_vm11, %v5289_v44, %v1469_v63  ;;  %v4433_v44 = vunpack.c.l.bf16 %v4449_v58  ;;  %v471_v16 = vsel %vm4984_vm3, 0, %v470_v54  ;;  %v2175_v63 = vsel %vm1530_vm6, %v2173_v9, %v2174_v40  ;;  %v1703_v54 = vld [vmem:[#allocation2 + $0x9c] sm:$0xf] }
  0xfb   : > { %2079 = vrot.lane.b32.xlu0 %v1978_v45, %s4941_s29  ;;  %v1664_v13 = vsel %vm1644_vm12, %v1631_v8, %v5705_v24  ;;  %v5886_v45 = vld [vmem:[#allocation2 + $0xb0] ss:$0 sps:$4 sm:$0x11]   ;;  %v5895_v24 = vsel %vm1257_vm8, %v1997_v5, %v2001_v18  ;;  %472 = vst [vmem:[#allocation2 + $0xc0] sm:$0x1] %v471_v16  ;;  %v527_v50 = vsel %vm4991_vm5, 0, %v526_v49  ;;  %v2009_v40 = vor.u32 %v2008_v37, %v2004_v61 }
  0xfc   : > { %v338_v22 = vmul.f32 %v4929_v53, %v4433_v44  ;;  %v3027_v52 = vshll.u32 %v5876_v41, 16  ;;  %v3034_v30 = vshll.u32 %v5879_v4, 16  ;;  %528 = vst [vmem:[#allocation2 + $0xc8] sm:$0x1] %v527_v50  ;;  %v529_v18 = vld [vmem:[#allocation2 + $0xd4] sm:$0x1]  ;;  %v3191_v8 = vsel %vm1530_vm6, %v3189_v51, %v3190_v39 }
  0xfd   : > { %v1473_v42 = vpop.permute.xlu1 %1472  ;;  %4576 = vmatmul.mubr.msk.bf16.gmra.mrb[16].mxu0 %vm2295_vm13, %v1664_v13  ;;  %v3193_v55 = vrot.slane %v5876_v41, 1  ;;  %v3022_v5 = vshll.u32 %v5884_v11, 16  ;;  %v3192_v9 = vrot.slane %v4247_v31, 1  ;;  %v3032_v49 = vshrl.u32 %v5879_v4, 16  ;;  %v5914_v13 = vld [vmem:[#allocation2 + $0xa0] sm:$0xf] }
  0xfe   : > { %3225 = vrot.lane.b32.xlu1 %v3188_v26, %s4940_s28  ;;  %v5901_v26 = vrot.slane %v2011_v17, 1  ;;  %v376_v58 = vadd.f32 %v4930_v12, %v338_v22  ;;  %v3039_v17 = vshll.u32 %v5886_v45, 16  ;;  %v474_v39 = vsel %vm4984_vm3, 0, %v473_v3 }
  0xff   : > { %2081 = vrot.lane.b32.xlu0 %v1990_v25, %s4941_s29  ;;  %v339_v25 = vmul.f32 %v4929_v53, %v4434_v23  ;;  %v530_v41 = vsel %vm4991_vm5, 0, %v529_v18  ;;  %v3036_v23 = vrot.slane %v3034_v30, 1  ;;  %475 = vst [vmem:[#allocation2 + $0xcc] sm:$0x1] %v474_v39  ;;  %v5925_v53 = vld [vmem:[#allocation2 + $0x90] sm:$0xe] }
 0x100   : > { %531 = vst [vmem:[#allocation2 + $0xd4] sm:$0x1] %v530_v41  ;;  %v3020_v3 = vshrl.u32 %v5884_v11, 16  ;;  %v1705_v18 = vld [vmem:[#allocation2 + $0xa8] sm:$0xf]  ;;  %v2177_v2 = vrot.slane %v5852_v32, 1 }
 0x101   : > { %v377_v57 = vadd.f32 %v4930_v12, %v339_v25  ;;  %v1602_v44 = vpop.permute.xlu1 %1601  ;;  %v4163_v12 = vcombine.low %v5925_v53, %v5827_v59 }
 0x102   : > { %3099 = vrot.lane.b32.xlu1 %v3018_v29, %s4941_s29  ;;  %v1471_v60 = vpop.permute.xlu0 %1470  ;;  %v408_v29 = vmax.f32 %v376_v58, 0.0  ;;  %v4904_v58 = vld [vmem:[#allocation2 + $0xa4] ss:$0 sps:$4 sm:$0x11]   ;;  %v1058_v41 = vld [vmem:[#allocation2 + $0xc0] sm:$0xf] }
 0x103   : > { %3097 = vrot.lane.b32.xlu0 %v3006_v7, %s4941_s29  ;;  %v409_v61 = vmax.f32 %v377_v57, 0.0  ;;  %v1635_v7 = vsel %vm1611_vm11, %v5394_v38, %v1473_v42  ;;  %v1633_v37 = vsel %vm1611_vm11, %v5400_v10, %v1471_v60  ;;  %v5936_v10 = vcombine.low %v1703_v54, %v5914_v13  ;;  %v1739_v42 = vld [vmem:[#allocation2 + $0x9c] sm:$0xe]  ;;  %v5945_v57 = vld [vmem:[#allocation2 + $0xac] sm:$0xf] }
 0x104   : > { %v4337_v31 = vpack.c.bf16 %v408_v29, %v408_v29  ;;  %v1668_v38 = vsel %vm1644_vm12, %v1635_v7, %v1602_v44  ;;  %v3024_v60 = vrot.slane %v3022_v5, 1  ;;  %v3037_v5 = vor.u32 %v3036_v23, %v3032_v49  ;;  %v2721_v23 = vld [vmem:[#allocation2 + $0xb4] sm:$0xf] }
 0x105   : > { %v4338_v16 = vpack.c.bf16 %v409_v61, %v409_v61  ;;  %v3041_v29 = vrot.slane %v3039_v17, 1  ;;  %v4164_v44 = vcombine.low %v1739_v42, %v5914_v13  ;;  %v2755_v61 = vld [vmem:[#allocation2 + $0xa8] sm:$0xe]  ;;  %v2018_v59 = vshll.u32 %v5936_v10, 16  ;;  %v2756_v42 = vld [vmem:[#allocation2 + $0xb4] sm:$0xe] }
 0x106   : > { %2211 = vrot.lane.b32.xlu1 %v2175_v63, %s4940_s28  ;;  %v1600_v51 = vpop.permute.xlu0 %1599  ;;  %v3344_v63 = vsel %vm2328_vm14, %v5677_v62, 0  ;;  %v886_v25 = vshrl.u32 %v4337_v31, 16  ;;  %v889_v50 = vshll.u32 %v4337_v31, 16  ;;  %v3029_v62 = vrot.slane %v3027_v52, 1 }
 0x107   : > { %v1666_v22 = vsel %vm1644_vm12, %v1633_v37, %v1600_v51  ;;  %2209 = vrot.lane.b32.xlu0 %v5859_v14, %s4940_s28  ;;  %v894_v35 = vshrl.u32 %v4338_v16, 16  ;;  %v897_v30 = vshll.u32 %v4338_v16, 16  ;;  %v3194_v14 = vsel %vm1530_vm6, %v3192_v9, %v3193_v55  ;;  %4592 = vmatpush3.bf16.msra.mxu0 %v3344_v63  ;;  %v1062_v9 = vld [vmem:[#allocation2 + $0xc8] sm:$0x1] }
 0x108   : > { %4579 = vmatprep.mubr.msk.bf16.mxu0 %vm2295_vm13, %v1666_v22  ;;  %v888_v54 = vrot.slane %v886_v25, 7  ;;  %v2014_v52 = vsel %vm1257_vm8, %v2009_v40, %v5901_v26  ;;  %v3025_v7 = vor.u32 %v3024_v60, %v3020_v3  ;;  %v5954_v49 = vcombine.low %v1705_v18, %v5945_v57  ;;  %v5956_v17 = vld [vmem:[#allocation2 + $0xb0] ss:$0 sps:$4 sm:$0x11]   ;;  %v2722_v26 = vld [vmem:[#allocation2 + $0xb8] sm:$0xf] }
 0x109   : > { %4580 = vmatmul.mubr.msk.bf16.gmra.mrb[20].mxu0 %vm2295_vm13, %v1668_v38  ;;  %v896_v39 = vrot.slane %v894_v35, 7  ;;  %v2180_v51 = vrot.slane %v4904_v58, 1  ;;  %v3042_v31 = vsel %vm1257_vm8, %v3037_v5, %v3041_v29  ;;  %v2179_v53 = vrot.slane %v4164_v44, 1  ;;  %v1707_v18 = vld [vmem:[#allocation2 + $0xb4] sm:$0xf] }
 0x10a   : > { %3227 = vrot.lane.b32.xlu1 %v3191_v8, %s4940_s28  ;;  %v891_v8 = vor.u32 %v889_v50, %v888_v54  ;;  %v892_v55 = vrot.slane %v888_v54, 4  ;;  %v2020_v63 = vrot.slane %v2018_v59, 1  ;;  %v2023_v38 = vshll.u32 %v4904_v58, 16  ;;  %v1741_v59 = vld [vmem:[#allocation2 + $0xb4] sm:$0xe] }
 0x10b   : > { %2083 = vrot.lane.b32.xlu0 %v5895_v24, %s4941_s29  ;;  %v899_v13 = vor.u32 %v897_v30, %v896_v39  ;;  %v901_v37 = vrot.slane %v896_v39, 4  ;;  %v4248_v24 = vcombine.low %v2755_v61, %v5863_v56  ;;  %v2016_v56 = vshrl.u32 %v5936_v10, 16  ;;  %v4910_v30 = vld [vmem:[#allocation2 + $0xbc] ss:$0 sps:$4 sm:$0x11]  }
 0x10c   : > { %v1059_v40 = vsel %vm5069_vm9, %v891_v8, %v1058_v41  ;;  %v3030_v27 = vsel %vm1257_vm8, %v3025_v7, %v3029_v62  ;;  %v2176_v25 = vrot.slane %v4163_v12, 1  ;;  %v2030_v50 = vshll.u32 %v5954_v49, 16  ;;  %v1740_v12 = vld [vmem:[#allocation2 + $0xa8] sm:$0xe]  ;;  %v1708_v61 = vld [vmem:[#allocation2 + $0xb8] sm:$0xf] }
 0x10d   : > { %v900_v22 = vsel %vm5076_vm10, %v892_v55, %v899_v13  ;;  %1060 = vst [vmem:[#allocation2 + $0xc0] sm:$0xf] %v1059_v40  ;;  %v1063_v16 = vsel %vm4984_vm3, %v901_v37, %v1062_v9  ;;  %v5973_v1 = vcombine.low %v2721_v23, %v2722_v26  ;;  %v2035_v32 = vshll.u32 %v5956_v17, 16 }
 0x10e   : > { %3229 = vrot.lane.b32.xlu1 %v3194_v14, %s4940_s28  ;;  %v1477_v21 = vpop.permute.xlu1 %1476  ;;  %1061 = vst.msk [vmem:[#allocation2 + $0xc4] sm:$0xf] %vm410_vm0, %v900_v22  ;;  %1064 = vst [vmem:[#allocation2 + $0xc8] sm:$0x1] %v1063_v16  ;;  %v2181_v3 = vsel %vm1530_vm6, %v2179_v53, %v2180_v51  ;;  %v3195_v60 = vrot.slane %v4248_v24, 1  ;;  %v3196_v35 = vrot.slane %v5886_v45, 1  ;;  %v4249_v14 = vcombine.low %v2756_v42, %v2722_v26 }
 0x10f   : > { %2085 = vrot.lane.b32.xlu0 %v2014_v52, %s4941_s29  ;;  %v2021_v58 = vor.u32 %v2020_v63, %v2016_v56  ;;  %v2025_v62 = vrot.slane %v2023_v38, 1  ;;  %v2178_v54 = vsel %vm1530_vm6, %v2176_v25, %v2177_v2  ;;  %v2028_v5 = vshrl.u32 %v5954_v49, 16 }
 0x110   : > { %v2032_v29 = vrot.slane %v2030_v50, 1  ;;  %v3046_v44 = vshll.u32 %v5973_v1, 16  ;;  %v2037_v45 = vrot.slane %v2035_v32, 1  ;;  %v3197_v8 = vsel %vm1530_vm6, %v3195_v60, %v3196_v35  ;;  %v4916_v50 = vld [vmem:[#allocation2 + $0xbc] ss:$0 sps:$4 sm:$0x11]  }
 0x111   : > { %v3198_v55 = vrot.slane %v4249_v14, 1  ;;  %v3199_v9 = vrot.slane %v4910_v30, 1  ;;  %v2026_v13 = vsel %vm1257_vm8, %v2021_v58, %v2025_v62  ;;  %v3051_v37 = vshll.u32 %v4910_v30, 16 }
 0x112   : > { %3103 = vrot.lane.b32.xlu1 %v3042_v31, %s4941_s29  ;;  %v1606_v41 = vpop.permute.xlu1 %1605  ;;  %v5991_v23 = vcombine.low %v1707_v18, %v1708_v61  ;;  %v2033_v26 = vor.u32 %v2032_v29, %v2028_v5  ;;  %v3044_v40 = vshrl.u32 %v5973_v1, 16  ;;  %v3048_v31 = vrot.slane %v3046_v44, 1  ;;  %v2726_v5 = vld [vmem:[#allocation2 + $0xd0] sm:$0xf] }
 0x113   : > { %3101 = vrot.lane.b32.xlu0 %v3030_v27, %s4941_s29  ;;  %v4165_v53 = vcombine.low %v1740_v12, %v5945_v57  ;;  %v1639_v27 = vsel %vm1611_vm11, %v5433_v33, %v1477_v21  ;;  %v3200_v25 = vsel %vm1530_vm6, %v3198_v55, %v3199_v9  ;;  %v3053_v58 = vrot.slane %v3051_v37, 1  ;;  %v2758_v55 = vld [vmem:[#allocation2 + $0xcc] sm:$0xe] }
 0x114   : > { %v2723_v52 = vld [vmem:[#allocation2 + $0xc0] sm:$0xf]  ;;  %v1672_v32 = vsel %vm1644_vm12, %v1639_v27, %v1606_v41  ;;  %v2042_v30 = vshll.u32 %v5991_v23, 16  ;;  %v2038_v33 = vsel %vm1257_vm8, %v2033_v26, %v2037_v45  ;;  %v3049_v21 = vor.u32 %v3048_v31, %v3044_v40 }
 0x115   : > { %v2724_v7 = vld [vmem:[#allocation2 + $0xc4] sm:$0xf]  ;;  %v5989_v24 = vld [vmem:[#allocation2 + $0xc8] ss:$0 sps:$4 sm:$0x11]   ;;  %v2183_v12 = vrot.slane %v5956_v17, 1  ;;  %v4251_v31 = vcombine.low %v2758_v55, %v2726_v5 }
 0x116   : > { %v1475_v39 = vpop.permute.xlu0 %1474  ;;  %2215 = vrot.lane.b32.xlu1 %v2181_v3, %s4940_s28  ;;  %v5987_v51 = vcombine.low %v2723_v52, %v2724_v7  ;;  %v1709_v22 = vld [vmem:[#allocation2 + $0xc0] sm:$0xf]  ;;  %v3063_v38 = vshll.u32 %v5989_v24, 16  ;;  %v6001_v42 = vld [vmem:[#allocation2 + $0xc4] sm:$0xf]  ;;  %v2182_v29 = vrot.slane %v4165_v53, 1  ;;  %v3054_v9 = vsel %vm1257_vm8, %v3049_v21, %v3053_v58 }
 0x117   : > { %2213 = vrot.lane.b32.xlu0 %v2178_v54, %s4940_s28  ;;  %v1637_v16 = vsel %vm1611_vm11, %v5452_v0, %v1475_v39  ;;  %v4166_v0 = vcombine.low %v1741_v59, %v1708_v61  ;;  %v2757_v14 = vld [vmem:[#allocation2 + $0xc0] sm:$0xe]  ;;  %v6015_v62 = vcombine.low %v1709_v22, %v6001_v42  ;;  %v2725_v54 = vld [vmem:[#allocation2 + $0xcc] sm:$0xf]  ;;  %v2186_v61 = vrot.slane %v4916_v50, 1 }
 0x118   : > { %v3056_v56 = vshrl.u32 %v5987_v51, 16  ;;  %v3058_v63 = vshll.u32 %v5987_v51, 16  ;;  %v3065_v35 = vrot.slane %v3063_v38, 1  ;;  %v4250_v39 = vcombine.low %v2757_v14, %v2724_v7  ;;  %v6024_v17 = vld [vmem:[#allocation2 + $0xc8] ss:$0 sps:$4 sm:$0x11]  }
 0x119   : > { %v2185_v44 = vrot.slane %v4166_v0, 1  ;;  %v2040_v52 = vshrl.u32 %v5991_v23, 16  ;;  %v2044_v59 = vrot.slane %v2042_v30, 1  ;;  %v6027_v37 = vcombine.low %v2725_v54, %v2726_v5 }
 0x11a   : > { %v1604_v2 = vpop.permute.xlu0 %1603  ;;  %3231 = vrot.lane.b32.xlu1 %v3197_v8, %s4940_s28  ;;  %v3060_v60 = vrot.slane %v3058_v63, 1  ;;  %v2047_v8 = vshll.u32 %v4916_v50, 16  ;;  %v3201_v26 = vrot.slane %v4250_v39, 1  ;;  %v3202_v40 = vrot.slane %v5989_v24, 1 }
 0x11b   : > { %v1670_v57 = vsel %vm1644_vm12, %v1637_v16, %v1604_v2  ;;  %2087 = vrot.lane.b32.xlu0 %v2026_v13, %s4941_s29  ;;  %v2054_v13 = vshll.u32 %v6015_v62, 16  ;;  %v2187_v7 = vsel %vm1530_vm6, %v2185_v44, %v2186_v61  ;;  %v2184_v53 = vsel %vm1530_vm6, %v2182_v29, %v2183_v12 }
 0x11c   : > { %v6009_v3 = vpop.permute.xlu1 %1480  ;;  %4583 = vmatprep.mubr.msk.bf16.mxu0 %vm2295_vm13, %v1670_v57  ;;  %v3061_v18 = vor.u32 %v3060_v60, %v3056_v56  ;;  %v2045_v22 = vor.u32 %v2044_v59, %v2040_v52  ;;  %v2049_v16 = vrot.slane %v2047_v8, 1  ;;  %v4922_v56 = vld [vmem:[#allocation2 + $0xd4] ss:$0 sps:$4 sm:$0x11]   ;;  %v2052_v63 = vshrl.u32 %v6015_v62, 16 }
 0x11d   : > { %4584 = vmatmul.mubr.msk.bf16.gmra.mrb[24].mxu0 %vm2295_vm13, %v1672_v32  ;;  %v2056_v38 = vrot.slane %v2054_v13, 1  ;;  %v2059_v27 = vshll.u32 %v6024_v17, 16  ;;  %v3070_v57 = vshll.u32 %v6027_v37, 16  ;;  %v3203_v24 = vsel %vm1530_vm6, %v3201_v26, %v3202_v40 }
 0x11e   : > { %3233 = vrot.lane.b32.xlu1 %v3200_v25, %s4940_s28  ;;  %v3066_v41 = vsel %vm1257_vm8, %v3061_v18, %v3065_v35  ;;  %v3204_v50 = vrot.slane %v4251_v31, 1  ;;  %v3205_v0 = vrot.slane %v4922_v56, 1  ;;  %v2050_v32 = vsel %vm1257_vm8, %v2045_v22, %v2049_v16  ;;  %v1742_v18 = vld [vmem:[#allocation2 + $0xc0] sm:$0xe] }
 0x11f   : > { %2089 = vrot.lane.b32.xlu0 %v2038_v33, %s4941_s29  ;;  %v3075_v35 = vshll.u32 %v4922_v56, 16  ;;  %v2057_v30 = vor.u32 %v2056_v38, %v2052_v63  ;;  %v2061_v14 = vrot.slane %v2059_v27, 1  ;;  %v3068_v33 = vshrl.u32 %v6027_v37, 16  ;;  %v6587_v56 = vld [vmem:[#allocation4_spill] sm:$0xff]  ;;  %v6588_v27 = vld [vmem:[#allocation5_spill] sm:$0xff] }
 0x120   : > { %v1610_v45 = vpop.permute.xlu1 %1609  ;;  %v3072_v21 = vrot.slane %v3070_v57, 1  ;;  %v1643_v54 = vsel %vm1611_vm11, %v5466_v34, %v6009_v3  ;;  %v3206_v29 = vsel %vm1530_vm6, %v3204_v50, %v3205_v0  ;;  %v4167_v3 = vcombine.low %v1742_v18, %v6001_v42  ;;  %v6589_v0 = vld [vmem:[#allocation7_spill] sm:$0xff] }
 0x121   : > { %v1676_v44 = vsel %vm1644_vm12, %v1643_v54, %v1610_v45  ;;  %v6585_v45 = vld [vmem:[#allocation3_spill] sm:$0xff]  ;;  %v2189_v13 = vrot.slane %v6024_v17, 1  ;;  %v6591_v54 = vld [vmem:[#allocation8_spill] sm:$0xff] }
 0x122   : > { %3107 = vrot.lane.b32.xlu1 %v3066_v41, %s4941_s29  ;;  %v2062_v41 = vsel %vm1257_vm8, %v2057_v30, %v2061_v14  ;;  %v3073_v52 = vor.u32 %v3072_v21, %v3068_v33  ;;  %v2188_v42 = vrot.slane %v4167_v3, 1  ;;  %v6590_v21 = vld [vmem:[#allocation10_spill] sm:$0xff] }
 0x123   : > { %3105 = vrot.lane.b32.xlu0 %v3054_v9, %s4941_s29 }
 0x124   : > { %v3080_v2 = vpop.permute.xlu1 %3079  ;;  %v2190_v40 = vsel %vm1530_vm6, %v2188_v42, %v2189_v13 }
 0x125   : > { %v1479_v25 = vpop.permute.xlu0 %1478  ;;  %v3240_v61 = vsel %vm1611_vm11, %v5461_v20, %v3080_v2 }
 0x126   : > { %2219 = vrot.lane.b32.xlu1 %v2187_v7, %s4940_s28  ;;  %v1641_v58 = vsel %vm1611_vm11, %v5490_v36, %v1479_v25  ;;  %v3077_v36 = vrot.slane %v3075_v35, 1 }
 0x127   : > { %2217 = vrot.lane.b32.xlu0 %v2184_v53, %s4940_s28  ;;  %v6586_v53 = vld [vmem:[#allocation6_spill] sm:$0xff] }
 0x128   : > { %v2192_v60 = vpop.permute.xlu1 %2191  ;;  %v3078_v9 = vsel %vm1257_vm8, %v3073_v52, %v3077_v36 }
 0x129   : > { %v1608_v12 = vpop.permute.xlu0 %1607 }
 0x12a   : > { %3235 = vrot.lane.b32.xlu1 %v3203_v24, %s4940_s28  ;;  %v1674_v5 = vsel %vm1644_vm12, %v1641_v58, %v1608_v12 }
 0x12b   : > { %2091 = vrot.lane.b32.xlu0 %v2050_v32, %s4941_s29  ;;  %4587 = vmatprep.mubr.msk.bf16.mxu0 %vm2295_vm13, %v1674_v5 }
 0x12c   : > { %v3208_v39 = vpop.permute.xlu1 %3207  ;;  %4588 = vmatmul.mubr.msk.bf16.gmra.mrb[28].mxu0 %vm2295_vm13, %v1676_v44 }
 0x12d   : > { %v3272_v34 = vsel %vm1644_vm12, %v3240_v61, %v3208_v39  ;;  %v2064_v59 = vpop.permute.xlu0 %2063  ;;  %v6592_v61 = vld [vmem:[#allocation9_spill] sm:$0xff] }
 0x12e   : > { %3237 = vrot.lane.b32.xlu1 %v3206_v29, %s4940_s28  ;;  %4593 = vmatprep.mubr.msk.bf16.mxu0 %vm2295_vm13, %v3272_v34  ;;  %v2224_v20 = vsel %vm1611_vm11, %v6585_v45, %v2064_v59  ;;  %v6593_v34 = vld [vmem:[#allocation11_spill] sm:$0xff] }
 0x12f   : > { %2093 = vrot.lane.b32.xlu0 %v2062_v41, %s4941_s29  ;;  %v2256_v8 = vsel %vm1644_vm12, %v2224_v20, %v2192_v60 }
 0x130   : > { %v3210_v55 = vpop.permute.xlu1 %3209  ;;  %4525 = vmatprep.mubr.msk.bf16.mxu1 %vm2295_vm13, %v2256_v8 }
 0x131   : > { %v2066_v7 = vpop.permute.xlu0 %2065 }
 0x132   : > { %v2226_v17 = vsel %vm1611_vm11, %v6587_v56, %v2066_v7 }
 0x133   : > { %3109 = vrot.lane.b32.xlu0 %v3078_v9, %s4941_s29  ;;  %v6594_v9 = vld [vmem:[#allocation14_spill] sm:$0xff] }
 0x134   : > { %v3084_v26 = vpop.permute.xlu1 %3083 }
 0x135   : > { %v3082_v31 = vpop.permute.xlu0 %3081  ;;  %v3244_v57 = vsel %vm1611_vm11, %v6588_v27, %v3084_v26  ;;  %v6595_v26 = vld [vmem:[#allocation12_spill] sm:$0xff] }
 0x136   : > { %v3242_v22 = vsel %vm1611_vm11, %v6586_v53, %v3082_v31 }
 0x137   : > { %2221 = vrot.lane.b32.xlu0 %v2190_v40, %s4940_s28  ;;  %v3274_v16 = vsel %vm1644_vm12, %v3242_v22, %v3210_v55  ;;  %v6596_v22 = vld [vmem:[#allocation13_spill] sm:$0xff] }
 0x138   : > { %v2196_v2 = vpop.permute.xlu1 %2195  ;;  %4594 = vmatmul.mubr.msk.bf16.vlgmr.msra.gmra.mrb[0].mxu0 %vm2295_vm13, %v3274_v16 }
 0x139   : > { %v2194_v63 = vpop.permute.xlu0 %2193 }
 0x13a   : > { %v2258_v38 = vsel %vm1644_vm12, %v2226_v17, %v2194_v63  ;;  %v6597_v63 = vld [vmem:[#allocation15_spill] sm:$0xff] }
 0x13b   : > { %4526 = vmatmul.mubr.msk.bf16.vlgmr.msra.gmra.mrb[0].mxu1 %vm2295_vm13, %v2258_v38 }
 0x13c   : > { %v3212_v25 = vpop.permute.xlu1 %3211 }
 0x13d   : > { %v3276_v24 = vsel %vm1644_vm12, %v3244_v57, %v3212_v25  ;;  %v2068_v50 = vpop.permute.xlu0 %2067 }
 0x13e   : > { %4597 = vmatprep.mubr.msk.bf16.mxu0 %vm2295_vm13, %v3276_v24  ;;  %v2228_v32 = vsel %vm1611_vm11, %v6589_v0, %v2068_v50 }
 0x13f   : > { %v2260_v60 = vsel %vm1644_vm12, %v2228_v32, %v2196_v2 }
 0x140   : > { %v3214_v35 = vpop.permute.xlu1 %3213  ;;  %4529 = vmatprep.mubr.msk.bf16.mxu1 %vm2295_vm13, %v2260_v60 }
 0x141   : > { %v2070_v30 = vpop.permute.xlu0 %2069 }
 0x142   : > { %v2230_v5 = vsel %vm1611_vm11, %v6591_v54, %v2070_v30 }
 0x144   : > { %v3088_v14 = vpop.permute.xlu1 %3087 }
 0x145   : > { %v3086_v33 = vpop.permute.xlu0 %3085  ;;  %v3248_v36 = vsel %vm1611_vm11, %v6592_v61, %v3088_v14 }
 0x146   : > { %v3246_v58 = vsel %vm1611_vm11, %v6590_v21, %v3086_v33 }
 0x147   : > { %v3278_v12 = vsel %vm1644_vm12, %v3246_v58, %v3214_v35  ;;  %v6598_v35 = vld [vmem:[#allocation16_spill] sm:$0xff] }
 0x148   : > { %v2200_v18 = vpop.permute.xlu1 %2199  ;;  %4598 = vmatmul.mubr.msk.bf16.gmra.mrb[4].mxu0 %vm2295_vm13, %v3278_v12 }
 0x149   : > { %v2198_v29 = vpop.permute.xlu0 %2197 }
 0x14a   : > { %v2262_v44 = vsel %vm1644_vm12, %v2230_v5, %v2198_v29 }
 0x14b   : > { %4530 = vmatmul.mubr.msk.bf16.gmra.mrb[4].mxu1 %vm2295_vm13, %v2262_v44 }
 0x14c   : > { %v3216_v39 = vpop.permute.xlu1 %3215 }
 0x14d   : > { %v3280_v41 = vsel %vm1644_vm12, %v3248_v36, %v3216_v39  ;;  %v2072_v52 = vpop.permute.xlu0 %2071 }
 0x14e   : > { %4601 = vmatprep.mubr.msk.bf16.mxu0 %vm2295_vm13, %v3280_v41  ;;  %v2232_v3 = vsel %vm1611_vm11, %v6593_v34, %v2072_v52 }
 0x14f   : > { %v2264_v59 = vsel %vm1644_vm12, %v2232_v3, %v2200_v18 }
 0x150   : > { %v3218_v45 = vpop.permute.xlu1 %3217  ;;  %4533 = vmatprep.mubr.msk.bf16.mxu1 %vm2295_vm13, %v2264_v59 }
 0x151   : > { %v2074_v20 = vpop.permute.xlu0 %2073 }
 0x152   : > { %v2234_v40 = vsel %vm1611_vm11, %v6595_v26, %v2074_v20 }
 0x154   : > { %v3092_v8 = vpop.permute.xlu1 %3091 }
 0x155   : > { %v3090_v55 = vpop.permute.xlu0 %3089  ;;  %v3252_v16 = vsel %vm1611_vm11, %v6596_v22, %v3092_v8 }
 0x156   : > { %v3250_v42 = vsel %vm1611_vm11, %v6594_v9, %v3090_v55 }
 0x157   : > { %v3282_v13 = vsel %vm1644_vm12, %v3250_v42, %v3218_v45 }
 0x158   : > { %v2204_v7 = vpop.permute.xlu1 %2203  ;;  %4602 = vmatmul.mubr.msk.bf16.gmra.mrb[8].mxu0 %vm2295_vm13, %v3282_v13 }
 0x159   : > { %v2202_v31 = vpop.permute.xlu0 %2201 }
 0x15a   : > { %v2266_v53 = vsel %vm1644_vm12, %v2234_v40, %v2202_v31 }
 0x15b   : > { %4534 = vmatmul.mubr.msk.bf16.gmra.mrb[8].mxu1 %vm2295_vm13, %v2266_v53 }
 0x15c   : > { %v3220_v2 = vpop.permute.xlu1 %3219 }
 0x15d   : > { %v3284_v56 = vsel %vm1644_vm12, %v3252_v16, %v3220_v2  ;;  %v2076_v17 = vpop.permute.xlu0 %2075 }
 0x15e   : > { %4605 = vmatprep.mubr.msk.bf16.mxu0 %vm2295_vm13, %v3284_v56  ;;  %v2236_v38 = vsel %vm1611_vm11, %v6597_v63, %v2076_v17 }
 0x15f   : > { %v2268_v27 = vsel %vm1644_vm12, %v2236_v38, %v2204_v7 }
 0x160   : > { %v3222_v57 = vpop.permute.xlu1 %3221  ;;  %4537 = vmatprep.mubr.msk.bf16.mxu1 %vm2295_vm13, %v2268_v27 }
 0x161   : > { %v2078_v25 = vpop.permute.xlu0 %2077 }
 0x162   : > { %v2238_v30 = vsel %vm1611_vm11, %v6598_v35, %v2078_v25 }
 0x164   : > { %v3096_v24 = vpop.permute.xlu1 %3095 }
 0x165   : > { %v3094_v50 = vpop.permute.xlu0 %3093  ;;  %v3256_v21 = vsel %vm1611_vm11, %v5703_v19, %v3096_v24 }
 0x166   : > { %v3254_v0 = vsel %vm1611_vm11, %v5718_v15, %v3094_v50 }
 0x167   : > { %v3286_v32 = vsel %vm1644_vm12, %v3254_v0, %v3222_v57 }
 0x168   : > { %v2208_v60 = vpop.permute.xlu1 %2207  ;;  %4606 = vmatmul.mubr.msk.bf16.gmra.mrb[12].mxu0 %vm2295_vm13, %v3286_v32 }
 0x169   : > { %v2206_v14 = vpop.permute.xlu0 %2205 }
 0x16a   : > { %v2270_v33 = vsel %vm1644_vm12, %v2238_v30, %v2206_v14 }
 0x16b   : > { %4538 = vmatmul.mubr.msk.bf16.gmra.mrb[12].mxu1 %vm2295_vm13, %v2270_v33 }
 0x16c   : > { %v3224_v58 = vpop.permute.xlu1 %3223 }
 0x16d   : > { %v3288_v12 = vsel %vm1644_vm12, %v3256_v21, %v3224_v58  ;;  %v2080_v15 = vpop.permute.xlu0 %2079 }
 0x16e   : > { %4609 = vmatprep.mubr.msk.bf16.mxu0 %vm2295_vm13, %v3288_v12  ;;  %v2240_v18 = vsel %vm1611_vm11, %v5743_v46, %v2080_v15 }
 0x16f   : > { %v2272_v54 = vsel %vm1644_vm12, %v2240_v18, %v2208_v60 }
 0x170   : > { %v3226_v5 = vpop.permute.xlu1 %3225  ;;  %4541 = vmatprep.mubr.msk.bf16.mxu1 %vm2295_vm13, %v2272_v54 }
 0x171   : > { %v2082_v29 = vpop.permute.xlu0 %2081 }
 0x172   : > { %v2242_v41 = vsel %vm1611_vm11, %v5754_v28, %v2082_v29 }
 0x174   : > { %v3100_v44 = vpop.permute.xlu1 %3099 }
 0x175   : > { %v3098_v61 = vpop.permute.xlu0 %3097  ;;  %v3260_v34 = vsel %vm1611_vm11, %v5791_v43, %v3100_v44 }
 0x176   : > { %v3258_v19 = vsel %vm1611_vm11, %v5779_v6, %v3098_v61 }
 0x177   : > { %v3290_v36 = vsel %vm1644_vm12, %v3258_v19, %v3226_v5 }
 0x178   : > { %v2212_v39 = vpop.permute.xlu1 %2211  ;;  %4610 = vmatmul.mubr.msk.bf16.gmra.mrb[16].mxu0 %vm2295_vm13, %v3290_v36 }
 0x179   : > { %v2210_v46 = vpop.permute.xlu0 %2209 }
 0x17a   : > { %v2274_v52 = vsel %vm1644_vm12, %v2242_v41, %v2210_v46 }
 0x17b   : > { %4542 = vmatmul.mubr.msk.bf16.gmra.mrb[16].mxu1 %vm2295_vm13, %v2274_v52 }
 0x17c   : > { %v3228_v3 = vpop.permute.xlu1 %3227 }
 0x17d   : > { %v3292_v59 = vsel %vm1644_vm12, %v3260_v34, %v3228_v3  ;;  %v2084_v6 = vpop.permute.xlu0 %2083 }
 0x17e   : > { %4613 = vmatprep.mubr.msk.bf16.mxu0 %vm2295_vm13, %v3292_v59  ;;  %v2244_v45 = vsel %vm1611_vm11, %v5810_v48, %v2084_v6 }
 0x17f   : > { %v2276_v20 = vsel %vm1644_vm12, %v2244_v45, %v2212_v39 }
 0x180   : > { %v3230_v28 = vpop.permute.xlu1 %3229  ;;  %4545 = vmatprep.mubr.msk.bf16.mxu1 %vm2295_vm13, %v2276_v20 }
 0x181   : > { %v2086_v8 = vpop.permute.xlu0 %2085 }
 0x182   : > { %v2246_v7 = vsel %vm1611_vm11, %v5839_v47, %v2086_v8 }
 0x184   : > { %v3104_v55 = vpop.permute.xlu1 %3103 }
 0x185   : > { %v3102_v9 = vpop.permute.xlu0 %3101  ;;  %v3264_v40 = vsel %vm1611_vm11, %v5879_v4, %v3104_v55 }
 0x186   : > { %v3262_v43 = vsel %vm1611_vm11, %v5884_v11, %v3102_v9 }
 0x187   : > { %v3294_v42 = vsel %vm1644_vm12, %v3262_v43, %v3230_v28 }
 0x188   : > { %v2216_v13 = vpop.permute.xlu1 %2215  ;;  %4614 = vmatmul.mubr.msk.bf16.gmra.mrb[20].mxu0 %vm2295_vm13, %v3294_v42 }
 0x189   : > { %v2214_v48 = vpop.permute.xlu0 %2213 }
 0x18a   : > { %v2278_v26 = vsel %vm1644_vm12, %v2246_v7, %v2214_v48 }
 0x18b   : > { %4546 = vmatmul.mubr.msk.bf16.gmra.mrb[20].mxu1 %vm2295_vm13, %v2278_v26 }
 0x18c   : > { %v3232_v31 = vpop.permute.xlu1 %3231 }
 0x18d   : > { %v3296_v53 = vsel %vm1644_vm12, %v3264_v40, %v3232_v31  ;;  %v2088_v11 = vpop.permute.xlu0 %2087 }
 0x18e   : > { %4617 = vmatprep.mubr.msk.bf16.mxu0 %vm2295_vm13, %v3296_v53  ;;  %v2248_v22 = vsel %vm1611_vm11, %v5936_v10, %v2088_v11 }
 0x18f   : > { %v2280_v16 = vsel %vm1644_vm12, %v2248_v22, %v2216_v13 }
 0x190   : > { %v3234_v47 = vpop.permute.xlu1 %3233  ;;  %4549 = vmatprep.mubr.msk.bf16.mxu1 %vm2295_vm13, %v2280_v16 }
 0x191   : > { %v2090_v2 = vpop.permute.xlu0 %2089 }
 0x192   : > { %v2250_v27 = vsel %vm1611_vm11, %v5954_v49, %v2090_v2 }
 0x194   : > { %v3108_v56 = vpop.permute.xlu1 %3107 }
 0x195   : > { %v3106_v17 = vpop.permute.xlu0 %3105  ;;  %v3268_v25 = vsel %vm1611_vm11, %v5987_v51, %v3108_v56 }
 0x196   : > { %v3266_v4 = vsel %vm1611_vm11, %v5973_v1, %v3106_v17 }
 0x197   : > { %v3298_v63 = vsel %vm1644_vm12, %v3266_v4, %v3234_v47 }
 0x198   : > { %v2220_v38 = vpop.permute.xlu1 %2219  ;;  %4618 = vmatmul.mubr.msk.bf16.gmra.mrb[24].mxu0 %vm2295_vm13, %v3298_v63 }
 0x199   : > { %v2218_v10 = vpop.permute.xlu0 %2217 }
 0x19a   : > { %v2282_v57 = vsel %vm1644_vm12, %v2250_v27, %v2218_v10 }
 0x19b   : > { %4550 = vmatmul.mubr.msk.bf16.gmra.mrb[24].mxu1 %vm2295_vm13, %v2282_v57 }
 0x19c   : > { %v3236_v24 = vpop.permute.xlu1 %3235 }
 0x19d   : > { %v3300_v50 = vsel %vm1644_vm12, %v3268_v25, %v3236_v24  ;;  %v2092_v1 = vpop.permute.xlu0 %2091 }
 0x19e   : > { %4621 = vmatprep.mubr.msk.bf16.mxu0 %vm2295_vm13, %v3300_v50  ;;  %v2252_v0 = vsel %vm1611_vm11, %v5991_v23, %v2092_v1 }
 0x19f   : > { %v2284_v32 = vsel %vm1644_vm12, %v2252_v0, %v2220_v38 }
 0x1a0   : > { %4553 = vmatprep.mubr.msk.bf16.mxu1 %vm2295_vm13, %v2284_v32  ;;  %v3238_v60 = vpop.permute.xlu1 %3237 }
 0x1a1   : > { %v2094_v49 = vpop.permute.xlu0 %2093 }
 0x1a2   : > { %v2254_v14 = vsel %vm1611_vm11, %v6015_v62, %v2094_v49 }
 0x1a5   : > { %v3110_v35 = vpop.permute.xlu0 %3109 }
 0x1a6   : > { %v3270_v51 = vsel %vm1611_vm11, %v6027_v37, %v3110_v35 }
 0x1a7   : > { %v3302_v30 = vsel %vm1644_vm12, %v3270_v51, %v3238_v60 }
 0x1a8   : > { %4622 = vmatmul.mubr.msk.bf16.gmra.mrb[28].mxu0 %vm2295_vm13, %v3302_v30 }
 0x1a9   : > { %v2222_v33 = vpop.permute.xlu0 %2221 }
 0x1aa   : > { %v2286_v23 = vsel %vm1644_vm12, %v2254_v14, %v2222_v33 }
 0x1ab   : > { %4554 = vmatmul.mubr.msk.bf16.gmra.mrb[28].mxu1 %vm2295_vm13, %v2286_v23 }
 0x20b   : > { %v4595_v21 = vpop.f32.mrb[0].mxu0 }
 0x20c   : > { %v3380_v58 = vpop.f32.mrb[1].mxu0 }
 0x20d   : > { %v4596_v12 = vpop.f32.mrb[2].mxu0 }
 0x20e   : > { %v4527_v15 = vpop.f32.mrb[0].mxu1  ;;  %v3383_v18 = vpop.f32.mrb[3].mxu0 }
 0x20f   : > { %v2366_v54 = vpop.f32.mrb[1].mxu1  ;;  %v6191_v5 = vadd.f32 %v4595_v21, %v4527_v15 }
 0x210   : > { %v4528_v62 = vpop.f32.mrb[2].mxu1  ;;  %v6200_v37 = vadd.f32 %v3380_v58, %v2366_v54 }
 0x211   : > { %v2369_v29 = vpop.f32.mrb[3].mxu1  ;;  %v4341_v44 = vpack.c.bf16 %v6191_v5, %v6191_v5  ;;  %v6204_v61 = vadd.f32 %v4596_v12, %v4528_v62  ;;  %v3541_v59 = vmul.f32 %v6191_v5, %v6191_v5 }
 0x212   : > { %v4339_v19 = vpack.c.bf16 %v6200_v37, %v6200_v37  ;;  %v6208_v36 = vadd.f32 %v3383_v18, %v2369_v29  ;;  %v3539_v41 = vmul.f32 %v6200_v37, %v6200_v37 }
 0x213   : > { %3919 = vst.msk [vmem:[%s6198_s24 + $0x8] sm:$0xf] %vm410_vm0, %v4341_v44  ;;  %v4342_v39 = vpack.c.bf16 %v6204_v61, %v6204_v61  ;;  %v3542_v34 = vmul.f32 %v6204_v61, %v6204_v61 }
 0x214   : > { %3917 = vst.msk [vmem:[%s6198_s24] sm:$0xf] %vm410_vm0, %v4339_v19  ;;  %v3540_v46 = vmul.f32 %v6208_v36, %v6208_v36  ;;  %v4340_v52 = vpack.c.bf16 %v6208_v36, %v6208_v36 }
 0x215   : > { %3920 = vst.msk [vmem:[%s6198_s24 + $0xc] sm:$0xf] %vm410_vm0, %v4342_v39  ;;  %v4719_v6 = vpack.i.bf16 %v3542_v34, %v3541_v59 }
 0x216   : > { %3918 = vst.msk [vmem:[%s6198_s24 + $0x4] sm:$0xf] %vm410_vm0, %v4340_v52  ;;  %v4704_v3 = vpack.i.bf16 %v3540_v46, %v3539_v41 }
 0x218   : > { %4705 = vrot.lane.b32.xlu1 %v4704_v3, %s4941_s29 }
 0x21b   : > { %v4599_v45 = vpop.f32.mrb[4].mxu0 }
 0x21c   : > { %v3396_v20 = vpop.f32.mrb[5].mxu0  ;;  %4720 = vrot.lane.b32.xlu1 %v4719_v6, %s4941_s29 }
 0x21d   : > { %v4600_v28 = vpop.f32.mrb[6].mxu0 }
 0x21e   : > { %v4531_v8 = vpop.f32.mrb[4].mxu1  ;;  %v3399_v55 = vpop.f32.mrb[7].mxu0 }
 0x21f   : > { %v2382_v9 = vpop.f32.mrb[5].mxu1  ;;  %v6232_v43 = vadd.f32 %v4599_v45, %v4531_v8 }
 0x220   : > { %v4532_v42 = vpop.f32.mrb[6].mxu1  ;;  %v6234_v13 = vadd.f32 %v3396_v20, %v2382_v9 }
 0x221   : > { %v4345_v7 = vpack.c.bf16 %v6232_v43, %v6232_v43  ;;  %v2385_v48 = vpop.f32.mrb[7].mxu1  ;;  %v6238_v26 = vadd.f32 %v4600_v28, %v4532_v42  ;;  %v3545_v56 = vmul.f32 %v6232_v43, %v6232_v43 }
 0x222   : > { %v4343_v40 = vpack.c.bf16 %v6234_v13, %v6234_v13  ;;  %v6242_v31 = vadd.f32 %v3399_v55, %v2385_v48  ;;  %v3543_v11 = vmul.f32 %v6234_v13, %v6234_v13 }
 0x223   : > { %3923 = vst.msk [vmem:[%s6198_s24 + $0x18] sm:$0xf] %vm410_vm0, %v4345_v7  ;;  %v4346_v53 = vpack.c.bf16 %v6238_v26, %v6238_v26  ;;  %v3546_v47 = vmul.f32 %v6238_v26, %v6238_v26 }
 0x224   : > { %3921 = vst.msk [vmem:[%s6198_s24 + $0x10] sm:$0xf] %vm410_vm0, %v4343_v40  ;;  %v3544_v22 = vmul.f32 %v6242_v31, %v6242_v31  ;;  %v4344_v16 = vpack.c.bf16 %v6242_v31, %v6242_v31 }
 0x225   : > { %3924 = vst.msk [vmem:[%s6198_s24 + $0x1c] sm:$0xf] %vm410_vm0, %v4346_v53  ;;  %v4739_v17 = vpack.i.bf16 %v3546_v47, %v3545_v56 }
 0x226   : > { %3922 = vst.msk [vmem:[%s6198_s24 + $0x14] sm:$0xf] %vm410_vm0, %v4344_v16  ;;  %v4724_v2 = vpack.i.bf16 %v3544_v22, %v3543_v11 }
 0x228   : > { %4725 = vrot.lane.b32.xlu1 %v4724_v2, %s4941_s29 }
 0x22b   : > { %v4603_v4 = vpop.f32.mrb[8].mxu0 }
 0x22c   : > { %4740 = vrot.lane.b32.xlu1 %v4739_v17, %s4941_s29  ;;  %v3412_v63 = vpop.f32.mrb[9].mxu0 }
 0x22d   : > { %v4604_v38 = vpop.f32.mrb[10].mxu0 }
 0x22e   : > { %v4535_v27 = vpop.f32.mrb[8].mxu1  ;;  %v3415_v10 = vpop.f32.mrb[11].mxu0 }
 0x22f   : > { %v6266_v57 = vadd.f32 %v4603_v4, %v4535_v27  ;;  %v2398_v25 = vpop.f32.mrb[9].mxu1 }
 0x230   : > { %v6268_v24 = vadd.f32 %v3412_v63, %v2398_v25  ;;  %v4536_v50 = vpop.f32.mrb[10].mxu1 }
 0x231   : > { %v4349_v1 = vpack.c.bf16 %v6266_v57, %v6266_v57  ;;  %v6272_v0 = vadd.f32 %v4604_v38, %v4536_v50  ;;  %v2401_v32 = vpop.f32.mrb[11].mxu1  ;;  %v3549_v21 = vmul.f32 %v6266_v57, %v6266_v57 }
 0x232   : > { %v4347_v49 = vpack.c.bf16 %v6268_v24, %v6268_v24  ;;  %v6276_v60 = vadd.f32 %v3415_v10, %v2401_v32  ;;  %v3547_v51 = vmul.f32 %v6268_v24, %v6268_v24 }
 0x233   : > { %3927 = vst.msk [vmem:[%s6198_s24 + $0x28] sm:$0xf] %vm410_vm0, %v4349_v1  ;;  %v4350_v35 = vpack.c.bf16 %v6272_v0, %v6272_v0  ;;  %v3550_v33 = vmul.f32 %v6272_v0, %v6272_v0 }
 0x234   : > { %3925 = vst.msk [vmem:[%s6198_s24 + $0x20] sm:$0xf] %vm410_vm0, %v4347_v49  ;;  %v3548_v30 = vmul.f32 %v6276_v60, %v6276_v60  ;;  %v4348_v14 = vpack.c.bf16 %v6276_v60, %v6276_v60 }
 0x235   : > { %3928 = vst.msk [vmem:[%s6198_s24 + $0x2c] sm:$0xf] %vm410_vm0, %v4350_v35  ;;  %v4759_v58 = vpack.i.bf16 %v3550_v33, %v3549_v21 }
 0x236   : > { %3926 = vst.msk [vmem:[%s6198_s24 + $0x24] sm:$0xf] %vm410_vm0, %v4348_v14  ;;  %v4744_v23 = vpack.i.bf16 %v3548_v30, %v3547_v51 }
 0x238   : > { %4745 = vrot.lane.b32.xlu1 %v4744_v23, %s4941_s29 }
 0x23b   : > { %v4607_v12 = vpop.f32.mrb[12].mxu0 }
 0x23c   : > { %4760 = vrot.lane.b32.xlu1 %v4759_v58, %s4941_s29  ;;  %v3428_v15 = vpop.f32.mrb[13].mxu0 }
 0x23d   : > { %v4608_v18 = vpop.f32.mrb[14].mxu0 }
 0x23e   : > { %v4539_v54 = vpop.f32.mrb[12].mxu1  ;;  %v3431_v62 = vpop.f32.mrb[15].mxu0 }
 0x23f   : > { %v6300_v29 = vadd.f32 %v4607_v12, %v4539_v54  ;;  %v2414_v44 = vpop.f32.mrb[13].mxu1 }
 0x240   : > { %v6302_v19 = vadd.f32 %v3428_v15, %v2414_v44  ;;  %v4540_v39 = vpop.f32.mrb[14].mxu1 }
 0x241   : > { %v4353_v41 = vpack.c.bf16 %v6300_v29, %v6300_v29  ;;  %v6306_v46 = vadd.f32 %v4608_v18, %v4540_v39  ;;  %v2417_v52 = vpop.f32.mrb[15].mxu1  ;;  %v3553_v55 = vmul.f32 %v6300_v29, %v6300_v29 }
 0x242   : > { %v4351_v34 = vpack.c.bf16 %v6302_v19, %v6302_v19  ;;  %v6310_v3 = vadd.f32 %v3431_v62, %v2417_v52  ;;  %v3551_v6 = vmul.f32 %v6302_v19, %v6302_v19 }
 0x243   : > { %3931 = vst.msk [vmem:[%s6198_s24 + $0x38] sm:$0xf] %vm410_vm0, %v4353_v41  ;;  %v4354_v59 = vpack.c.bf16 %v6306_v46, %v6306_v46  ;;  %v3554_v28 = vmul.f32 %v6306_v46, %v6306_v46 }
 0x244   : > { %3929 = vst.msk [vmem:[%s6198_s24 + $0x30] sm:$0xf] %vm410_vm0, %v4351_v34  ;;  %v3552_v45 = vmul.f32 %v6310_v3, %v6310_v3  ;;  %v4352_v20 = vpack.c.bf16 %v6310_v3, %v6310_v3 }
 0x245   : > { %3932 = vst.msk [vmem:[%s6198_s24 + $0x3c] sm:$0xf] %vm410_vm0, %v4354_v59  ;;  %v4779_v9 = vpack.i.bf16 %v3554_v28, %v3553_v55 }
 0x246   : > { %3930 = vst.msk [vmem:[%s6198_s24 + $0x34] sm:$0xf] %vm410_vm0, %v4352_v20  ;;  %v4764_v8 = vpack.i.bf16 %v3552_v45, %v3551_v6 }
 0x248   : > { %4765 = vrot.lane.b32.xlu1 %v4764_v8, %s4941_s29 }
 0x24b   : > { %v4611_v42 = vpop.f32.mrb[16].mxu0 }
 0x24c   : > { %4780 = vrot.lane.b32.xlu1 %v4779_v9, %s4941_s29  ;;  %v3444_v7 = vpop.f32.mrb[17].mxu0 }
 0x24d   : > { %v4612_v48 = vpop.f32.mrb[18].mxu0 }
 0x24e   : > { %v4543_v40 = vpop.f32.mrb[16].mxu1  ;;  %v3447_v53 = vpop.f32.mrb[19].mxu0 }
 0x24f   : > { %v6334_v11 = vadd.f32 %v4611_v42, %v4543_v40  ;;  %v2430_v22 = vpop.f32.mrb[17].mxu1 }
 0x250   : > { %v6336_v16 = vadd.f32 %v3444_v7, %v2430_v22  ;;  %v4544_v47 = vpop.f32.mrb[18].mxu1 }
 0x251   : > { %v4357_v2 = vpack.c.bf16 %v6334_v11, %v6334_v11  ;;  %v6340_v56 = vadd.f32 %v4612_v48, %v4544_v47  ;;  %v2433_v17 = vpop.f32.mrb[19].mxu1  ;;  %v3557_v32 = vmul.f32 %v6334_v11, %v6334_v11 }
 0x252   : > { %v4355_v4 = vpack.c.bf16 %v6336_v16, %v6336_v16  ;;  %v6344_v63 = vadd.f32 %v3447_v53, %v2433_v17  ;;  %v3555_v27 = vmul.f32 %v6336_v16, %v6336_v16 }
 0x253   : > { %3935 = vst.msk [vmem:[%s6198_s24 + $0x48] sm:$0xf] %vm410_vm0, %v4357_v2  ;;  %v4358_v38 = vpack.c.bf16 %v6340_v56, %v6340_v56  ;;  %v3558_v50 = vmul.f32 %v6340_v56, %v6340_v56 }
 0x254   : > { %3933 = vst.msk [vmem:[%s6198_s24 + $0x40] sm:$0xf] %vm410_vm0, %v4355_v4  ;;  %v3556_v10 = vmul.f32 %v6344_v63, %v6344_v63  ;;  %v4356_v25 = vpack.c.bf16 %v6344_v63, %v6344_v63 }
 0x255   : > { %3936 = vst.msk [vmem:[%s6198_s24 + $0x4c] sm:$0xf] %vm410_vm0, %v4358_v38  ;;  %v4714_v49 = vpack.i.bf16 %v3558_v50, %v3557_v32 }
 0x256   : > { %3934 = vst.msk [vmem:[%s6198_s24 + $0x44] sm:$0xf] %vm410_vm0, %v4356_v25  ;;  %v4709_v1 = vpack.i.bf16 %v3556_v10, %v3555_v27 }
 0x258   : > { %4710 = vrot.lane.b32.xlu0 %v4709_v1, %s4941_s29 }
 0x25b   : > { %v4615_v35 = vpop.f32.mrb[20].mxu0 }
 0x25c   : > { %4715 = vrot.lane.b32.xlu0 %v4714_v49, %s4941_s29  ;;  %v3460_v51 = vpop.f32.mrb[21].mxu0 }
 0x25d   : > { %v4616_v30 = vpop.f32.mrb[22].mxu0 }
 0x25e   : > { %v4547_v14 = vpop.f32.mrb[20].mxu1  ;;  %v3463_v33 = vpop.f32.mrb[23].mxu0 }
 0x25f   : > { %v6368_v23 = vadd.f32 %v4615_v35, %v4547_v14  ;;  %v2446_v21 = vpop.f32.mrb[21].mxu1 }
 0x260   : > { %v6370_v58 = vadd.f32 %v3460_v51, %v2446_v21  ;;  %v4548_v12 = vpop.f32.mrb[22].mxu1 }
 0x261   : > { %v4361_v15 = vpack.c.bf16 %v6368_v23, %v6368_v23  ;;  %v6374_v18 = vadd.f32 %v4616_v30, %v4548_v12  ;;  %v2449_v54 = vpop.f32.mrb[23].mxu1  ;;  %v3561_v45 = vmul.f32 %v6368_v23, %v6368_v23 }
 0x262   : > { %v4359_v62 = vpack.c.bf16 %v6370_v58, %v6370_v58  ;;  %v6378_v44 = vadd.f32 %v3463_v33, %v2449_v54  ;;  %v3559_v41 = vmul.f32 %v6370_v58, %v6370_v58 }
 0x263   : > { %3939 = vst.msk [vmem:[%s6198_s24 + $0x58] sm:$0xf] %vm410_vm0, %v4361_v15  ;;  %v4362_v39 = vpack.c.bf16 %v6374_v18, %v6374_v18  ;;  %v3562_v59 = vmul.f32 %v6374_v18, %v6374_v18 }
 0x264   : > { %3937 = vst.msk [vmem:[%s6198_s24 + $0x50] sm:$0xf] %vm410_vm0, %v4359_v62  ;;  %v3560_v52 = vmul.f32 %v6378_v44, %v6378_v44  ;;  %v4360_v34 = vpack.c.bf16 %v6378_v44, %v6378_v44 }
 0x265   : > { %3940 = vst.msk [vmem:[%s6198_s24 + $0x5c] sm:$0xf] %vm410_vm0, %v4362_v39  ;;  %v4734_v20 = vpack.i.bf16 %v3562_v59, %v3561_v45 }
 0x266   : > { %3938 = vst.msk [vmem:[%s6198_s24 + $0x54] sm:$0xf] %vm410_vm0, %v4360_v34  ;;  %v4729_v6 = vpack.i.bf16 %v3560_v52, %v3559_v41 }
 0x268   : > { %4730 = vrot.lane.b32.xlu0 %v4729_v6, %s4941_s29 }
 0x26b   : > { %v4619_v28 = vpop.f32.mrb[24].mxu0 }
 0x26c   : > { %4735 = vrot.lane.b32.xlu0 %v4734_v20, %s4941_s29  ;;  %v3476_v8 = vpop.f32.mrb[25].mxu0 }
 0x26d   : > { %v4620_v55 = vpop.f32.mrb[26].mxu0 }
 0x26e   : > { %v4551_v9 = vpop.f32.mrb[24].mxu1  ;;  %v3479_v42 = vpop.f32.mrb[27].mxu0 }
 0x26f   : > { %v6402_v7 = vadd.f32 %v4619_v28, %v4551_v9  ;;  %v2462_v48 = vpop.f32.mrb[25].mxu1 }
 0x270   : > { %v6404_v40 = vadd.f32 %v3476_v8, %v2462_v48  ;;  %v4552_v53 = vpop.f32.mrb[26].mxu1 }
 0x271   : > { %v4365_v22 = vpack.c.bf16 %v6402_v7, %v6402_v7  ;;  %v6408_v47 = vadd.f32 %v4620_v55, %v4552_v53  ;;  %v2465_v2 = vpop.f32.mrb[27].mxu1  ;;  %v3565_v32 = vmul.f32 %v6402_v7, %v6402_v7  ;;  %v4942_v55 = vmov 1065369472  }
 0x272   : > { %v4363_v17 = vpack.c.bf16 %v6404_v40, %v6404_v40  ;;  %v6412_v4 = vadd.f32 %v3479_v42, %v2465_v2  ;;  %v3563_v27 = vmul.f32 %v6404_v40, %v6404_v40  ;;  %3779 = vmatprep.mubr.bf16.mxu1 %v4942_v55 }
 0x273   : > { %3943 = vst.msk [vmem:[%s6198_s24 + $0x68] sm:$0xf] %vm410_vm0, %v4365_v22  ;;  %v4366_v38 = vpack.c.bf16 %v6408_v47, %v6408_v47  ;;  %v3566_v50 = vmul.f32 %v6408_v47, %v6408_v47 }
 0x274   : > { %3941 = vst.msk [vmem:[%s6198_s24 + $0x60] sm:$0xf] %vm410_vm0, %v4363_v17  ;;  %v3564_v10 = vmul.f32 %v6412_v4, %v6412_v4  ;;  %v4364_v25 = vpack.c.bf16 %v6412_v4, %v6412_v4 }
 0x275   : > { %3944 = vst.msk [vmem:[%s6198_s24 + $0x6c] sm:$0xf] %vm410_vm0, %v4366_v38  ;;  %v4754_v49 = vpack.i.bf16 %v3566_v50, %v3565_v32 }
 0x276   : > { %3942 = vst.msk [vmem:[%s6198_s24 + $0x64] sm:$0xf] %vm410_vm0, %v4364_v25  ;;  %v4749_v1 = vpack.i.bf16 %v3564_v10, %v3563_v27 }
 0x278   : > { %4750 = vrot.lane.b32.xlu0 %v4749_v1, %s4941_s29 }
 0x27b   : > { %v4623_v35 = vpop.f32.mrb[28].mxu0 }
 0x27c   : > { %4755 = vrot.lane.b32.xlu0 %v4754_v49, %s4941_s29  ;;  %v3492_v51 = vpop.f32.mrb[29].mxu0 }
 0x27d   : > { %v4624_v30 = vpop.f32.mrb[30].mxu0 }
 0x27e   : > { %v4555_v14 = vpop.f32.mrb[28].mxu1  ;;  %v3495_v33 = vpop.f32.mrb[31].mxu0 }
 0x27f   : > { %v6436_v21 = vadd.f32 %v4623_v35, %v4555_v14  ;;  %v2478_v12 = vpop.f32.mrb[29].mxu1 }
 0x280   : > { %v6438_v15 = vadd.f32 %v3492_v51, %v2478_v12  ;;  %v4556_v54 = vpop.f32.mrb[30].mxu1 }
 0x281   : > { %v4369_v62 = vpack.c.bf16 %v6436_v21, %v6436_v21  ;;  %v6442_v39 = vadd.f32 %v4624_v30, %v4556_v54  ;;  %v2481_v41 = vpop.f32.mrb[31].mxu1  ;;  %v3569_v9 = vmul.f32 %v6436_v21, %v6436_v21 }
 0x282   : > { %v4367_v52 = vpack.c.bf16 %v6438_v15, %v6438_v15  ;;  %v6446_v34 = vadd.f32 %v3495_v33, %v2481_v41  ;;  %v3567_v6 = vmul.f32 %v6438_v15, %v6438_v15 }
 0x283   : > { %3947 = vst.msk [vmem:[%s6198_s24 + $0x78] sm:$0xf] %vm410_vm0, %v4369_v62  ;;  %v4370_v59 = vpack.c.bf16 %v6442_v39, %v6442_v39  ;;  %v3570_v28 = vmul.f32 %v6442_v39, %v6442_v39 }
 0x284   : > { %3945 = vst.msk [vmem:[%s6198_s24 + $0x70] sm:$0xf] %vm410_vm0, %v4367_v52  ;;  %v3568_v45 = vmul.f32 %v6446_v34, %v6446_v34  ;;  %v4368_v20 = vpack.c.bf16 %v6446_v34, %v6446_v34 }
 0x285   : > { %3948 = vst.msk [vmem:[%s6198_s24 + $0x7c] sm:$0xf] %vm410_vm0, %v4370_v59  ;;  %v4774_v42 = vpack.i.bf16 %v3570_v28, %v3569_v9 }
 0x286   : > { %3946 = vst.msk [vmem:[%s6198_s24 + $0x74] sm:$0xf] %vm410_vm0, %v4368_v20  ;;  %v4769_v8 = vpack.i.bf16 %v3568_v45, %v3567_v6 }
 0x288   : > { %4770 = vrot.lane.b32.xlu0 %v4769_v8, %s4941_s29 }
 0x28a   : > { %v4706_v48 = vpop.permute.xlu1 %4705 }
 0x28b   : > { %v4708_v53 = vunpack.i.h.bf16 %v4706_v48  ;;  %v4707_v22 = vunpack.i.l.bf16 %v4706_v48 }
 0x28c   : > { %4775 = vrot.lane.b32.xlu0 %v4774_v42, %s4941_s29 }
 0x28d   : > { %v3700_v10 = vsel %vm1611_vm11, %v6208_v36, %v4708_v53  ;;  %v3699_v25 = vsel %vm1611_vm11, %v6200_v37, %v4707_v22 }
 0x28e   : > { %v4721_v2 = vpop.permute.xlu1 %4720  ;;  %v3731_v30 = vpack.c.bf16 %v3700_v10, %v3699_v25 }
 0x28f   : > { %v4723_v50 = vunpack.i.h.bf16 %v4721_v2  ;;  %v4722_v1 = vunpack.i.l.bf16 %v4721_v2 }
 0x291   : > { %v3702_v12 = vsel %vm1611_vm11, %v6204_v61, %v4723_v50  ;;  %v3701_v36 = vsel %vm1611_vm11, %v6191_v5, %v4722_v1 }
 0x292   : > { %v3732_v54 = vpack.c.bf16 %v3702_v12, %v3701_v36 }
 0x29a   : > { %v4726_v62 = vpop.permute.xlu1 %4725 }
 0x29b   : > { %v4728_v41 = vunpack.i.h.bf16 %v4726_v62  ;;  %v4727_v52 = vunpack.i.l.bf16 %v4726_v62 }
 0x29d   : > { %v3704_v5 = vsel %vm1611_vm11, %v6242_v31, %v4728_v41 }
 0x29e   : > { %v4741_v59 = vpop.permute.xlu1 %4740 }
 0x29f   : > { %v4743_v20 = vunpack.i.h.bf16 %v4741_v59  ;;  %v4742_v28 = vunpack.i.l.bf16 %v4741_v59 }
 0x2a1   : > { %v3706_v2 = vsel %vm1611_vm11, %v6238_v26, %v4743_v20  ;;  %v3705_v31 = vsel %vm1611_vm11, %v6232_v43, %v4742_v28 }
 0x2ca   : > { %v4711_v17 = vpop.permute.xlu0 %4710 }
 0x2cb   : > { %v4713_v38 = vunpack.i.h.bf16 %v4711_v17  ;;  %v4712_v27 = vunpack.i.l.bf16 %v4711_v17  ;;  %v3734_v17 = vpack.c.bf16 %v3706_v2, %v3705_v31 }
 0x2cd   : > { %v3715_v32 = vsel %vm1611_vm11, %v6336_v16, %v4712_v27  ;;  %v3716_v49 = vsel %vm1611_vm11, %v6344_v63, %v4713_v38  ;;  %v4746_v38 = vpop.permute.xlu1 %4745 }
 0x2ce   : > { %v4716_v35 = vpop.permute.xlu0 %4715  ;;  %v3739_v51 = vpack.c.bf16 %v3716_v49, %v3715_v32  ;;  %v4748_v27 = vunpack.i.h.bf16 %v4746_v38  ;;  %v4747_v10 = vunpack.i.l.bf16 %v4746_v38 }
 0x2cf   : > { %v4718_v14 = vunpack.i.h.bf16 %v4716_v35  ;;  %v4717_v33 = vunpack.i.l.bf16 %v4716_v35 }
 0x2d0   : > { %4501 = vmatprep.subr.bf16.mxu1 %v3739_v51  ;;  %v3708_v43 = vsel %vm1611_vm11, %v6276_v60, %v4748_v27 }
 0x2d1   : > { %4502 = vmatpush3.bf16.msra.mxu1 %v3731_v30  ;;  %v3717_v37 = vsel %vm1611_vm11, %v6334_v11, %v4717_v33  ;;  %v3718_v16 = vsel %vm1611_vm11, %v6340_v56, %v4718_v14  ;;  %v3703_v11 = vsel %vm1611_vm11, %v6234_v13, %v4727_v52  ;;  %v4761_v25 = vpop.permute.xlu1 %4760 }
 0x2d2   : > { %v3740_v63 = vpack.c.bf16 %v3718_v16, %v3717_v37  ;;  %v3733_v48 = vpack.c.bf16 %v3704_v5, %v3703_v11  ;;  %v4763_v32 = vunpack.i.h.bf16 %v4761_v25  ;;  %v4762_v49 = vunpack.i.l.bf16 %v4761_v25 }
 0x2d4   : > { %4503 = vmatprep.subr.bf16.mxu1 %v3740_v63  ;;  %v3710_v36 = vsel %vm1611_vm11, %v6272_v0, %v4763_v32  ;;  %v3709_v60 = vsel %vm1611_vm11, %v6266_v57, %v4762_v49 }
 0x2d5   : > { %4504 = vmatpush3.bf16.msra.mxu1 %v3732_v54  ;;  %v3736_v37 = vpack.c.bf16 %v3710_v36, %v3709_v60  ;;  %v4766_v16 = vpop.permute.xlu1 %4765 }
 0x2d6   : > { %v4768_v63 = vunpack.i.h.bf16 %v4766_v16  ;;  %v4767_v54 = vunpack.i.l.bf16 %v4766_v16 }
 0x2d8   : > { %v3712_v57 = vsel %vm1611_vm11, %v6310_v3, %v4768_v63 }
 0x2d9   : > { %v4781_v62 = vpop.permute.xlu1 %4780 }
 0x2da   : > { %v4731_v61 = vpop.permute.xlu0 %4730  ;;  %v4783_v59 = vunpack.i.h.bf16 %v4781_v62 }
 0x2db   : > { %v4733_v6 = vunpack.i.h.bf16 %v4731_v61  ;;  %v4732_v45 = vunpack.i.l.bf16 %v4731_v61  ;;  %v4782_v61 = vunpack.i.l.bf16 %v4781_v62 }
 0x2dc   : > { %v3714_v3 = vsel %vm1611_vm11, %v6306_v46, %v4783_v59 }
 0x2dd   : > { %v3719_v56 = vsel %vm1611_vm11, %v6370_v58, %v4732_v45  ;;  %v3720_v8 = vsel %vm1611_vm11, %v6378_v44, %v4733_v6 }
 0x2de   : > { %v4736_v9 = vpop.permute.xlu0 %4735  ;;  %v3741_v42 = vpack.c.bf16 %v3720_v8, %v3719_v56 }
 0x2df   : > { %v4738_v53 = vunpack.i.h.bf16 %v4736_v9  ;;  %v4737_v22 = vunpack.i.l.bf16 %v4736_v9 }
 0x2e0   : > { %4505 = vmatprep.subr.bf16.mxu1 %v3741_v42 }
 0x2e1   : > { %4506 = vmatpush3.bf16.msra.mxu1 %v3733_v48  ;;  %v3721_v13 = vsel %vm1611_vm11, %v6368_v23, %v4737_v22  ;;  %v3722_v58 = vsel %vm1611_vm11, %v6374_v18, %v4738_v53  ;;  %v3707_v23 = vsel %vm1611_vm11, %v6268_v24, %v4747_v10 }
 0x2e2   : > { %v3742_v44 = vpack.c.bf16 %v3722_v58, %v3721_v13  ;;  %v3735_v14 = vpack.c.bf16 %v3708_v43, %v3707_v23 }
 0x2e4   : > { %4507 = vmatprep.subr.bf16.mxu1 %v3742_v44 }
 0x2e5   : > { %4508 = vmatpush3.bf16.msra.mxu1 %v3734_v17 }
 0x2ea   : > { %v4751_v26 = vpop.permute.xlu0 %4750 }
 0x2eb   : > { %v4753_v50 = vunpack.i.h.bf16 %v4751_v26  ;;  %v4752_v1 = vunpack.i.l.bf16 %v4751_v26 }
 0x2ed   : > { %v3723_v18 = vsel %vm1611_vm11, %v6404_v40, %v4752_v1  ;;  %v3724_v35 = vsel %vm1611_vm11, %v6412_v4, %v4753_v50 }
 0x2ee   : > { %v4756_v51 = vpop.permute.xlu0 %4755  ;;  %v3743_v30 = vpack.c.bf16 %v3724_v35, %v3723_v18 }
 0x2ef   : > { %v4758_v33 = vunpack.i.h.bf16 %v4756_v51  ;;  %v4757_v12 = vunpack.i.l.bf16 %v4756_v51 }
 0x2f0   : > { %4509 = vmatprep.subr.bf16.mxu1 %v3743_v30 }
 0x2f1   : > { %4510 = vmatpush3.bf16.msra.mxu1 %v3735_v14  ;;  %v3725_v24 = vsel %vm1611_vm11, %v6402_v7, %v4757_v12  ;;  %v3726_v40 = vsel %vm1611_vm11, %v6408_v47, %v4758_v33  ;;  %v3711_v7 = vsel %vm1611_vm11, %v6302_v19, %v4767_v54  ;;  %v3713_v19 = vsel %vm1611_vm11, %v6300_v29, %v4782_v61 }
 0x2f2   : > { %v3744_v4 = vpack.c.bf16 %v3726_v40, %v3725_v24  ;;  %v3737_v11 = vpack.c.bf16 %v3712_v57, %v3711_v7  ;;  %v3738_v8 = vpack.c.bf16 %v3714_v3, %v3713_v19 }
 0x2f4   : > { %4511 = vmatprep.subr.bf16.mxu1 %v3744_v4 }
 0x2f5   : > { %4512 = vmatpush3.bf16.msra.mxu1 %v3736_v37 }
 0x2fa   : > { %v4771_v0 = vpop.permute.xlu0 %4770 }
 0x2fb   : > { %v4773_v41 = vunpack.i.h.bf16 %v4771_v0  ;;  %v4772_v52 = vunpack.i.l.bf16 %v4771_v0 }
 0x2fd   : > { %v3727_v47 = vsel %vm1611_vm11, %v6438_v15, %v4772_v52  ;;  %v3728_v6 = vsel %vm1611_vm11, %v6446_v34, %v4773_v41 }
 0x2fe   : > { %v4776_v45 = vpop.permute.xlu0 %4775  ;;  %v3745_v5 = vpack.c.bf16 %v3728_v6, %v3727_v47 }
 0x2ff   : > { %v4778_v20 = vunpack.i.h.bf16 %v4776_v45  ;;  %v4777_v28 = vunpack.i.l.bf16 %v4776_v45 }
 0x300   : > { %4513 = vmatprep.subr.bf16.mxu1 %v3745_v5 }
 0x301   : > { %4514 = vmatpush3.bf16.msra.mxu1 %v3737_v11  ;;  %v3729_v15 = vsel %vm1611_vm11, %v6436_v21, %v4777_v28  ;;  %v3730_v34 = vsel %vm1611_vm11, %v6442_v39, %v4778_v20 }
 0x302   : > { %v3746_v56 = vpack.c.bf16 %v3730_v34, %v3729_v15 }
 0x304   : > { %4515 = vmatprep.subr.bf16.mxu1 %v3746_v56 }
 0x305   : > { %4516 = vmatpush3.bf16.msra.mxu1 %v3738_v8 }
 0x308   : > { %3780 = vmatmul.mubr.bf16.vlgmr.msra.gmra.mrb[32].mxu1 %v4942_v55 }
 0x3db   : > { %v4517_v9 = vpop.f32.mrb[32].mxu1 }
 0x3dc   : > { %v4518_v29 = vpop.f32.mrb[33].mxu1 }
 0x3dd   : > { %v4519_v46 = vadd.f32 %v4518_v29, %v4517_v9  ;;  %v4520_v42 = vpop.f32.mrb[34].mxu1 }
 0x3de   : > { %v4521_v48 = vpop.f32.mrb[35].mxu1 }
 0x3df   : > { %3788 = vst.msk [vmem:[%s233_s26] sm:$0x1] %vm3787_vm15, %v4519_v46 }
 0x3e0 PF: > { %s16_s18 = sadd.s32 1, %s4937_s18  }
 0x3e1   : > { %p13_p4 = scmp.ge.s32.totalorder %s16_s18, 4  }
 0x3e3   :  { %15 = sbr.rel (!%p13_p4) target bundleno = 1 (0x1), region = 83 }

</bundles_post_ra>
